<compile_context>
chip_gen: v7x
topology: tpu7x:2x2x1
jax: 0.10.0
libtpu: 0.0.40
codegen_flags: <defaults>
</compile_context>

<pallas_src>
import functools
import math

import numpy as np

import jax
import jax.numpy as jnp
from jax import lax
from jax.experimental import pallas as pl

# ---------------- small config (consistent with the module) ----------------
D_MODEL = 32
NHEAD = 4
HEAD_DIM = D_MODEL // NHEAD
NUM_LAYERS = 2
DIM_FF = 64
BINS = 16
NUM_FRAMES = 3
INSTRUCT_VOCAB = 4
VOCAB = BINS + 2                       # word-embedding vocab size
MAX_POS = (4 + 1) * NUM_FRAMES         # (num_coordinates + 1) * num_frames
LN_EPS = 1e-5

BS = 2          # batch
SEQ_LEN = 8     # target sequence length (<= MAX_POS)
MEM_LEN = 16    # encoder memory tokens (n)

M_TGT = BS * SEQ_LEN        # folded (batch, query) rows  = 16
M_MEM = BS * MEM_LEN        # folded (batch, memory) rows = 32

# -------- activation slab layout: one (A_ROWS, D_MODEL) f32 input ----------
A_TGT = 0                   # raw token/prompt embeddings   (M_TGT rows)
A_QPOS = M_TGT              # tiled query_pos embeddings    (M_TGT rows)
A_MEM = 2 * M_TGT           # memory                        (M_MEM rows)
A_MEMP = A_MEM + M_MEM      # memory + pos (precomputed)    (M_MEM rows)
A_ROWS = A_MEMP + M_MEM     # = 96

# -------- weight slab (MXU dtype): one (W_ROWS, W_COLS) input ---------------
W_COLS = NHEAD * D_MODEL    # 128 (widest matrix: folded WVO)
WROW_SA_QK = 0              # [Wq^T*scale | Wk^T]   (D, 2D)
WROW_SA_VO = 32             # folded Wv.Wout (WVO)  (D, NHEAD*D)
WROW_CA_QK = 64
WROW_CA_VO = 96
WROW_W1T = 128              # linear1^T             (D, FF)
WROW_W2T = 160              # linear2^T             (FF, D)
WROWS_PER_LAYER = 224
W_ROWS = NUM_LAYERS * WROWS_PER_LAYER          # 448

# -------- vector slab (f32, biases + LN params): (V_ROWS, V_COLS) -----------
V_COLS = NHEAD * D_MODEL    # 128 (widest vector: folded bvo)
VROW_SA_BQK, VROW_SA_BVO, VROW_SA_BO = 0, 1, 2
VROW_CA_BQK, VROW_CA_BVO, VROW_CA_BO = 3, 4, 5
VROW_B1, VROW_B2 = 6, 7
VROW_N1W, VROW_N1B, VROW_N2W, VROW_N2B, VROW_N3W, VROW_N3B = 8, 9, 10, 11, 12, 13
VROWS_PER_LAYER = 16
VROW_GLOBAL = NUM_LAYERS * VROWS_PER_LAYER     # 32
VROW_EMB_W = VROW_GLOBAL + 0
VROW_EMB_B = VROW_GLOBAL + 1
VROW_FNW = VROW_GLOBAL + 2
VROW_FNB = VROW_GLOBAL + 3
V_ROWS = 40


# ------------------------------ kernel math ---------------------------------
def _layer_norm(x, w, b):
    """x: (M, D) f32; w, b: (1, D) f32."""
    mu = jnp.mean(x, axis=-1, keepdims=True)
    xc = x - mu
    var = jnp.mean(xc * xc, axis=-1, keepdims=True)
    return xc * lax.rsqrt(var + LN_EPS) * w + b


def _attention(q, k, vo, bo, n_q, n_k, mask, mxu_dtype):
    """Multi-head attention core with folded value/output projection.

    q: (BS*n_q, D) f32 (scale already folded in), k: (BS*n_k, D) f32,
    vo: (BS*n_k, NHEAD*D) f32 (= v_in @ WVO + bvo), bo: (1, D) f32,
    mask: (BS, n_q, n_k) additive f32 or None.  Returns (BS*n_q, D) f32.
    """
    q3 = q.reshape(BS, n_q, D_MODEL).astype(mxu_dtype)
    k3 = k.reshape(BS, n_k, D_MODEL).astype(mxu_dtype)
    vo3 = vo.reshape(BS, n_k, NHEAD * D_MODEL).astype(mxu_dtype)

    out = None
    # Static 4-iteration head loop; score/PV dots are 3-D dot_generals batched
    # over bs.  A fully head-batched dot_general would need a risky 4-D
    # minor<->major relayout on Mosaic, so the 4-wide loop is kept deliberately.
    for h in range(NHEAD):
        lo = h * HEAD_DIM
        s = lax.dot_general(q3[:, :, lo:lo + HEAD_DIM], k3[:, :, lo:lo + HEAD_DIM],
                            (((2,), (2,)), ((0,), (0,))),
                            preferred_element_type=jnp.float32)      # (BS,n_q,n_k)
        if mask is not None:
            s = s + mask                                             # pre-broadcast
        s = s - jnp.max(s, axis=-1, keepdims=True)
        e = jnp.exp(s)
        denom = jnp.sum(e, axis=-1, keepdims=True)
        p = e * pl.reciprocal(denom, approx=True)                    # EUP slot
        oh = lax.dot_general(p.astype(mxu_dtype),
                             vo3[:, :, h * D_MODEL:(h + 1) * D_MODEL],
                             (((2,), (1,)), ((0,), (0,))),
                             preferred_element_type=jnp.float32)     # (BS,n_q,D)
        out = oh if out is None else out + oh
    return out.reshape(BS * n_q, D_MODEL) + bo


def decoder_kernel(act_ref, w_ref, v_ref, out_ref, *, mxu_dtype):
    d = D_MODEL

    def w(row, nrows, ncols):
        return w_ref[row:row + nrows, 0:ncols]

    def v(row, ncols):
        return v_ref[row:row + 1, 0:ncols]          # (1, ncols) bias / LN row

    # unpack activation slab
    x_raw = act_ref[A_TGT:A_TGT + M_TGT, :]          # (16, 32) raw embeddings
    qpos = act_ref[A_QPOS:A_QPOS + M_TGT, :]         # (16, 32) query_pos (tiled)
    mem = act_ref[A_MEM:A_MEM + M_MEM, :]            # (32, 32)
    memp = act_ref[A_MEMP:A_MEMP + M_MEM, :]         # (32, 32) memory + pos

    # causal mask: built once, pre-broadcast to (BS, L, L) so the adds inside
    # the unrolled layer/head loops are plain adds (JAX won't CSE broadcasts).
    r_i = lax.broadcasted_iota(jnp.int32, (SEQ_LEN, SEQ_LEN), 0)
    c_i = lax.broadcasted_iota(jnp.int32, (SEQ_LEN, SEQ_LEN), 1)
    causal = jnp.broadcast_to(
        jnp.where(c_i <= r_i, 0.0, -1e30).astype(jnp.float32)[None, :, :],
        (BS, SEQ_LEN, SEQ_LEN))

    # DecoderEmbeddings.LayerNorm (batch-folded)
    x = _layer_norm(x_raw, v(VROW_EMB_W, d), v(VROW_EMB_B, d))

    # TransformerDecoderLayer.forward_post, stacked over layers (unrolled)
    for l in range(NUM_LAYERS):
        wb = l * WROWS_PER_LAYER
        vb = l * VROWS_PER_LAYER

        # ---- self-attention: fused Q|K projection + folded V.Wout ----
        xq = (x + qpos).astype(mxu_dtype)
        qk = jnp.dot(xq, w(wb + WROW_SA_QK, d, 2 * d),
                     preferred_element_type=jnp.float32) + v(vb + VROW_SA_BQK, 2 * d)
        vo = jnp.dot(x.astype(mxu_dtype), w(wb + WROW_SA_VO, d, NHEAD * d),
                     preferred_element_type=jnp.float32) + v(vb + VROW_SA_BVO, NHEAD * d)
        sa = _attention(qk[:, 0:d], qk[:, d:2 * d], vo, v(vb + VROW_SA_BO, d),
                        SEQ_LEN, SEQ_LEN, causal, mxu_dtype)
        x = _layer_norm(x + sa, v(vb + VROW_N1W, d), v(vb + VROW_N1B, d))

        # ---- cross-attention: row-stacked Q|K projection + folded V.Wout ----
        stacked = jnp.concatenate([x + qpos, memp], axis=0).astype(mxu_dtype)  # (48,32)
        qk = jnp.dot(stacked, w(wb + WROW_CA_QK, d, 2 * d),
                     preferred_element_type=jnp.float32) + v(vb + VROW_CA_BQK, 2 * d)
        vo = jnp.dot(mem.astype(mxu_dtype), w(wb + WROW_CA_VO, d, NHEAD * d),
                     preferred_element_type=jnp.float32) + v(vb + VROW_CA_BVO, NHEAD * d)
        ca = _attention(qk[0:M_TGT, 0:d], qk[M_TGT:M_TGT + M_MEM, d:2 * d], vo,
                        v(vb + VROW_CA_BO, d), SEQ_LEN, MEM_LEN, None, mxu_dtype)
        x = _layer_norm(x + ca, v(vb + VROW_N2W, d), v(vb + VROW_N2B, d))

        # ---- feed-forward ----
        h = jnp.maximum(
            jnp.dot(x.astype(mxu_dtype), w(wb + WROW_W1T, d, DIM_FF),
                    preferred_element_type=jnp.float32) + v(vb + VROW_B1, DIM_FF),
            0.0)
        f = jnp.dot(h.astype(mxu_dtype), w(wb + WROW_W2T, DIM_FF, d),
                    preferred_element_type=jnp.float32) + v(vb + VROW_B2, d)
        x = _layer_norm(x + f, v(vb + VROW_N3W, d), v(vb + VROW_N3B, d))

    # final decoder norm
    x = _layer_norm(x, v(VROW_FNW, d), v(VROW_FNB, d))
    out_ref[...] = x


# ----------------------- one-time parameter packing --------------------------
def build_decoder_state(params, mxu_dtype=jnp.bfloat16):
    """Pack all decoder weights into two slabs.  Called ONCE at model init
    (pure numpy -> zero device dispatches in the per-step path)."""
    g = lambda a: np.asarray(a, np.float32)
    scale = 1.0 / math.sqrt(HEAD_DIM)

    wslab = np.zeros((W_ROWS, W_COLS), np.float32)
    vslab = np.zeros((V_ROWS, V_COLS), np.float32)

    attn_layout = (
        ('sa_wt', 'sa_b', 'sa_wot', 'sa_bo', WROW_SA_QK, WROW_SA_VO,
         VROW_SA_BQK, VROW_SA_BVO, VROW_SA_BO),
        ('ca_wt', 'ca_b', 'ca_wot', 'ca_bo', WROW_CA_QK, WROW_CA_VO,
         VROW_CA_BQK, VROW_CA_BVO, VROW_CA_BO),
    )
    for l in range(NUM_LAYERS):
        wb = l * WROWS_PER_LAYER
        vb = l * VROWS_PER_LAYER
        for (n_wt, n_b, n_wot, n_bo, r_qk, r_vo, vr_qk, vr_vo, vr_o) in attn_layout:
            wt = g(params[n_wt][l])      # (D, 3D) = [Wq^T | Wk^T | Wv^T]
            b = g(params[n_b][l])        # (3D,)
            wot = g(params[n_wot][l])    # (D, D)  = out_proj^T
            bo = g(params[n_bo][l])      # (D,)
            # fused Q|K weight, with 1/sqrt(head_dim) folded into the Q half
            wqk = wt[:, :2 * D_MODEL].copy()
            bqk = b[:2 * D_MODEL].copy()
            wqk[:, :D_MODEL] *= scale
            bqk[:D_MODEL] *= scale
            # folded per-head  Wv_h @ Wout_h  ->  lane-dense (D, NHEAD*D)
            wv = wt[:, 2 * D_MODEL:]
            bv = b[2 * D_MODEL:]
            wvo = np.concatenate(
                [wv[:, h * HEAD_DIM:(h + 1) * HEAD_DIM]
                 @ wot[h * HEAD_DIM:(h + 1) * HEAD_DIM, :] for h in range(NHEAD)],
                axis=1)                                           # (D, NHEAD*D)
            bvo = np.concatenate(
                [bv[h * HEAD_DIM:(h + 1) * HEAD_DIM]
                 @ wot[h * HEAD_DIM:(h + 1) * HEAD_DIM, :] for h in range(NHEAD)],
                axis=0)                                           # (NHEAD*D,)
            wslab[wb + r_qk: wb + r_qk + D_MODEL, :2 * D_MODEL] = wqk
            wslab[wb + r_vo: wb + r_vo + D_MODEL, :NHEAD * D_MODEL] = wvo
            vslab[vb + vr_qk, :2 * D_MODEL] = bqk
            vslab[vb + vr_vo, :NHEAD * D_MODEL] = bvo
            vslab[vb + vr_o, :D_MODEL] = bo
        wslab[wb + WROW_W1T: wb + WROW_W1T + D_MODEL, :DIM_FF] = g(params['w1t'][l])
        wslab[wb + WROW_W2T: wb + WROW_W2T + DIM_FF, :D_MODEL] = g(params['w2t'][l])
        vslab[vb + VROW_B1, :DIM_FF] = g(params['b1'][l])
        vslab[vb + VROW_B2, :D_MODEL] = g(params['b2'][l])
        for i, nm in enumerate(('n1w', 'n1b', 'n2w', 'n2b', 'n3w', 'n3b')):
            vslab[vb + VROW_N1W + i, :D_MODEL] = g(params[nm][l])
    vslab[VROW_EMB_W, :D_MODEL] = g(params['emb_w'][0])
    vslab[VROW_EMB_B, :D_MODEL] = g(params['emb_b'][0])
    vslab[VROW_FNW, :D_MODEL] = g(params['fnw'][0])
    vslab[VROW_FNB, :D_MODEL] = g(params['fnb'][0])

    return {
        'wslab': jnp.asarray(wslab, mxu_dtype),        # MXU operands (bf16 prod)
        'vslab': jnp.asarray(vslab, jnp.float32),      # biases / LN params (f32)
        'word_emb': jnp.asarray(params['word_emb'], jnp.float32),
        'prompt_emb': jnp.asarray(params['prompt_emb'], jnp.float32),
        'pos_emb': jnp.asarray(params['pos_emb'], jnp.float32),
    }


# ------------------------------ jitted wrapper -------------------------------
def _embed_tokens(word_emb, prompt_emb, seq):
    # DecoderEmbeddings token lookup (data-dependent gather stays in JAX)
    use_word = seq < VOCAB
    we = word_emb[jnp.clip(seq, 0, VOCAB - 1)]
    pe = prompt_emb[jnp.clip(seq - VOCAB, 0, INSTRUCT_VOCAB - 1)]
    return jnp.where(use_word[..., None], we, pe).astype(jnp.float32)   # (bs, L, d)


@jax.jit
def seqtrack_decoder_forward(state, src, pos_embed, seq):
    bs, L, S, d = BS, SEQ_LEN, MEM_LEN, D_MODEL
    tgt = _embed_tokens(state['word_emb'], state['prompt_emb'], seq)     # (bs, L, d)
    qpos = state['pos_emb'][:L]                                          # (L, d)
    mem = jnp.transpose(src, (1, 0, 2)).astype(jnp.float32)              # (bs, S, d)
    memp = mem + jnp.transpose(pos_embed, (1, 0, 2)).astype(jnp.float32)

    # one activation slab: [tgt | tiled query_pos | memory | memory+pos]
    act = jnp.concatenate([
        tgt.reshape(bs * L, d),
        jnp.tile(qpos, (bs, 1)),
        mem.reshape(bs * S, d),
        memp.reshape(bs * S, d),
    ], axis=0)                                                           # (96, 32)

    kernel = functools.partial(decoder_kernel, mxu_dtype=state['wslab'].dtype)
    out = pl.pallas_call(
        kernel,
        out_shape=jax.ShapeDtypeStruct((bs * L, d), jnp.float32),
        in_specs=[pl.BlockSpec((A_ROWS, d), lambda: (0, 0)),
                  pl.BlockSpec((W_ROWS, W_COLS), lambda: (0, 0)),
                  pl.BlockSpec((V_ROWS, V_COLS), lambda: (0, 0))],
        out_specs=pl.BlockSpec((bs * L, d), lambda: (0, 0)),
    )(act, state['wslab'], state['vslab'])

    # (bs*L, d) -> (1, bs, L, d) == hs.transpose(1, 2)
    return out.reshape(bs, L, d)[None]


# -------------------------- pure-JAX f32 reference ---------------------------
def reference_forward(params, src, pos_embed, seq):
    tgt_emb = _embed_tokens(params['word_emb'], params['prompt_emb'], seq)
    L = seq.shape[1]
    qpos = params['pos_emb'][:L]
    mem = jnp.transpose(src, (1, 0, 2)).astype(jnp.float32)
    pos = jnp.transpose(pos_embed, (1, 0, 2)).astype(jnp.float32)
    idx = jnp.arange(L)
    mask = jnp.where(idx[None, :] <= idx[:, None], 0.0, -1e30).astype(jnp.float32)

    def ln(x, w, b):
        mu = x.mean(-1, keepdims=True)
        xc = x - mu
        var = (xc * xc).mean(-1, keepdims=True)
        return xc / jnp.sqrt(var + LN_EPS) * w + b

    def mha(qi, ki, vi, wt, b, wot, bo, m):
        d = D_MODEL
        q = qi @ wt[:, :d] + b[:d]
        k = ki @ wt[:, d:2 * d] + b[d:2 * d]
        v = vi @ wt[:, 2 * d:] + b[2 * d:]
        qh = (q * (1.0 / math.sqrt(HEAD_DIM))).reshape(q.shape[0], NHEAD, HEAD_DIM)
        kh = k.reshape(k.shape[0], NHEAD, HEAD_DIM)
        vh = v.reshape(v.shape[0], NHEAD, HEAD_DIM)
        s = jnp.einsum('lhd,shd->hls', qh, kh)
        if m is not None:
            s = s + m
        p = jax.nn.softmax(s, axis=-1)
        o = jnp.einsum('hls,shd->lhd', p, vh).reshape(q.shape[0], d)
        return o @ wot + bo

    outs = []
    for bidx in range(tgt_emb.shape[0]):
        x = ln(tgt_emb[bidx], params['emb_w'][0], params['emb_b'][0])
        m = mem[bidx]
        mp = m + pos[bidx]
        for l in range(NUM_LAYERS):
            qk = x + qpos
            sa = mha(qk, qk, x, params['sa_wt'][l], params['sa_b'][l],
                     params['sa_wot'][l], params['sa_bo'][l], mask)
            x = ln(x + sa, params['n1w'][l], params['n1b'][l])
            ca = mha(x + qpos, mp, m, params['ca_wt'][l], params['ca_b'][l],
                     params['ca_wot'][l], params['ca_bo'][l], None)
            x = ln(x + ca, params['n2w'][l], params['n2b'][l])
            h = jnp.maximum(x @ params['w1t'][l] + params['b1'][l], 0.0)
            f = h @ params['w2t'][l] + params['b2'][l]
            x = ln(x + f, params['n3w'][l], params['n3b'][l])
        x = ln(x, params['fnw'][0], params['fnb'][0])
        outs.append(x)
    return jnp.stack(outs)[None]


# ------------------------------ parameter init -------------------------------
def init_params(key):
    keys = iter(jax.random.split(key, 64))

    def xavier(shape):
        fan_out, fan_in = shape[-2], shape[-1]
        a = math.sqrt(6.0 / (fan_in + fan_out))
        return jax.random.uniform(next(keys), shape, jnp.float32, -a, a)

    def small(shape, scale=0.1):
        return scale * jax.random.uniform(next(keys), shape, jnp.float32, -1.0, 1.0)

    NL = NUM_LAYERS
    p = {}
    p['word_emb'] = xavier((VOCAB, D_MODEL))
    p['prompt_emb'] = xavier((INSTRUCT_VOCAB, D_MODEL))
    p['pos_emb'] = xavier((MAX_POS, D_MODEL))
    p['emb_w'] = 1.0 + small((1, D_MODEL))
    p['emb_b'] = small((1, D_MODEL))
    # attention / FFN weights are initialized in PyTorch (out, in) shape then
    # pre-transposed so kernel/reference compute plain  x @ W^T  as x @ W_T.
    p['sa_wt'] = jnp.transpose(xavier((NL, 3 * D_MODEL, D_MODEL)), (0, 2, 1))
    p['sa_b'] = small((NL, 3 * D_MODEL))
    p['sa_wot'] = jnp.transpose(xavier((NL, D_MODEL, D_MODEL)), (0, 2, 1))
    p['sa_bo'] = small((NL, D_MODEL))
    p['ca_wt'] = jnp.transpose(xavier((NL, 3 * D_MODEL, D_MODEL)), (0, 2, 1))
    p['ca_b'] = small((NL, 3 * D_MODEL))
    p['ca_wot'] = jnp.transpose(xavier((NL, D_MODEL, D_MODEL)), (0, 2, 1))
    p['ca_bo'] = small((NL, D_MODEL))
    p['w1t'] = jnp.transpose(xavier((NL, DIM_FF, D_MODEL)), (0, 2, 1))
    p['b1'] = small((NL, DIM_FF))
    p['w2t'] = jnp.transpose(xavier((NL, D_MODEL, DIM_FF)), (0, 2, 1))
    p['b2'] = small((NL, D_MODEL))
    for n in ('n1', 'n2', 'n3'):
        p[n + 'w'] = 1.0 + small((NL, D_MODEL))
        p[n + 'b'] = small((NL, D_MODEL))
    p['fnw'] = 1.0 + small((1, D_MODEL))
    p['fnb'] = small((1, D_MODEL))
    return p


# ---------------------------------- main -------------------------------------
if __name__ == "__main__":
    key = jax.random.PRNGKey(0)
    pk, k1, k2, k3 = jax.random.split(key, 4)
    params = init_params(pk)

    src = jax.random.normal(k1, (MEM_LEN, BS, D_MODEL), jnp.float32)
    pos_embed = jax.random.normal(k2, (MEM_LEN, BS, D_MODEL), jnp.float32)
    # token ids: first token is an instruct token (prompt-embedding path),
    # the rest are coordinate tokens (word-embedding path).
    seq = jax.random.randint(k3, (BS, SEQ_LEN), 0, BINS).astype(jnp.int32)
    seq = seq.at[:, 0].set(VOCAB + 1)   # e.g. a dataset-instruct token >= vocab_size

    ref = reference_forward(params, src, pos_embed, seq)

    # --- f32-MXU mode: tight structural validation of packing / QK fusion /
    #     WVO+scale folding / masking / indexing.  Only deviations from the
    #     f32 reference: EUP approx-reciprocal softmax + offline fold rounding.
    state_f32 = build_decoder_state(params, mxu_dtype=jnp.float32)
    out_f32 = jax.block_until_ready(seqtrack_decoder_forward(state_f32, src, pos_embed, seq))
    assert out_f32.shape == (1, BS, SEQ_LEN, D_MODEL), out_f32.shape
    err_f32 = float(jnp.max(jnp.abs(out_f32 - ref)))
    assert err_f32 < 5e-3, f"f32-mode mismatch vs reference: {err_f32}"

    # --- bf16-MXU mode (production path per perf feedback): operands of every
    #     dot are bf16 with f32 accumulation; LayerNorm/softmax stay f32.
    #     Deviation from the f32 reference is pure bf16 input rounding, so the
    #     bound here is a loose numerics envelope (structure is gated above).
    state_bf16 = build_decoder_state(params, mxu_dtype=jnp.bfloat16)
    out_bf16 = jax.block_until_ready(seqtrack_decoder_forward(state_bf16, src, pos_embed, seq))
    assert out_bf16.shape == (1, BS, SEQ_LEN, D_MODEL), out_bf16.shape
    err_bf16 = float(jnp.max(jnp.abs(out_bf16 - ref)))
    assert err_bf16 < 1e-1, f"bf16-mode mismatch vs reference: {err_bf16}"

    # TODO(synk): dropout layers are identity (eval mode); no RNG dropout in-kernel.
    print("KERNEL_OK")
</pallas_src>

<mosaic_0001>
module attributes {stable_mosaic.version = 11 : i64} {
  func.func @decoder_kernel(%arg0: memref<96x32xf32, #tpu.memory_space<vmem>>, %arg1: memref<448x128xf32, #tpu.memory_space<vmem>>, %arg2: memref<40x128xf32, #tpu.memory_space<vmem>>, %arg3: memref<16x32xf32, #tpu.memory_space<vmem>>) attributes {dimension_semantics = [], scalar_prefetch = 0 : i64, scratch_operands = 0 : i64, tpu.core_type = #tpu.core_type<tc>} {
    %c0 = arith.constant 0 : index
    %c0_0 = arith.constant 0 : index
    %0 = vector.load %arg0[%c0, %c0_0] : memref<96x32xf32, #tpu.memory_space<vmem>>, vector<16x32xf32>
    %c16 = arith.constant 16 : index
    %c0_1 = arith.constant 0 : index
    %1 = vector.load %arg0[%c16, %c0_1] : memref<96x32xf32, #tpu.memory_space<vmem>>, vector<16x32xf32>
    %c32 = arith.constant 32 : index
    %c0_2 = arith.constant 0 : index
    %2 = vector.load %arg0[%c32, %c0_2] : memref<96x32xf32, #tpu.memory_space<vmem>>, vector<32x32xf32>
    %c64 = arith.constant 64 : index
    %c0_3 = arith.constant 0 : index
    %3 = vector.load %arg0[%c64, %c0_3] : memref<96x32xf32, #tpu.memory_space<vmem>>, vector<32x32xf32>
    %4 = tpu.iota {dimensions = array<i32: 0>} : vector<8x8xi32>
    %5 = tpu.iota {dimensions = array<i32: 1>} : vector<8x8xi32>
    %6 = arith.cmpi sle, %5, %4 : vector<8x8xi32>
    %cst = arith.constant 0.000000e+00 : f32
    %cst_4 = arith.constant -1.000000e+30 : f32
    %7 = vector.broadcast %cst : f32 to vector<8x8xf32>
    %8 = vector.broadcast %cst_4 : f32 to vector<8x8xf32>
    %9 = arith.select %6, %7, %8 : vector<8x8xi1>, vector<8x8xf32>
    %10 = vector.shape_cast %9 : vector<8x8xf32> to vector<1x8x8xf32>
    %11 = vector.shape_cast %10 : vector<1x8x8xf32> to vector<1x8x8xf32>
    %12 = vector.broadcast %11 : vector<1x8x8xf32> to vector<2x8x8xf32>
    %c32_5 = arith.constant 32 : index
    %c0_6 = arith.constant 0 : index
    %13 = vector.load %arg2[%c32_5, %c0_6] : memref<40x128xf32, #tpu.memory_space<vmem>>, vector<1x32xf32>
    %c33 = arith.constant 33 : index
    %c0_7 = arith.constant 0 : index
    %14 = vector.load %arg2[%c33, %c0_7] : memref<40x128xf32, #tpu.memory_space<vmem>>, vector<1x32xf32>
    %cst_8 = arith.constant dense<0.000000e+00> : vector<16xf32>
    %15 = vector.multi_reduction <add>, %0, %cst_8 [1] : vector<16x32xf32> to vector<16xf32>
    %16 = vector.shape_cast %15 : vector<16xf32> to vector<16x1xf32>
    %cst_9 = arith.constant 3.200000e+01 : f32
    %17 = vector.broadcast %cst_9 : f32 to vector<16x1xf32>
    %18 = arith.divf %16, %17 : vector<16x1xf32>
    %19 = vector.broadcast %18 : vector<16x1xf32> to vector<16x32xf32>
    %20 = arith.subf %0, %19 : vector<16x32xf32>
    %21 = arith.mulf %20, %20 : vector<16x32xf32>
    %cst_10 = arith.constant dense<0.000000e+00> : vector<16xf32>
    %22 = vector.multi_reduction <add>, %21, %cst_10 [1] : vector<16x32xf32> to vector<16xf32>
    %23 = vector.shape_cast %22 : vector<16xf32> to vector<16x1xf32>
    %cst_11 = arith.constant 3.200000e+01 : f32
    %24 = vector.broadcast %cst_11 : f32 to vector<16x1xf32>
    %25 = arith.divf %23, %24 : vector<16x1xf32>
    %cst_12 = arith.constant 9.99999974E-6 : f32
    %26 = vector.broadcast %cst_12 : f32 to vector<16x1xf32>
    %27 = arith.addf %25, %26 : vector<16x1xf32>
    %28 = math.rsqrt %27 : vector<16x1xf32>
    %29 = vector.broadcast %28 : vector<16x1xf32> to vector<16x32xf32>
    %30 = arith.mulf %20, %29 : vector<16x32xf32>
    %31 = vector.broadcast %13 : vector<1x32xf32> to vector<16x32xf32>
    %32 = arith.mulf %30, %31 : vector<16x32xf32>
    %33 = vector.broadcast %14 : vector<1x32xf32> to vector<16x32xf32>
    %34 = arith.addf %32, %33 : vector<16x32xf32>
    %35 = arith.addf %34, %1 : vector<16x32xf32>
    %c0_13 = arith.constant 0 : index
    %c0_14 = arith.constant 0 : index
    %36 = vector.load %arg1[%c0_13, %c0_14] : memref<448x128xf32, #tpu.memory_space<vmem>>, vector<32x64xf32>
    %cst_15 = arith.constant dense<0.000000e+00> : vector<16x64xf32>
    %37 = tpu.matmul %35, %36, %cst_15 {dimension_numbers = #tpu.dot_dimension_numbers<[1], [0], [0], [1], [0, 0, 1, 1], [], []>} : vector<16x32xf32>, vector<32x64xf32>, vector<16x64xf32> -> vector<16x64xf32>
    %c0_16 = arith.constant 0 : index
    %c0_17 = arith.constant 0 : index
    %38 = vector.load %arg2[%c0_16, %c0_17] : memref<40x128xf32, #tpu.memory_space<vmem>>, vector<1x64xf32>
    %39 = vector.broadcast %38 : vector<1x64xf32> to vector<16x64xf32>
    %40 = arith.addf %37, %39 : vector<16x64xf32>
    %c32_18 = arith.constant 32 : index
    %c0_19 = arith.constant 0 : index
    %41 = vector.load %arg1[%c32_18, %c0_19] : memref<448x128xf32, #tpu.memory_space<vmem>>, vector<32x128xf32>
    %cst_20 = arith.constant dense<0.000000e+00> : vector<16x128xf32>
    %42 = tpu.matmul %34, %41, %cst_20 {dimension_numbers = #tpu.dot_dimension_numbers<[1], [0], [0], [1], [0, 0, 1, 1], [], []>} : vector<16x32xf32>, vector<32x128xf32>, vector<16x128xf32> -> vector<16x128xf32>
    %c1 = arith.constant 1 : index
    %c0_21 = arith.constant 0 : index
    %43 = vector.load %arg2[%c1, %c0_21] : memref<40x128xf32, #tpu.memory_space<vmem>>, vector<1x128xf32>
    %44 = vector.broadcast %43 : vector<1x128xf32> to vector<16x128xf32>
    %45 = arith.addf %42, %44 : vector<16x128xf32>
    %46 = vector.extract_strided_slice %40 {offsets = [0, 0], sizes = [16, 32], strides = [1, 1]} : vector<16x64xf32> to vector<16x32xf32>
    %47 = vector.extract_strided_slice %40 {offsets = [0, 32], sizes = [16, 32], strides = [1, 1]} : vector<16x64xf32> to vector<16x32xf32>
    %c2 = arith.constant 2 : index
    %c0_22 = arith.constant 0 : index
    %48 = vector.load %arg2[%c2, %c0_22] : memref<40x128xf32, #tpu.memory_space<vmem>>, vector<1x32xf32>
    %49 = vector.shape_cast %46 : vector<16x32xf32> to vector<2x8x32xf32>
    %50 = vector.shape_cast %47 : vector<16x32xf32> to vector<2x8x32xf32>
    %51 = vector.shape_cast %45 : vector<16x128xf32> to vector<2x8x128xf32>
    %52 = vector.extract_strided_slice %49 {offsets = [0, 0, 0], sizes = [2, 8, 8], strides = [1, 1, 1]} : vector<2x8x32xf32> to vector<2x8x8xf32>
    %53 = vector.extract_strided_slice %50 {offsets = [0, 0, 0], sizes = [2, 8, 8], strides = [1, 1, 1]} : vector<2x8x32xf32> to vector<2x8x8xf32>
    %cst_23 = arith.constant dense<0.000000e+00> : vector<2x8x8xf32>
    %54 = tpu.matmul %52, %53, %cst_23 {dimension_numbers = #tpu.dot_dimension_numbers<[2], [2], [1], [1], [0, 0, 0, 1, 1, 1], [0], [0]>} : vector<2x8x8xf32>, vector<2x8x8xf32>, vector<2x8x8xf32> -> vector<2x8x8xf32>
    %55 = arith.addf %54, %12 : vector<2x8x8xf32>
    %cst_24 = arith.constant dense<0xFF800000> : vector<2x8xf32>
    %56 = vector.multi_reduction <maximumf>, %55, %cst_24 [2] : vector<2x8x8xf32> to vector<2x8xf32>
    %57 = vector.shape_cast %56 : vector<2x8xf32> to vector<2x8x1xf32>
    %58 = vector.broadcast %57 : vector<2x8x1xf32> to vector<2x8x8xf32>
    %59 = arith.subf %55, %58 : vector<2x8x8xf32>
    %60 = math.exp %59 : vector<2x8x8xf32>
    %cst_25 = arith.constant dense<0.000000e+00> : vector<2x8xf32>
    %61 = vector.multi_reduction <add>, %60, %cst_25 [2] : vector<2x8x8xf32> to vector<2x8xf32>
    %62 = vector.shape_cast %61 : vector<2x8xf32> to vector<2x8x1xf32>
    %63 = tpu.reciprocal %62 {approx = true} : vector<2x8x1xf32> -> vector<2x8x1xf32>
    %64 = vector.broadcast %63 : vector<2x8x1xf32> to vector<2x8x8xf32>
    %65 = arith.mulf %60, %64 : vector<2x8x8xf32>
    %66 = vector.extract_strided_slice %51 {offsets = [0, 0, 0], sizes = [2, 8, 32], strides = [1, 1, 1]} : vector<2x8x128xf32> to vector<2x8x32xf32>
    %cst_26 = arith.constant dense<0.000000e+00> : vector<2x8x32xf32>
    %67 = tpu.matmul %65, %66, %cst_26 {dimension_numbers = #tpu.dot_dimension_numbers<[2], [1], [1], [2], [0, 0, 0, 1, 1, 2], [0], [0]>} : vector<2x8x8xf32>, vector<2x8x32xf32>, vector<2x8x32xf32> -> vector<2x8x32xf32>
    %68 = vector.extract_strided_slice %49 {offsets = [0, 0, 8], sizes = [2, 8, 8], strides = [1, 1, 1]} : vector<2x8x32xf32> to vector<2x8x8xf32>
    %69 = vector.extract_strided_slice %50 {offsets = [0, 0, 8], sizes = [2, 8, 8], strides = [1, 1, 1]} : vector<2x8x32xf32> to vector<2x8x8xf32>
    %cst_27 = arith.constant dense<0.000000e+00> : vector<2x8x8xf32>
    %70 = tpu.matmul %68, %69, %cst_27 {dimension_numbers = #tpu.dot_dimension_numbers<[2], [2], [1], [1], [0, 0, 0, 1, 1, 1], [0], [0]>} : vector<2x8x8xf32>, vector<2x8x8xf32>, vector<2x8x8xf32> -> vector<2x8x8xf32>
    %71 = arith.addf %70, %12 : vector<2x8x8xf32>
    %cst_28 = arith.constant dense<0xFF800000> : vector<2x8xf32>
    %72 = vector.multi_reduction <maximumf>, %71, %cst_28 [2] : vector<2x8x8xf32> to vector<2x8xf32>
    %73 = vector.shape_cast %72 : vector<2x8xf32> to vector<2x8x1xf32>
    %74 = vector.broadcast %73 : vector<2x8x1xf32> to vector<2x8x8xf32>
    %75 = arith.subf %71, %74 : vector<2x8x8xf32>
    %76 = math.exp %75 : vector<2x8x8xf32>
    %cst_29 = arith.constant dense<0.000000e+00> : vector<2x8xf32>
    %77 = vector.multi_reduction <add>, %76, %cst_29 [2] : vector<2x8x8xf32> to vector<2x8xf32>
    %78 = vector.shape_cast %77 : vector<2x8xf32> to vector<2x8x1xf32>
    %79 = tpu.reciprocal %78 {approx = true} : vector<2x8x1xf32> -> vector<2x8x1xf32>
    %80 = vector.broadcast %79 : vector<2x8x1xf32> to vector<2x8x8xf32>
    %81 = arith.mulf %76, %80 : vector<2x8x8xf32>
    %82 = vector.extract_strided_slice %51 {offsets = [0, 0, 32], sizes = [2, 8, 32], strides = [1, 1, 1]} : vector<2x8x128xf32> to vector<2x8x32xf32>
    %cst_30 = arith.constant dense<0.000000e+00> : vector<2x8x32xf32>
    %83 = tpu.matmul %81, %82, %cst_30 {dimension_numbers = #tpu.dot_dimension_numbers<[2], [1], [1], [2], [0, 0, 0, 1, 1, 2], [0], [0]>} : vector<2x8x8xf32>, vector<2x8x32xf32>, vector<2x8x32xf32> -> vector<2x8x32xf32>
    %84 = arith.addf %67, %83 : vector<2x8x32xf32>
    %85 = vector.extract_strided_slice %49 {offsets = [0, 0, 16], sizes = [2, 8, 8], strides = [1, 1, 1]} : vector<2x8x32xf32> to vector<2x8x8xf32>
    %86 = vector.extract_strided_slice %50 {offsets = [0, 0, 16], sizes = [2, 8, 8], strides = [1, 1, 1]} : vector<2x8x32xf32> to vector<2x8x8xf32>
    %cst_31 = arith.constant dense<0.000000e+00> : vector<2x8x8xf32>
    %87 = tpu.matmul %85, %86, %cst_31 {dimension_numbers = #tpu.dot_dimension_numbers<[2], [2], [1], [1], [0, 0, 0, 1, 1, 1], [0], [0]>} : vector<2x8x8xf32>, vector<2x8x8xf32>, vector<2x8x8xf32> -> vector<2x8x8xf32>
    %88 = arith.addf %87, %12 : vector<2x8x8xf32>
    %cst_32 = arith.constant dense<0xFF800000> : vector<2x8xf32>
    %89 = vector.multi_reduction <maximumf>, %88, %cst_32 [2] : vector<2x8x8xf32> to vector<2x8xf32>
    %90 = vector.shape_cast %89 : vector<2x8xf32> to vector<2x8x1xf32>
    %91 = vector.broadcast %90 : vector<2x8x1xf32> to vector<2x8x8xf32>
    %92 = arith.subf %88, %91 : vector<2x8x8xf32>
    %93 = math.exp %92 : vector<2x8x8xf32>
    %cst_33 = arith.constant dense<0.000000e+00> : vector<2x8xf32>
    %94 = vector.multi_reduction <add>, %93, %cst_33 [2] : vector<2x8x8xf32> to vector<2x8xf32>
    %95 = vector.shape_cast %94 : vector<2x8xf32> to vector<2x8x1xf32>
    %96 = tpu.reciprocal %95 {approx = true} : vector<2x8x1xf32> -> vector<2x8x1xf32>
    %97 = vector.broadcast %96 : vector<2x8x1xf32> to vector<2x8x8xf32>
    %98 = arith.mulf %93, %97 : vector<2x8x8xf32>
    %99 = vector.extract_strided_slice %51 {offsets = [0, 0, 64], sizes = [2, 8, 32], strides = [1, 1, 1]} : vector<2x8x128xf32> to vector<2x8x32xf32>
    %cst_34 = arith.constant dense<0.000000e+00> : vector<2x8x32xf32>
    %100 = tpu.matmul %98, %99, %cst_34 {dimension_numbers = #tpu.dot_dimension_numbers<[2], [1], [1], [2], [0, 0, 0, 1, 1, 2], [0], [0]>} : vector<2x8x8xf32>, vector<2x8x32xf32>, vector<2x8x32xf32> -> vector<2x8x32xf32>
    %101 = arith.addf %84, %100 : vector<2x8x32xf32>
    %102 = vector.extract_strided_slice %49 {offsets = [0, 0, 24], sizes = [2, 8, 8], strides = [1, 1, 1]} : vector<2x8x32xf32> to vector<2x8x8xf32>
    %103 = vector.extract_strided_slice %50 {offsets = [0, 0, 24], sizes = [2, 8, 8], strides = [1, 1, 1]} : vector<2x8x32xf32> to vector<2x8x8xf32>
    %cst_35 = arith.constant dense<0.000000e+00> : vector<2x8x8xf32>
    %104 = tpu.matmul %102, %103, %cst_35 {dimension_numbers = #tpu.dot_dimension_numbers<[2], [2], [1], [1], [0, 0, 0, 1, 1, 1], [0], [0]>} : vector<2x8x8xf32>, vector<2x8x8xf32>, vector<2x8x8xf32> -> vector<2x8x8xf32>
    %105 = arith.addf %104, %12 : vector<2x8x8xf32>
    %cst_36 = arith.constant dense<0xFF800000> : vector<2x8xf32>
    %106 = vector.multi_reduction <maximumf>, %105, %cst_36 [2] : vector<2x8x8xf32> to vector<2x8xf32>
    %107 = vector.shape_cast %106 : vector<2x8xf32> to vector<2x8x1xf32>
    %108 = vector.broadcast %107 : vector<2x8x1xf32> to vector<2x8x8xf32>
    %109 = arith.subf %105, %108 : vector<2x8x8xf32>
    %110 = math.exp %109 : vector<2x8x8xf32>
    %cst_37 = arith.constant dense<0.000000e+00> : vector<2x8xf32>
    %111 = vector.multi_reduction <add>, %110, %cst_37 [2] : vector<2x8x8xf32> to vector<2x8xf32>
    %112 = vector.shape_cast %111 : vector<2x8xf32> to vector<2x8x1xf32>
    %113 = tpu.reciprocal %112 {approx = true} : vector<2x8x1xf32> -> vector<2x8x1xf32>
    %114 = vector.broadcast %113 : vector<2x8x1xf32> to vector<2x8x8xf32>
    %115 = arith.mulf %110, %114 : vector<2x8x8xf32>
    %116 = vector.extract_strided_slice %51 {offsets = [0, 0, 96], sizes = [2, 8, 32], strides = [1, 1, 1]} : vector<2x8x128xf32> to vector<2x8x32xf32>
    %cst_38 = arith.constant dense<0.000000e+00> : vector<2x8x32xf32>
    %117 = tpu.matmul %115, %116, %cst_38 {dimension_numbers = #tpu.dot_dimension_numbers<[2], [1], [1], [2], [0, 0, 0, 1, 1, 2], [0], [0]>} : vector<2x8x8xf32>, vector<2x8x32xf32>, vector<2x8x32xf32> -> vector<2x8x32xf32>
    %118 = arith.addf %101, %117 : vector<2x8x32xf32>
    %119 = vector.shape_cast %118 : vector<2x8x32xf32> to vector<16x32xf32>
    %120 = vector.broadcast %48 : vector<1x32xf32> to vector<16x32xf32>
    %121 = arith.addf %119, %120 : vector<16x32xf32>
    %122 = arith.addf %34, %121 : vector<16x32xf32>
    %c8 = arith.constant 8 : index
    %c0_39 = arith.constant 0 : index
    %123 = vector.load %arg2[%c8, %c0_39] : memref<40x128xf32, #tpu.memory_space<vmem>>, vector<1x32xf32>
    %c9 = arith.constant 9 : index
    %c0_40 = arith.constant 0 : index
    %124 = vector.load %arg2[%c9, %c0_40] : memref<40x128xf32, #tpu.memory_space<vmem>>, vector<1x32xf32>
    %cst_41 = arith.constant dense<0.000000e+00> : vector<16xf32>
    %125 = vector.multi_reduction <add>, %122, %cst_41 [1] : vector<16x32xf32> to vector<16xf32>
    %126 = vector.shape_cast %125 : vector<16xf32> to vector<16x1xf32>
    %cst_42 = arith.constant 3.200000e+01 : f32
    %127 = vector.broadcast %cst_42 : f32 to vector<16x1xf32>
    %128 = arith.divf %126, %127 : vector<16x1xf32>
    %129 = vector.broadcast %128 : vector<16x1xf32> to vector<16x32xf32>
    %130 = arith.subf %122, %129 : vector<16x32xf32>
    %131 = arith.mulf %130, %130 : vector<16x32xf32>
    %cst_43 = arith.constant dense<0.000000e+00> : vector<16xf32>
    %132 = vector.multi_reduction <add>, %131, %cst_43 [1] : vector<16x32xf32> to vector<16xf32>
    %133 = vector.shape_cast %132 : vector<16xf32> to vector<16x1xf32>
    %cst_44 = arith.constant 3.200000e+01 : f32
    %134 = vector.broadcast %cst_44 : f32 to vector<16x1xf32>
    %135 = arith.divf %133, %134 : vector<16x1xf32>
    %cst_45 = arith.constant 9.99999974E-6 : f32
    %136 = vector.broadcast %cst_45 : f32 to vector<16x1xf32>
    %137 = arith.addf %135, %136 : vector<16x1xf32>
    %138 = math.rsqrt %137 : vector<16x1xf32>
    %139 = vector.broadcast %138 : vector<16x1xf32> to vector<16x32xf32>
    %140 = arith.mulf %130, %139 : vector<16x32xf32>
    %141 = vector.broadcast %123 : vector<1x32xf32> to vector<16x32xf32>
    %142 = arith.mulf %140, %141 : vector<16x32xf32>
    %143 = vector.broadcast %124 : vector<1x32xf32> to vector<16x32xf32>
    %144 = arith.addf %142, %143 : vector<16x32xf32>
    %145 = arith.addf %144, %1 : vector<16x32xf32>
    %146 = tpu.concatenate %145, %3 in 0 : vector<16x32xf32>, vector<32x32xf32> -> vector<48x32xf32>
    %c64_46 = arith.constant 64 : index
    %c0_47 = arith.constant 0 : index
    %147 = vector.load %arg1[%c64_46, %c0_47] : memref<448x128xf32, #tpu.memory_space<vmem>>, vector<32x64xf32>
    %cst_48 = arith.constant dense<0.000000e+00> : vector<48x64xf32>
    %148 = tpu.matmul %146, %147, %cst_48 {dimension_numbers = #tpu.dot_dimension_numbers<[1], [0], [0], [1], [0, 0, 1, 1], [], []>} : vector<48x32xf32>, vector<32x64xf32>, vector<48x64xf32> -> vector<48x64xf32>
    %c3 = arith.constant 3 : index
    %c0_49 = arith.constant 0 : index
    %149 = vector.load %arg2[%c3, %c0_49] : memref<40x128xf32, #tpu.memory_space<vmem>>, vector<1x64xf32>
    %150 = vector.broadcast %149 : vector<1x64xf32> to vector<48x64xf32>
    %151 = arith.addf %148, %150 : vector<48x64xf32>
    %c96 = arith.constant 96 : index
    %c0_50 = arith.constant 0 : index
    %152 = vector.load %arg1[%c96, %c0_50] : memref<448x128xf32, #tpu.memory_space<vmem>>, vector<32x128xf32>
    %cst_51 = arith.constant dense<0.000000e+00> : vector<32x128xf32>
    %153 = tpu.matmul %2, %152, %cst_51 {dimension_numbers = #tpu.dot_dimension_numbers<[1], [0], [0], [1], [0, 0, 1, 1], [], []>} : vector<32x32xf32>, vector<32x128xf32>, vector<32x128xf32> -> vector<32x128xf32>
    %c4 = arith.constant 4 : index
    %c0_52 = arith.constant 0 : index
    %154 = vector.load %arg2[%c4, %c0_52] : memref<40x128xf32, #tpu.memory_space<vmem>>, vector<1x128xf32>
    %155 = vector.broadcast %154 : vector<1x128xf32> to vector<32x128xf32>
    %156 = arith.addf %153, %155 : vector<32x128xf32>
    %157 = vector.extract_strided_slice %151 {offsets = [0, 0], sizes = [16, 32], strides = [1, 1]} : vector<48x64xf32> to vector<16x32xf32>
    %158 = vector.extract_strided_slice %151 {offsets = [16, 32], sizes = [32, 32], strides = [1, 1]} : vector<48x64xf32> to vector<32x32xf32>
    %c5 = arith.constant 5 : index
    %c0_53 = arith.constant 0 : index
    %159 = vector.load %arg2[%c5, %c0_53] : memref<40x128xf32, #tpu.memory_space<vmem>>, vector<1x32xf32>
    %160 = vector.shape_cast %157 : vector<16x32xf32> to vector<2x8x32xf32>
    %161 = vector.shape_cast %158 : vector<32x32xf32> to vector<2x16x32xf32>
    %162 = vector.shape_cast %156 : vector<32x128xf32> to vector<2x16x128xf32>
    %163 = vector.extract_strided_slice %160 {offsets = [0, 0, 0], sizes = [2, 8, 8], strides = [1, 1, 1]} : vector<2x8x32xf32> to vector<2x8x8xf32>
    %164 = vector.extract_strided_slice %161 {offsets = [0, 0, 0], sizes = [2, 16, 8], strides = [1, 1, 1]} : vector<2x16x32xf32> to vector<2x16x8xf32>
    %cst_54 = arith.constant dense<0.000000e+00> : vector<2x8x16xf32>
    %165 = tpu.matmul %163, %164, %cst_54 {dimension_numbers = #tpu.dot_dimension_numbers<[2], [2], [1], [1], [0, 0, 0, 1, 1, 1], [0], [0]>} : vector<2x8x8xf32>, vector<2x16x8xf32>, vector<2x8x16xf32> -> vector<2x8x16xf32>
    %cst_55 = arith.constant dense<0xFF800000> : vector<2x8xf32>
    %166 = vector.multi_reduction <maximumf>, %165, %cst_55 [2] : vector<2x8x16xf32> to vector<2x8xf32>
    %167 = vector.shape_cast %166 : vector<2x8xf32> to vector<2x8x1xf32>
    %168 = vector.broadcast %167 : vector<2x8x1xf32> to vector<2x8x16xf32>
    %169 = arith.subf %165, %168 : vector<2x8x16xf32>
    %170 = math.exp %169 : vector<2x8x16xf32>
    %cst_56 = arith.constant dense<0.000000e+00> : vector<2x8xf32>
    %171 = vector.multi_reduction <add>, %170, %cst_56 [2] : vector<2x8x16xf32> to vector<2x8xf32>
    %172 = vector.shape_cast %171 : vector<2x8xf32> to vector<2x8x1xf32>
    %173 = tpu.reciprocal %172 {approx = true} : vector<2x8x1xf32> -> vector<2x8x1xf32>
    %174 = vector.broadcast %173 : vector<2x8x1xf32> to vector<2x8x16xf32>
    %175 = arith.mulf %170, %174 : vector<2x8x16xf32>
    %176 = vector.extract_strided_slice %162 {offsets = [0, 0, 0], sizes = [2, 16, 32], strides = [1, 1, 1]} : vector<2x16x128xf32> to vector<2x16x32xf32>
    %cst_57 = arith.constant dense<0.000000e+00> : vector<2x8x32xf32>
    %177 = tpu.matmul %175, %176, %cst_57 {dimension_numbers = #tpu.dot_dimension_numbers<[2], [1], [1], [2], [0, 0, 0, 1, 1, 2], [0], [0]>} : vector<2x8x16xf32>, vector<2x16x32xf32>, vector<2x8x32xf32> -> vector<2x8x32xf32>
    %178 = vector.extract_strided_slice %160 {offsets = [0, 0, 8], sizes = [2, 8, 8], strides = [1, 1, 1]} : vector<2x8x32xf32> to vector<2x8x8xf32>
    %179 = vector.extract_strided_slice %161 {offsets = [0, 0, 8], sizes = [2, 16, 8], strides = [1, 1, 1]} : vector<2x16x32xf32> to vector<2x16x8xf32>
    %cst_58 = arith.constant dense<0.000000e+00> : vector<2x8x16xf32>
    %180 = tpu.matmul %178, %179, %cst_58 {dimension_numbers = #tpu.dot_dimension_numbers<[2], [2], [1], [1], [0, 0, 0, 1, 1, 1], [0], [0]>} : vector<2x8x8xf32>, vector<2x16x8xf32>, vector<2x8x16xf32> -> vector<2x8x16xf32>
    %cst_59 = arith.constant dense<0xFF800000> : vector<2x8xf32>
    %181 = vector.multi_reduction <maximumf>, %180, %cst_59 [2] : vector<2x8x16xf32> to vector<2x8xf32>
    %182 = vector.shape_cast %181 : vector<2x8xf32> to vector<2x8x1xf32>
    %183 = vector.broadcast %182 : vector<2x8x1xf32> to vector<2x8x16xf32>
    %184 = arith.subf %180, %183 : vector<2x8x16xf32>
    %185 = math.exp %184 : vector<2x8x16xf32>
    %cst_60 = arith.constant dense<0.000000e+00> : vector<2x8xf32>
    %186 = vector.multi_reduction <add>, %185, %cst_60 [2] : vector<2x8x16xf32> to vector<2x8xf32>
    %187 = vector.shape_cast %186 : vector<2x8xf32> to vector<2x8x1xf32>
    %188 = tpu.reciprocal %187 {approx = true} : vector<2x8x1xf32> -> vector<2x8x1xf32>
    %189 = vector.broadcast %188 : vector<2x8x1xf32> to vector<2x8x16xf32>
    %190 = arith.mulf %185, %189 : vector<2x8x16xf32>
    %191 = vector.extract_strided_slice %162 {offsets = [0, 0, 32], sizes = [2, 16, 32], strides = [1, 1, 1]} : vector<2x16x128xf32> to vector<2x16x32xf32>
    %cst_61 = arith.constant dense<0.000000e+00> : vector<2x8x32xf32>
    %192 = tpu.matmul %190, %191, %cst_61 {dimension_numbers = #tpu.dot_dimension_numbers<[2], [1], [1], [2], [0, 0, 0, 1, 1, 2], [0], [0]>} : vector<2x8x16xf32>, vector<2x16x32xf32>, vector<2x8x32xf32> -> vector<2x8x32xf32>
    %193 = arith.addf %177, %192 : vector<2x8x32xf32>
    %194 = vector.extract_strided_slice %160 {offsets = [0, 0, 16], sizes = [2, 8, 8], strides = [1, 1, 1]} : vector<2x8x32xf32> to vector<2x8x8xf32>
    %195 = vector.extract_strided_slice %161 {offsets = [0, 0, 16], sizes = [2, 16, 8], strides = [1, 1, 1]} : vector<2x16x32xf32> to vector<2x16x8xf32>
    %cst_62 = arith.constant dense<0.000000e+00> : vector<2x8x16xf32>
    %196 = tpu.matmul %194, %195, %cst_62 {dimension_numbers = #tpu.dot_dimension_numbers<[2], [2], [1], [1], [0, 0, 0, 1, 1, 1], [0], [0]>} : vector<2x8x8xf32>, vector<2x16x8xf32>, vector<2x8x16xf32> -> vector<2x8x16xf32>
    %cst_63 = arith.constant dense<0xFF800000> : vector<2x8xf32>
    %197 = vector.multi_reduction <maximumf>, %196, %cst_63 [2] : vector<2x8x16xf32> to vector<2x8xf32>
    %198 = vector.shape_cast %197 : vector<2x8xf32> to vector<2x8x1xf32>
    %199 = vector.broadcast %198 : vector<2x8x1xf32> to vector<2x8x16xf32>
    %200 = arith.subf %196, %199 : vector<2x8x16xf32>
    %201 = math.exp %200 : vector<2x8x16xf32>
    %cst_64 = arith.constant dense<0.000000e+00> : vector<2x8xf32>
    %202 = vector.multi_reduction <add>, %201, %cst_64 [2] : vector<2x8x16xf32> to vector<2x8xf32>
    %203 = vector.shape_cast %202 : vector<2x8xf32> to vector<2x8x1xf32>
    %204 = tpu.reciprocal %203 {approx = true} : vector<2x8x1xf32> -> vector<2x8x1xf32>
    %205 = vector.broadcast %204 : vector<2x8x1xf32> to vector<2x8x16xf32>
    %206 = arith.mulf %201, %205 : vector<2x8x16xf32>
    %207 = vector.extract_strided_slice %162 {offsets = [0, 0, 64], sizes = [2, 16, 32], strides = [1, 1, 1]} : vector<2x16x128xf32> to vector<2x16x32xf32>
    %cst_65 = arith.constant dense<0.000000e+00> : vector<2x8x32xf32>
    %208 = tpu.matmul %206, %207, %cst_65 {dimension_numbers = #tpu.dot_dimension_numbers<[2], [1], [1], [2], [0, 0, 0, 1, 1, 2], [0], [0]>} : vector<2x8x16xf32>, vector<2x16x32xf32>, vector<2x8x32xf32> -> vector<2x8x32xf32>
    %209 = arith.addf %193, %208 : vector<2x8x32xf32>
    %210 = vector.extract_strided_slice %160 {offsets = [0, 0, 24], sizes = [2, 8, 8], strides = [1, 1, 1]} : vector<2x8x32xf32> to vector<2x8x8xf32>
    %211 = vector.extract_strided_slice %161 {offsets = [0, 0, 24], sizes = [2, 16, 8], strides = [1, 1, 1]} : vector<2x16x32xf32> to vector<2x16x8xf32>
    %cst_66 = arith.constant dense<0.000000e+00> : vector<2x8x16xf32>
    %212 = tpu.matmul %210, %211, %cst_66 {dimension_numbers = #tpu.dot_dimension_numbers<[2], [2], [1], [1], [0, 0, 0, 1, 1, 1], [0], [0]>} : vector<2x8x8xf32>, vector<2x16x8xf32>, vector<2x8x16xf32> -> vector<2x8x16xf32>
    %cst_67 = arith.constant dense<0xFF800000> : vector<2x8xf32>
    %213 = vector.multi_reduction <maximumf>, %212, %cst_67 [2] : vector<2x8x16xf32> to vector<2x8xf32>
    %214 = vector.shape_cast %213 : vector<2x8xf32> to vector<2x8x1xf32>
    %215 = vector.broadcast %214 : vector<2x8x1xf32> to vector<2x8x16xf32>
    %216 = arith.subf %212, %215 : vector<2x8x16xf32>
    %217 = math.exp %216 : vector<2x8x16xf32>
    %cst_68 = arith.constant dense<0.000000e+00> : vector<2x8xf32>
    %218 = vector.multi_reduction <add>, %217, %cst_68 [2] : vector<2x8x16xf32> to vector<2x8xf32>
    %219 = vector.shape_cast %218 : vector<2x8xf32> to vector<2x8x1xf32>
    %220 = tpu.reciprocal %219 {approx = true} : vector<2x8x1xf32> -> vector<2x8x1xf32>
    %221 = vector.broadcast %220 : vector<2x8x1xf32> to vector<2x8x16xf32>
    %222 = arith.mulf %217, %221 : vector<2x8x16xf32>
    %223 = vector.extract_strided_slice %162 {offsets = [0, 0, 96], sizes = [2, 16, 32], strides = [1, 1, 1]} : vector<2x16x128xf32> to vector<2x16x32xf32>
    %cst_69 = arith.constant dense<0.000000e+00> : vector<2x8x32xf32>
    %224 = tpu.matmul %222, %223, %cst_69 {dimension_numbers = #tpu.dot_dimension_numbers<[2], [1], [1], [2], [0, 0, 0, 1, 1, 2], [0], [0]>} : vector<2x8x16xf32>, vector<2x16x32xf32>, vector<2x8x32xf32> -> vector<2x8x32xf32>
    %225 = arith.addf %209, %224 : vector<2x8x32xf32>
    %226 = vector.shape_cast %225 : vector<2x8x32xf32> to vector<16x32xf32>
    %227 = vector.broadcast %159 : vector<1x32xf32> to vector<16x32xf32>
    %228 = arith.addf %226, %227 : vector<16x32xf32>
    %229 = arith.addf %144, %228 : vector<16x32xf32>
    %c10 = arith.constant 10 : index
    %c0_70 = arith.constant 0 : index
    %230 = vector.load %arg2[%c10, %c0_70] : memref<40x128xf32, #tpu.memory_space<vmem>>, vector<1x32xf32>
    %c11 = arith.constant 11 : index
    %c0_71 = arith.constant 0 : index
    %231 = vector.load %arg2[%c11, %c0_71] : memref<40x128xf32, #tpu.memory_space<vmem>>, vector<1x32xf32>
    %cst_72 = arith.constant dense<0.000000e+00> : vector<16xf32>
    %232 = vector.multi_reduction <add>, %229, %cst_72 [1] : vector<16x32xf32> to vector<16xf32>
    %233 = vector.shape_cast %232 : vector<16xf32> to vector<16x1xf32>
    %cst_73 = arith.constant 3.200000e+01 : f32
    %234 = vector.broadcast %cst_73 : f32 to vector<16x1xf32>
    %235 = arith.divf %233, %234 : vector<16x1xf32>
    %236 = vector.broadcast %235 : vector<16x1xf32> to vector<16x32xf32>
    %237 = arith.subf %229, %236 : vector<16x32xf32>
    %238 = arith.mulf %237, %237 : vector<16x32xf32>
    %cst_74 = arith.constant dense<0.000000e+00> : vector<16xf32>
    %239 = vector.multi_reduction <add>, %238, %cst_74 [1] : vector<16x32xf32> to vector<16xf32>
    %240 = vector.shape_cast %239 : vector<16xf32> to vector<16x1xf32>
    %cst_75 = arith.constant 3.200000e+01 : f32
    %241 = vector.broadcast %cst_75 : f32 to vector<16x1xf32>
    %242 = arith.divf %240, %241 : vector<16x1xf32>
    %cst_76 = arith.constant 9.99999974E-6 : f32
    %243 = vector.broadcast %cst_76 : f32 to vector<16x1xf32>
    %244 = arith.addf %242, %243 : vector<16x1xf32>
    %245 = math.rsqrt %244 : vector<16x1xf32>
    %246 = vector.broadcast %245 : vector<16x1xf32> to vector<16x32xf32>
    %247 = arith.mulf %237, %246 : vector<16x32xf32>
    %248 = vector.broadcast %230 : vector<1x32xf32> to vector<16x32xf32>
    %249 = arith.mulf %247, %248 : vector<16x32xf32>
    %250 = vector.broadcast %231 : vector<1x32xf32> to vector<16x32xf32>
    %251 = arith.addf %249, %250 : vector<16x32xf32>
    %c128 = arith.constant 128 : index
    %c0_77 = arith.constant 0 : index
    %252 = vector.load %arg1[%c128, %c0_77] : memref<448x128xf32, #tpu.memory_space<vmem>>, vector<32x64xf32>
    %cst_78 = arith.constant dense<0.000000e+00> : vector<16x64xf32>
    %253 = tpu.matmul %251, %252, %cst_78 {dimension_numbers = #tpu.dot_dimension_numbers<[1], [0], [0], [1], [0, 0, 1, 1], [], []>} : vector<16x32xf32>, vector<32x64xf32>, vector<16x64xf32> -> vector<16x64xf32>
    %c6 = arith.constant 6 : index
    %c0_79 = arith.constant 0 : index
    %254 = vector.load %arg2[%c6, %c0_79] : memref<40x128xf32, #tpu.memory_space<vmem>>, vector<1x64xf32>
    %255 = vector.broadcast %254 : vector<1x64xf32> to vector<16x64xf32>
    %256 = arith.addf %253, %255 : vector<16x64xf32>
    %cst_80 = arith.constant 0.000000e+00 : f32
    %257 = vector.broadcast %cst_80 : f32 to vector<16x64xf32>
    %258 = arith.maximumf %256, %257 : vector<16x64xf32>
    %c160 = arith.constant 160 : index
    %c0_81 = arith.constant 0 : index
    %259 = vector.load %arg1[%c160, %c0_81] : memref<448x128xf32, #tpu.memory_space<vmem>>, vector<64x32xf32>
    %cst_82 = arith.constant dense<0.000000e+00> : vector<16x32xf32>
    %260 = tpu.matmul %258, %259, %cst_82 {dimension_numbers = #tpu.dot_dimension_numbers<[1], [0], [0], [1], [0, 0, 1, 1], [], []>} : vector<16x64xf32>, vector<64x32xf32>, vector<16x32xf32> -> vector<16x32xf32>
    %c7 = arith.constant 7 : index
    %c0_83 = arith.constant 0 : index
    %261 = vector.load %arg2[%c7, %c0_83] : memref<40x128xf32, #tpu.memory_space<vmem>>, vector<1x32xf32>
    %262 = vector.broadcast %261 : vector<1x32xf32> to vector<16x32xf32>
    %263 = arith.addf %260, %262 : vector<16x32xf32>
    %264 = arith.addf %251, %263 : vector<16x32xf32>
    %c12 = arith.constant 12 : index
    %c0_84 = arith.constant 0 : index
    %265 = vector.load %arg2[%c12, %c0_84] : memref<40x128xf32, #tpu.memory_space<vmem>>, vector<1x32xf32>
    %c13 = arith.constant 13 : index
    %c0_85 = arith.constant 0 : index
    %266 = vector.load %arg2[%c13, %c0_85] : memref<40x128xf32, #tpu.memory_space<vmem>>, vector<1x32xf32>
    %cst_86 = arith.constant dense<0.000000e+00> : vector<16xf32>
    %267 = vector.multi_reduction <add>, %264, %cst_86 [1] : vector<16x32xf32> to vector<16xf32>
    %268 = vector.shape_cast %267 : vector<16xf32> to vector<16x1xf32>
    %cst_87 = arith.constant 3.200000e+01 : f32
    %269 = vector.broadcast %cst_87 : f32 to vector<16x1xf32>
    %270 = arith.divf %268, %269 : vector<16x1xf32>
    %271 = vector.broadcast %270 : vector<16x1xf32> to vector<16x32xf32>
    %272 = arith.subf %264, %271 : vector<16x32xf32>
    %273 = arith.mulf %272, %272 : vector<16x32xf32>
    %cst_88 = arith.constant dense<0.000000e+00> : vector<16xf32>
    %274 = vector.multi_reduction <add>, %273, %cst_88 [1] : vector<16x32xf32> to vector<16xf32>
    %275 = vector.shape_cast %274 : vector<16xf32> to vector<16x1xf32>
    %cst_89 = arith.constant 3.200000e+01 : f32
    %276 = vector.broadcast %cst_89 : f32 to vector<16x1xf32>
    %277 = arith.divf %275, %276 : vector<16x1xf32>
    %cst_90 = arith.constant 9.99999974E-6 : f32
    %278 = vector.broadcast %cst_90 : f32 to vector<16x1xf32>
    %279 = arith.addf %277, %278 : vector<16x1xf32>
    %280 = math.rsqrt %279 : vector<16x1xf32>
    %281 = vector.broadcast %280 : vector<16x1xf32> to vector<16x32xf32>
    %282 = arith.mulf %272, %281 : vector<16x32xf32>
    %283 = vector.broadcast %265 : vector<1x32xf32> to vector<16x32xf32>
    %284 = arith.mulf %282, %283 : vector<16x32xf32>
    %285 = vector.broadcast %266 : vector<1x32xf32> to vector<16x32xf32>
    %286 = arith.addf %284, %285 : vector<16x32xf32>
    %287 = arith.addf %286, %1 : vector<16x32xf32>
    %c224 = arith.constant 224 : index
    %c0_91 = arith.constant 0 : index
    %288 = vector.load %arg1[%c224, %c0_91] : memref<448x128xf32, #tpu.memory_space<vmem>>, vector<32x64xf32>
    %cst_92 = arith.constant dense<0.000000e+00> : vector<16x64xf32>
    %289 = tpu.matmul %287, %288, %cst_92 {dimension_numbers = #tpu.dot_dimension_numbers<[1], [0], [0], [1], [0, 0, 1, 1], [], []>} : vector<16x32xf32>, vector<32x64xf32>, vector<16x64xf32> -> vector<16x64xf32>
    %c16_93 = arith.constant 16 : index
    %c0_94 = arith.constant 0 : index
    %290 = vector.load %arg2[%c16_93, %c0_94] : memref<40x128xf32, #tpu.memory_space<vmem>>, vector<1x64xf32>
    %291 = vector.broadcast %290 : vector<1x64xf32> to vector<16x64xf32>
    %292 = arith.addf %289, %291 : vector<16x64xf32>
    %c256 = arith.constant 256 : index
    %c0_95 = arith.constant 0 : index
    %293 = vector.load %arg1[%c256, %c0_95] : memref<448x128xf32, #tpu.memory_space<vmem>>, vector<32x128xf32>
    %cst_96 = arith.constant dense<0.000000e+00> : vector<16x128xf32>
    %294 = tpu.matmul %286, %293, %cst_96 {dimension_numbers = #tpu.dot_dimension_numbers<[1], [0], [0], [1], [0, 0, 1, 1], [], []>} : vector<16x32xf32>, vector<32x128xf32>, vector<16x128xf32> -> vector<16x128xf32>
    %c17 = arith.constant 17 : index
    %c0_97 = arith.constant 0 : index
    %295 = vector.load %arg2[%c17, %c0_97] : memref<40x128xf32, #tpu.memory_space<vmem>>, vector<1x128xf32>
    %296 = vector.broadcast %295 : vector<1x128xf32> to vector<16x128xf32>
    %297 = arith.addf %294, %296 : vector<16x128xf32>
    %298 = vector.extract_strided_slice %292 {offsets = [0, 0], sizes = [16, 32], strides = [1, 1]} : vector<16x64xf32> to vector<16x32xf32>
    %299 = vector.extract_strided_slice %292 {offsets = [0, 32], sizes = [16, 32], strides = [1, 1]} : vector<16x64xf32> to vector<16x32xf32>
    %c18 = arith.constant 18 : index
    %c0_98 = arith.constant 0 : index
    %300 = vector.load %arg2[%c18, %c0_98] : memref<40x128xf32, #tpu.memory_space<vmem>>, vector<1x32xf32>
    %301 = vector.shape_cast %298 : vector<16x32xf32> to vector<2x8x32xf32>
    %302 = vector.shape_cast %299 : vector<16x32xf32> to vector<2x8x32xf32>
    %303 = vector.shape_cast %297 : vector<16x128xf32> to vector<2x8x128xf32>
    %304 = vector.extract_strided_slice %301 {offsets = [0, 0, 0], sizes = [2, 8, 8], strides = [1, 1, 1]} : vector<2x8x32xf32> to vector<2x8x8xf32>
    %305 = vector.extract_strided_slice %302 {offsets = [0, 0, 0], sizes = [2, 8, 8], strides = [1, 1, 1]} : vector<2x8x32xf32> to vector<2x8x8xf32>
    %cst_99 = arith.constant dense<0.000000e+00> : vector<2x8x8xf32>
    %306 = tpu.matmul %304, %305, %cst_99 {dimension_numbers = #tpu.dot_dimension_numbers<[2], [2], [1], [1], [0, 0, 0, 1, 1, 1], [0], [0]>} : vector<2x8x8xf32>, vector<2x8x8xf32>, vector<2x8x8xf32> -> vector<2x8x8xf32>
    %307 = arith.addf %306, %12 : vector<2x8x8xf32>
    %cst_100 = arith.constant dense<0xFF800000> : vector<2x8xf32>
    %308 = vector.multi_reduction <maximumf>, %307, %cst_100 [2] : vector<2x8x8xf32> to vector<2x8xf32>
    %309 = vector.shape_cast %308 : vector<2x8xf32> to vector<2x8x1xf32>
    %310 = vector.broadcast %309 : vector<2x8x1xf32> to vector<2x8x8xf32>
    %311 = arith.subf %307, %310 : vector<2x8x8xf32>
    %312 = math.exp %311 : vector<2x8x8xf32>
    %cst_101 = arith.constant dense<0.000000e+00> : vector<2x8xf32>
    %313 = vector.multi_reduction <add>, %312, %cst_101 [2] : vector<2x8x8xf32> to vector<2x8xf32>
    %314 = vector.shape_cast %313 : vector<2x8xf32> to vector<2x8x1xf32>
    %315 = tpu.reciprocal %314 {approx = true} : vector<2x8x1xf32> -> vector<2x8x1xf32>
    %316 = vector.broadcast %315 : vector<2x8x1xf32> to vector<2x8x8xf32>
    %317 = arith.mulf %312, %316 : vector<2x8x8xf32>
    %318 = vector.extract_strided_slice %303 {offsets = [0, 0, 0], sizes = [2, 8, 32], strides = [1, 1, 1]} : vector<2x8x128xf32> to vector<2x8x32xf32>
    %cst_102 = arith.constant dense<0.000000e+00> : vector<2x8x32xf32>
    %319 = tpu.matmul %317, %318, %cst_102 {dimension_numbers = #tpu.dot_dimension_numbers<[2], [1], [1], [2], [0, 0, 0, 1, 1, 2], [0], [0]>} : vector<2x8x8xf32>, vector<2x8x32xf32>, vector<2x8x32xf32> -> vector<2x8x32xf32>
    %320 = vector.extract_strided_slice %301 {offsets = [0, 0, 8], sizes = [2, 8, 8], strides = [1, 1, 1]} : vector<2x8x32xf32> to vector<2x8x8xf32>
    %321 = vector.extract_strided_slice %302 {offsets = [0, 0, 8], sizes = [2, 8, 8], strides = [1, 1, 1]} : vector<2x8x32xf32> to vector<2x8x8xf32>
    %cst_103 = arith.constant dense<0.000000e+00> : vector<2x8x8xf32>
    %322 = tpu.matmul %320, %321, %cst_103 {dimension_numbers = #tpu.dot_dimension_numbers<[2], [2], [1], [1], [0, 0, 0, 1, 1, 1], [0], [0]>} : vector<2x8x8xf32>, vector<2x8x8xf32>, vector<2x8x8xf32> -> vector<2x8x8xf32>
    %323 = arith.addf %322, %12 : vector<2x8x8xf32>
    %cst_104 = arith.constant dense<0xFF800000> : vector<2x8xf32>
    %324 = vector.multi_reduction <maximumf>, %323, %cst_104 [2] : vector<2x8x8xf32> to vector<2x8xf32>
    %325 = vector.shape_cast %324 : vector<2x8xf32> to vector<2x8x1xf32>
    %326 = vector.broadcast %325 : vector<2x8x1xf32> to vector<2x8x8xf32>
    %327 = arith.subf %323, %326 : vector<2x8x8xf32>
    %328 = math.exp %327 : vector<2x8x8xf32>
    %cst_105 = arith.constant dense<0.000000e+00> : vector<2x8xf32>
    %329 = vector.multi_reduction <add>, %328, %cst_105 [2] : vector<2x8x8xf32> to vector<2x8xf32>
    %330 = vector.shape_cast %329 : vector<2x8xf32> to vector<2x8x1xf32>
    %331 = tpu.reciprocal %330 {approx = true} : vector<2x8x1xf32> -> vector<2x8x1xf32>
    %332 = vector.broadcast %331 : vector<2x8x1xf32> to vector<2x8x8xf32>
    %333 = arith.mulf %328, %332 : vector<2x8x8xf32>
    %334 = vector.extract_strided_slice %303 {offsets = [0, 0, 32], sizes = [2, 8, 32], strides = [1, 1, 1]} : vector<2x8x128xf32> to vector<2x8x32xf32>
    %cst_106 = arith.constant dense<0.000000e+00> : vector<2x8x32xf32>
    %335 = tpu.matmul %333, %334, %cst_106 {dimension_numbers = #tpu.dot_dimension_numbers<[2], [1], [1], [2], [0, 0, 0, 1, 1, 2], [0], [0]>} : vector<2x8x8xf32>, vector<2x8x32xf32>, vector<2x8x32xf32> -> vector<2x8x32xf32>
    %336 = arith.addf %319, %335 : vector<2x8x32xf32>
    %337 = vector.extract_strided_slice %301 {offsets = [0, 0, 16], sizes = [2, 8, 8], strides = [1, 1, 1]} : vector<2x8x32xf32> to vector<2x8x8xf32>
    %338 = vector.extract_strided_slice %302 {offsets = [0, 0, 16], sizes = [2, 8, 8], strides = [1, 1, 1]} : vector<2x8x32xf32> to vector<2x8x8xf32>
    %cst_107 = arith.constant dense<0.000000e+00> : vector<2x8x8xf32>
    %339 = tpu.matmul %337, %338, %cst_107 {dimension_numbers = #tpu.dot_dimension_numbers<[2], [2], [1], [1], [0, 0, 0, 1, 1, 1], [0], [0]>} : vector<2x8x8xf32>, vector<2x8x8xf32>, vector<2x8x8xf32> -> vector<2x8x8xf32>
    %340 = arith.addf %339, %12 : vector<2x8x8xf32>
    %cst_108 = arith.constant dense<0xFF800000> : vector<2x8xf32>
    %341 = vector.multi_reduction <maximumf>, %340, %cst_108 [2] : vector<2x8x8xf32> to vector<2x8xf32>
    %342 = vector.shape_cast %341 : vector<2x8xf32> to vector<2x8x1xf32>
    %343 = vector.broadcast %342 : vector<2x8x1xf32> to vector<2x8x8xf32>
    %344 = arith.subf %340, %343 : vector<2x8x8xf32>
    %345 = math.exp %344 : vector<2x8x8xf32>
    %cst_109 = arith.constant dense<0.000000e+00> : vector<2x8xf32>
    %346 = vector.multi_reduction <add>, %345, %cst_109 [2] : vector<2x8x8xf32> to vector<2x8xf32>
    %347 = vector.shape_cast %346 : vector<2x8xf32> to vector<2x8x1xf32>
    %348 = tpu.reciprocal %347 {approx = true} : vector<2x8x1xf32> -> vector<2x8x1xf32>
    %349 = vector.broadcast %348 : vector<2x8x1xf32> to vector<2x8x8xf32>
    %350 = arith.mulf %345, %349 : vector<2x8x8xf32>
    %351 = vector.extract_strided_slice %303 {offsets = [0, 0, 64], sizes = [2, 8, 32], strides = [1, 1, 1]} : vector<2x8x128xf32> to vector<2x8x32xf32>
    %cst_110 = arith.constant dense<0.000000e+00> : vector<2x8x32xf32>
    %352 = tpu.matmul %350, %351, %cst_110 {dimension_numbers = #tpu.dot_dimension_numbers<[2], [1], [1], [2], [0, 0, 0, 1, 1, 2], [0], [0]>} : vector<2x8x8xf32>, vector<2x8x32xf32>, vector<2x8x32xf32> -> vector<2x8x32xf32>
    %353 = arith.addf %336, %352 : vector<2x8x32xf32>
    %354 = vector.extract_strided_slice %301 {offsets = [0, 0, 24], sizes = [2, 8, 8], strides = [1, 1, 1]} : vector<2x8x32xf32> to vector<2x8x8xf32>
    %355 = vector.extract_strided_slice %302 {offsets = [0, 0, 24], sizes = [2, 8, 8], strides = [1, 1, 1]} : vector<2x8x32xf32> to vector<2x8x8xf32>
    %cst_111 = arith.constant dense<0.000000e+00> : vector<2x8x8xf32>
    %356 = tpu.matmul %354, %355, %cst_111 {dimension_numbers = #tpu.dot_dimension_numbers<[2], [2], [1], [1], [0, 0, 0, 1, 1, 1], [0], [0]>} : vector<2x8x8xf32>, vector<2x8x8xf32>, vector<2x8x8xf32> -> vector<2x8x8xf32>
    %357 = arith.addf %356, %12 : vector<2x8x8xf32>
    %cst_112 = arith.constant dense<0xFF800000> : vector<2x8xf32>
    %358 = vector.multi_reduction <maximumf>, %357, %cst_112 [2] : vector<2x8x8xf32> to vector<2x8xf32>
    %359 = vector.shape_cast %358 : vector<2x8xf32> to vector<2x8x1xf32>
    %360 = vector.broadcast %359 : vector<2x8x1xf32> to vector<2x8x8xf32>
    %361 = arith.subf %357, %360 : vector<2x8x8xf32>
    %362 = math.exp %361 : vector<2x8x8xf32>
    %cst_113 = arith.constant dense<0.000000e+00> : vector<2x8xf32>
    %363 = vector.multi_reduction <add>, %362, %cst_113 [2] : vector<2x8x8xf32> to vector<2x8xf32>
    %364 = vector.shape_cast %363 : vector<2x8xf32> to vector<2x8x1xf32>
    %365 = tpu.reciprocal %364 {approx = true} : vector<2x8x1xf32> -> vector<2x8x1xf32>
    %366 = vector.broadcast %365 : vector<2x8x1xf32> to vector<2x8x8xf32>
    %367 = arith.mulf %362, %366 : vector<2x8x8xf32>
    %368 = vector.extract_strided_slice %303 {offsets = [0, 0, 96], sizes = [2, 8, 32], strides = [1, 1, 1]} : vector<2x8x128xf32> to vector<2x8x32xf32>
    %cst_114 = arith.constant dense<0.000000e+00> : vector<2x8x32xf32>
    %369 = tpu.matmul %367, %368, %cst_114 {dimension_numbers = #tpu.dot_dimension_numbers<[2], [1], [1], [2], [0, 0, 0, 1, 1, 2], [0], [0]>} : vector<2x8x8xf32>, vector<2x8x32xf32>, vector<2x8x32xf32> -> vector<2x8x32xf32>
    %370 = arith.addf %353, %369 : vector<2x8x32xf32>
    %371 = vector.shape_cast %370 : vector<2x8x32xf32> to vector<16x32xf32>
    %372 = vector.broadcast %300 : vector<1x32xf32> to vector<16x32xf32>
    %373 = arith.addf %371, %372 : vector<16x32xf32>
    %374 = arith.addf %286, %373 : vector<16x32xf32>
    %c24 = arith.constant 24 : index
    %c0_115 = arith.constant 0 : index
    %375 = vector.load %arg2[%c24, %c0_115] : memref<40x128xf32, #tpu.memory_space<vmem>>, vector<1x32xf32>
    %c25 = arith.constant 25 : index
    %c0_116 = arith.constant 0 : index
    %376 = vector.load %arg2[%c25, %c0_116] : memref<40x128xf32, #tpu.memory_space<vmem>>, vector<1x32xf32>
    %cst_117 = arith.constant dense<0.000000e+00> : vector<16xf32>
    %377 = vector.multi_reduction <add>, %374, %cst_117 [1] : vector<16x32xf32> to vector<16xf32>
    %378 = vector.shape_cast %377 : vector<16xf32> to vector<16x1xf32>
    %cst_118 = arith.constant 3.200000e+01 : f32
    %379 = vector.broadcast %cst_118 : f32 to vector<16x1xf32>
    %380 = arith.divf %378, %379 : vector<16x1xf32>
    %381 = vector.broadcast %380 : vector<16x1xf32> to vector<16x32xf32>
    %382 = arith.subf %374, %381 : vector<16x32xf32>
    %383 = arith.mulf %382, %382 : vector<16x32xf32>
    %cst_119 = arith.constant dense<0.000000e+00> : vector<16xf32>
    %384 = vector.multi_reduction <add>, %383, %cst_119 [1] : vector<16x32xf32> to vector<16xf32>
    %385 = vector.shape_cast %384 : vector<16xf32> to vector<16x1xf32>
    %cst_120 = arith.constant 3.200000e+01 : f32
    %386 = vector.broadcast %cst_120 : f32 to vector<16x1xf32>
    %387 = arith.divf %385, %386 : vector<16x1xf32>
    %cst_121 = arith.constant 9.99999974E-6 : f32
    %388 = vector.broadcast %cst_121 : f32 to vector<16x1xf32>
    %389 = arith.addf %387, %388 : vector<16x1xf32>
    %390 = math.rsqrt %389 : vector<16x1xf32>
    %391 = vector.broadcast %390 : vector<16x1xf32> to vector<16x32xf32>
    %392 = arith.mulf %382, %391 : vector<16x32xf32>
    %393 = vector.broadcast %375 : vector<1x32xf32> to vector<16x32xf32>
    %394 = arith.mulf %392, %393 : vector<16x32xf32>
    %395 = vector.broadcast %376 : vector<1x32xf32> to vector<16x32xf32>
    %396 = arith.addf %394, %395 : vector<16x32xf32>
    %397 = arith.addf %396, %1 : vector<16x32xf32>
    %398 = tpu.concatenate %397, %3 in 0 : vector<16x32xf32>, vector<32x32xf32> -> vector<48x32xf32>
    %c288 = arith.constant 288 : index
    %c0_122 = arith.constant 0 : index
    %399 = vector.load %arg1[%c288, %c0_122] : memref<448x128xf32, #tpu.memory_space<vmem>>, vector<32x64xf32>
    %cst_123 = arith.constant dense<0.000000e+00> : vector<48x64xf32>
    %400 = tpu.matmul %398, %399, %cst_123 {dimension_numbers = #tpu.dot_dimension_numbers<[1], [0], [0], [1], [0, 0, 1, 1], [], []>} : vector<48x32xf32>, vector<32x64xf32>, vector<48x64xf32> -> vector<48x64xf32>
    %c19 = arith.constant 19 : index
    %c0_124 = arith.constant 0 : index
    %401 = vector.load %arg2[%c19, %c0_124] : memref<40x128xf32, #tpu.memory_space<vmem>>, vector<1x64xf32>
    %402 = vector.broadcast %401 : vector<1x64xf32> to vector<48x64xf32>
    %403 = arith.addf %400, %402 : vector<48x64xf32>
    %c320 = arith.constant 320 : index
    %c0_125 = arith.constant 0 : index
    %404 = vector.load %arg1[%c320, %c0_125] : memref<448x128xf32, #tpu.memory_space<vmem>>, vector<32x128xf32>
    %cst_126 = arith.constant dense<0.000000e+00> : vector<32x128xf32>
    %405 = tpu.matmul %2, %404, %cst_126 {dimension_numbers = #tpu.dot_dimension_numbers<[1], [0], [0], [1], [0, 0, 1, 1], [], []>} : vector<32x32xf32>, vector<32x128xf32>, vector<32x128xf32> -> vector<32x128xf32>
    %c20 = arith.constant 20 : index
    %c0_127 = arith.constant 0 : index
    %406 = vector.load %arg2[%c20, %c0_127] : memref<40x128xf32, #tpu.memory_space<vmem>>, vector<1x128xf32>
    %407 = vector.broadcast %406 : vector<1x128xf32> to vector<32x128xf32>
    %408 = arith.addf %405, %407 : vector<32x128xf32>
    %409 = vector.extract_strided_slice %403 {offsets = [0, 0], sizes = [16, 32], strides = [1, 1]} : vector<48x64xf32> to vector<16x32xf32>
    %410 = vector.extract_strided_slice %403 {offsets = [16, 32], sizes = [32, 32], strides = [1, 1]} : vector<48x64xf32> to vector<32x32xf32>
    %c21 = arith.constant 21 : index
    %c0_128 = arith.constant 0 : index
    %411 = vector.load %arg2[%c21, %c0_128] : memref<40x128xf32, #tpu.memory_space<vmem>>, vector<1x32xf32>
    %412 = vector.shape_cast %409 : vector<16x32xf32> to vector<2x8x32xf32>
    %413 = vector.shape_cast %410 : vector<32x32xf32> to vector<2x16x32xf32>
    %414 = vector.shape_cast %408 : vector<32x128xf32> to vector<2x16x128xf32>
    %415 = vector.extract_strided_slice %412 {offsets = [0, 0, 0], sizes = [2, 8, 8], strides = [1, 1, 1]} : vector<2x8x32xf32> to vector<2x8x8xf32>
    %416 = vector.extract_strided_slice %413 {offsets = [0, 0, 0], sizes = [2, 16, 8], strides = [1, 1, 1]} : vector<2x16x32xf32> to vector<2x16x8xf32>
    %cst_129 = arith.constant dense<0.000000e+00> : vector<2x8x16xf32>
    %417 = tpu.matmul %415, %416, %cst_129 {dimension_numbers = #tpu.dot_dimension_numbers<[2], [2], [1], [1], [0, 0, 0, 1, 1, 1], [0], [0]>} : vector<2x8x8xf32>, vector<2x16x8xf32>, vector<2x8x16xf32> -> vector<2x8x16xf32>
    %cst_130 = arith.constant dense<0xFF800000> : vector<2x8xf32>
    %418 = vector.multi_reduction <maximumf>, %417, %cst_130 [2] : vector<2x8x16xf32> to vector<2x8xf32>
    %419 = vector.shape_cast %418 : vector<2x8xf32> to vector<2x8x1xf32>
    %420 = vector.broadcast %419 : vector<2x8x1xf32> to vector<2x8x16xf32>
    %421 = arith.subf %417, %420 : vector<2x8x16xf32>
    %422 = math.exp %421 : vector<2x8x16xf32>
    %cst_131 = arith.constant dense<0.000000e+00> : vector<2x8xf32>
    %423 = vector.multi_reduction <add>, %422, %cst_131 [2] : vector<2x8x16xf32> to vector<2x8xf32>
    %424 = vector.shape_cast %423 : vector<2x8xf32> to vector<2x8x1xf32>
    %425 = tpu.reciprocal %424 {approx = true} : vector<2x8x1xf32> -> vector<2x8x1xf32>
    %426 = vector.broadcast %425 : vector<2x8x1xf32> to vector<2x8x16xf32>
    %427 = arith.mulf %422, %426 : vector<2x8x16xf32>
    %428 = vector.extract_strided_slice %414 {offsets = [0, 0, 0], sizes = [2, 16, 32], strides = [1, 1, 1]} : vector<2x16x128xf32> to vector<2x16x32xf32>
    %cst_132 = arith.constant dense<0.000000e+00> : vector<2x8x32xf32>
    %429 = tpu.matmul %427, %428, %cst_132 {dimension_numbers = #tpu.dot_dimension_numbers<[2], [1], [1], [2], [0, 0, 0, 1, 1, 2], [0], [0]>} : vector<2x8x16xf32>, vector<2x16x32xf32>, vector<2x8x32xf32> -> vector<2x8x32xf32>
    %430 = vector.extract_strided_slice %412 {offsets = [0, 0, 8], sizes = [2, 8, 8], strides = [1, 1, 1]} : vector<2x8x32xf32> to vector<2x8x8xf32>
    %431 = vector.extract_strided_slice %413 {offsets = [0, 0, 8], sizes = [2, 16, 8], strides = [1, 1, 1]} : vector<2x16x32xf32> to vector<2x16x8xf32>
    %cst_133 = arith.constant dense<0.000000e+00> : vector<2x8x16xf32>
    %432 = tpu.matmul %430, %431, %cst_133 {dimension_numbers = #tpu.dot_dimension_numbers<[2], [2], [1], [1], [0, 0, 0, 1, 1, 1], [0], [0]>} : vector<2x8x8xf32>, vector<2x16x8xf32>, vector<2x8x16xf32> -> vector<2x8x16xf32>
    %cst_134 = arith.constant dense<0xFF800000> : vector<2x8xf32>
    %433 = vector.multi_reduction <maximumf>, %432, %cst_134 [2] : vector<2x8x16xf32> to vector<2x8xf32>
    %434 = vector.shape_cast %433 : vector<2x8xf32> to vector<2x8x1xf32>
    %435 = vector.broadcast %434 : vector<2x8x1xf32> to vector<2x8x16xf32>
    %436 = arith.subf %432, %435 : vector<2x8x16xf32>
    %437 = math.exp %436 : vector<2x8x16xf32>
    %cst_135 = arith.constant dense<0.000000e+00> : vector<2x8xf32>
    %438 = vector.multi_reduction <add>, %437, %cst_135 [2] : vector<2x8x16xf32> to vector<2x8xf32>
    %439 = vector.shape_cast %438 : vector<2x8xf32> to vector<2x8x1xf32>
    %440 = tpu.reciprocal %439 {approx = true} : vector<2x8x1xf32> -> vector<2x8x1xf32>
    %441 = vector.broadcast %440 : vector<2x8x1xf32> to vector<2x8x16xf32>
    %442 = arith.mulf %437, %441 : vector<2x8x16xf32>
    %443 = vector.extract_strided_slice %414 {offsets = [0, 0, 32], sizes = [2, 16, 32], strides = [1, 1, 1]} : vector<2x16x128xf32> to vector<2x16x32xf32>
    %cst_136 = arith.constant dense<0.000000e+00> : vector<2x8x32xf32>
    %444 = tpu.matmul %442, %443, %cst_136 {dimension_numbers = #tpu.dot_dimension_numbers<[2], [1], [1], [2], [0, 0, 0, 1, 1, 2], [0], [0]>} : vector<2x8x16xf32>, vector<2x16x32xf32>, vector<2x8x32xf32> -> vector<2x8x32xf32>
    %445 = arith.addf %429, %444 : vector<2x8x32xf32>
    %446 = vector.extract_strided_slice %412 {offsets = [0, 0, 16], sizes = [2, 8, 8], strides = [1, 1, 1]} : vector<2x8x32xf32> to vector<2x8x8xf32>
    %447 = vector.extract_strided_slice %413 {offsets = [0, 0, 16], sizes = [2, 16, 8], strides = [1, 1, 1]} : vector<2x16x32xf32> to vector<2x16x8xf32>
    %cst_137 = arith.constant dense<0.000000e+00> : vector<2x8x16xf32>
    %448 = tpu.matmul %446, %447, %cst_137 {dimension_numbers = #tpu.dot_dimension_numbers<[2], [2], [1], [1], [0, 0, 0, 1, 1, 1], [0], [0]>} : vector<2x8x8xf32>, vector<2x16x8xf32>, vector<2x8x16xf32> -> vector<2x8x16xf32>
    %cst_138 = arith.constant dense<0xFF800000> : vector<2x8xf32>
    %449 = vector.multi_reduction <maximumf>, %448, %cst_138 [2] : vector<2x8x16xf32> to vector<2x8xf32>
    %450 = vector.shape_cast %449 : vector<2x8xf32> to vector<2x8x1xf32>
    %451 = vector.broadcast %450 : vector<2x8x1xf32> to vector<2x8x16xf32>
    %452 = arith.subf %448, %451 : vector<2x8x16xf32>
    %453 = math.exp %452 : vector<2x8x16xf32>
    %cst_139 = arith.constant dense<0.000000e+00> : vector<2x8xf32>
    %454 = vector.multi_reduction <add>, %453, %cst_139 [2] : vector<2x8x16xf32> to vector<2x8xf32>
    %455 = vector.shape_cast %454 : vector<2x8xf32> to vector<2x8x1xf32>
    %456 = tpu.reciprocal %455 {approx = true} : vector<2x8x1xf32> -> vector<2x8x1xf32>
    %457 = vector.broadcast %456 : vector<2x8x1xf32> to vector<2x8x16xf32>
    %458 = arith.mulf %453, %457 : vector<2x8x16xf32>
    %459 = vector.extract_strided_slice %414 {offsets = [0, 0, 64], sizes = [2, 16, 32], strides = [1, 1, 1]} : vector<2x16x128xf32> to vector<2x16x32xf32>
    %cst_140 = arith.constant dense<0.000000e+00> : vector<2x8x32xf32>
    %460 = tpu.matmul %458, %459, %cst_140 {dimension_numbers = #tpu.dot_dimension_numbers<[2], [1], [1], [2], [0, 0, 0, 1, 1, 2], [0], [0]>} : vector<2x8x16xf32>, vector<2x16x32xf32>, vector<2x8x32xf32> -> vector<2x8x32xf32>
    %461 = arith.addf %445, %460 : vector<2x8x32xf32>
    %462 = vector.extract_strided_slice %412 {offsets = [0, 0, 24], sizes = [2, 8, 8], strides = [1, 1, 1]} : vector<2x8x32xf32> to vector<2x8x8xf32>
    %463 = vector.extract_strided_slice %413 {offsets = [0, 0, 24], sizes = [2, 16, 8], strides = [1, 1, 1]} : vector<2x16x32xf32> to vector<2x16x8xf32>
    %cst_141 = arith.constant dense<0.000000e+00> : vector<2x8x16xf32>
    %464 = tpu.matmul %462, %463, %cst_141 {dimension_numbers = #tpu.dot_dimension_numbers<[2], [2], [1], [1], [0, 0, 0, 1, 1, 1], [0], [0]>} : vector<2x8x8xf32>, vector<2x16x8xf32>, vector<2x8x16xf32> -> vector<2x8x16xf32>
    %cst_142 = arith.constant dense<0xFF800000> : vector<2x8xf32>
    %465 = vector.multi_reduction <maximumf>, %464, %cst_142 [2] : vector<2x8x16xf32> to vector<2x8xf32>
    %466 = vector.shape_cast %465 : vector<2x8xf32> to vector<2x8x1xf32>
    %467 = vector.broadcast %466 : vector<2x8x1xf32> to vector<2x8x16xf32>
    %468 = arith.subf %464, %467 : vector<2x8x16xf32>
    %469 = math.exp %468 : vector<2x8x16xf32>
    %cst_143 = arith.constant dense<0.000000e+00> : vector<2x8xf32>
    %470 = vector.multi_reduction <add>, %469, %cst_143 [2] : vector<2x8x16xf32> to vector<2x8xf32>
    %471 = vector.shape_cast %470 : vector<2x8xf32> to vector<2x8x1xf32>
    %472 = tpu.reciprocal %471 {approx = true} : vector<2x8x1xf32> -> vector<2x8x1xf32>
    %473 = vector.broadcast %472 : vector<2x8x1xf32> to vector<2x8x16xf32>
    %474 = arith.mulf %469, %473 : vector<2x8x16xf32>
    %475 = vector.extract_strided_slice %414 {offsets = [0, 0, 96], sizes = [2, 16, 32], strides = [1, 1, 1]} : vector<2x16x128xf32> to vector<2x16x32xf32>
    %cst_144 = arith.constant dense<0.000000e+00> : vector<2x8x32xf32>
    %476 = tpu.matmul %474, %475, %cst_144 {dimension_numbers = #tpu.dot_dimension_numbers<[2], [1], [1], [2], [0, 0, 0, 1, 1, 2], [0], [0]>} : vector<2x8x16xf32>, vector<2x16x32xf32>, vector<2x8x32xf32> -> vector<2x8x32xf32>
    %477 = arith.addf %461, %476 : vector<2x8x32xf32>
    %478 = vector.shape_cast %477 : vector<2x8x32xf32> to vector<16x32xf32>
    %479 = vector.broadcast %411 : vector<1x32xf32> to vector<16x32xf32>
    %480 = arith.addf %478, %479 : vector<16x32xf32>
    %481 = arith.addf %396, %480 : vector<16x32xf32>
    %c26 = arith.constant 26 : index
    %c0_145 = arith.constant 0 : index
    %482 = vector.load %arg2[%c26, %c0_145] : memref<40x128xf32, #tpu.memory_space<vmem>>, vector<1x32xf32>
    %c27 = arith.constant 27 : index
    %c0_146 = arith.constant 0 : index
    %483 = vector.load %arg2[%c27, %c0_146] : memref<40x128xf32, #tpu.memory_space<vmem>>, vector<1x32xf32>
    %cst_147 = arith.constant dense<0.000000e+00> : vector<16xf32>
    %484 = vector.multi_reduction <add>, %481, %cst_147 [1] : vector<16x32xf32> to vector<16xf32>
    %485 = vector.shape_cast %484 : vector<16xf32> to vector<16x1xf32>
    %cst_148 = arith.constant 3.200000e+01 : f32
    %486 = vector.broadcast %cst_148 : f32 to vector<16x1xf32>
    %487 = arith.divf %485, %486 : vector<16x1xf32>
    %488 = vector.broadcast %487 : vector<16x1xf32> to vector<16x32xf32>
    %489 = arith.subf %481, %488 : vector<16x32xf32>
    %490 = arith.mulf %489, %489 : vector<16x32xf32>
    %cst_149 = arith.constant dense<0.000000e+00> : vector<16xf32>
    %491 = vector.multi_reduction <add>, %490, %cst_149 [1] : vector<16x32xf32> to vector<16xf32>
    %492 = vector.shape_cast %491 : vector<16xf32> to vector<16x1xf32>
    %cst_150 = arith.constant 3.200000e+01 : f32
    %493 = vector.broadcast %cst_150 : f32 to vector<16x1xf32>
    %494 = arith.divf %492, %493 : vector<16x1xf32>
    %cst_151 = arith.constant 9.99999974E-6 : f32
    %495 = vector.broadcast %cst_151 : f32 to vector<16x1xf32>
    %496 = arith.addf %494, %495 : vector<16x1xf32>
    %497 = math.rsqrt %496 : vector<16x1xf32>
    %498 = vector.broadcast %497 : vector<16x1xf32> to vector<16x32xf32>
    %499 = arith.mulf %489, %498 : vector<16x32xf32>
    %500 = vector.broadcast %482 : vector<1x32xf32> to vector<16x32xf32>
    %501 = arith.mulf %499, %500 : vector<16x32xf32>
    %502 = vector.broadcast %483 : vector<1x32xf32> to vector<16x32xf32>
    %503 = arith.addf %501, %502 : vector<16x32xf32>
    %c352 = arith.constant 352 : index
    %c0_152 = arith.constant 0 : index
    %504 = vector.load %arg1[%c352, %c0_152] : memref<448x128xf32, #tpu.memory_space<vmem>>, vector<32x64xf32>
    %cst_153 = arith.constant dense<0.000000e+00> : vector<16x64xf32>
    %505 = tpu.matmul %503, %504, %cst_153 {dimension_numbers = #tpu.dot_dimension_numbers<[1], [0], [0], [1], [0, 0, 1, 1], [], []>} : vector<16x32xf32>, vector<32x64xf32>, vector<16x64xf32> -> vector<16x64xf32>
    %c22 = arith.constant 22 : index
    %c0_154 = arith.constant 0 : index
    %506 = vector.load %arg2[%c22, %c0_154] : memref<40x128xf32, #tpu.memory_space<vmem>>, vector<1x64xf32>
    %507 = vector.broadcast %506 : vector<1x64xf32> to vector<16x64xf32>
    %508 = arith.addf %505, %507 : vector<16x64xf32>
    %cst_155 = arith.constant 0.000000e+00 : f32
    %509 = vector.broadcast %cst_155 : f32 to vector<16x64xf32>
    %510 = arith.maximumf %508, %509 : vector<16x64xf32>
    %c384 = arith.constant 384 : index
    %c0_156 = arith.constant 0 : index
    %511 = vector.load %arg1[%c384, %c0_156] : memref<448x128xf32, #tpu.memory_space<vmem>>, vector<64x32xf32>
    %cst_157 = arith.constant dense<0.000000e+00> : vector<16x32xf32>
    %512 = tpu.matmul %510, %511, %cst_157 {dimension_numbers = #tpu.dot_dimension_numbers<[1], [0], [0], [1], [0, 0, 1, 1], [], []>} : vector<16x64xf32>, vector<64x32xf32>, vector<16x32xf32> -> vector<16x32xf32>
    %c23 = arith.constant 23 : index
    %c0_158 = arith.constant 0 : index
    %513 = vector.load %arg2[%c23, %c0_158] : memref<40x128xf32, #tpu.memory_space<vmem>>, vector<1x32xf32>
    %514 = vector.broadcast %513 : vector<1x32xf32> to vector<16x32xf32>
    %515 = arith.addf %512, %514 : vector<16x32xf32>
    %516 = arith.addf %503, %515 : vector<16x32xf32>
    %c28 = arith.constant 28 : index
    %c0_159 = arith.constant 0 : index
    %517 = vector.load %arg2[%c28, %c0_159] : memref<40x128xf32, #tpu.memory_space<vmem>>, vector<1x32xf32>
    %c29 = arith.constant 29 : index
    %c0_160 = arith.constant 0 : index
    %518 = vector.load %arg2[%c29, %c0_160] : memref<40x128xf32, #tpu.memory_space<vmem>>, vector<1x32xf32>
    %cst_161 = arith.constant dense<0.000000e+00> : vector<16xf32>
    %519 = vector.multi_reduction <add>, %516, %cst_161 [1] : vector<16x32xf32> to vector<16xf32>
    %520 = vector.shape_cast %519 : vector<16xf32> to vector<16x1xf32>
    %cst_162 = arith.constant 3.200000e+01 : f32
    %521 = vector.broadcast %cst_162 : f32 to vector<16x1xf32>
    %522 = arith.divf %520, %521 : vector<16x1xf32>
    %523 = vector.broadcast %522 : vector<16x1xf32> to vector<16x32xf32>
    %524 = arith.subf %516, %523 : vector<16x32xf32>
    %525 = arith.mulf %524, %524 : vector<16x32xf32>
    %cst_163 = arith.constant dense<0.000000e+00> : vector<16xf32>
    %526 = vector.multi_reduction <add>, %525, %cst_163 [1] : vector<16x32xf32> to vector<16xf32>
    %527 = vector.shape_cast %526 : vector<16xf32> to vector<16x1xf32>
    %cst_164 = arith.constant 3.200000e+01 : f32
    %528 = vector.broadcast %cst_164 : f32 to vector<16x1xf32>
    %529 = arith.divf %527, %528 : vector<16x1xf32>
    %cst_165 = arith.constant 9.99999974E-6 : f32
    %530 = vector.broadcast %cst_165 : f32 to vector<16x1xf32>
    %531 = arith.addf %529, %530 : vector<16x1xf32>
    %532 = math.rsqrt %531 : vector<16x1xf32>
    %533 = vector.broadcast %532 : vector<16x1xf32> to vector<16x32xf32>
    %534 = arith.mulf %524, %533 : vector<16x32xf32>
    %535 = vector.broadcast %517 : vector<1x32xf32> to vector<16x32xf32>
    %536 = arith.mulf %534, %535 : vector<16x32xf32>
    %537 = vector.broadcast %518 : vector<1x32xf32> to vector<16x32xf32>
    %538 = arith.addf %536, %537 : vector<16x32xf32>
    %c34 = arith.constant 34 : index
    %c0_166 = arith.constant 0 : index
    %539 = vector.load %arg2[%c34, %c0_166] : memref<40x128xf32, #tpu.memory_space<vmem>>, vector<1x32xf32>
    %c35 = arith.constant 35 : index
    %c0_167 = arith.constant 0 : index
    %540 = vector.load %arg2[%c35, %c0_167] : memref<40x128xf32, #tpu.memory_space<vmem>>, vector<1x32xf32>
    %cst_168 = arith.constant dense<0.000000e+00> : vector<16xf32>
    %541 = vector.multi_reduction <add>, %538, %cst_168 [1] : vector<16x32xf32> to vector<16xf32>
    %542 = vector.shape_cast %541 : vector<16xf32> to vector<16x1xf32>
    %cst_169 = arith.constant 3.200000e+01 : f32
    %543 = vector.broadcast %cst_169 : f32 to vector<16x1xf32>
    %544 = arith.divf %542, %543 : vector<16x1xf32>
    %545 = vector.broadcast %544 : vector<16x1xf32> to vector<16x32xf32>
    %546 = arith.subf %538, %545 : vector<16x32xf32>
    %547 = arith.mulf %546, %546 : vector<16x32xf32>
    %cst_170 = arith.constant dense<0.000000e+00> : vector<16xf32>
    %548 = vector.multi_reduction <add>, %547, %cst_170 [1] : vector<16x32xf32> to vector<16xf32>
    %549 = vector.shape_cast %548 : vector<16xf32> to vector<16x1xf32>
    %cst_171 = arith.constant 3.200000e+01 : f32
    %550 = vector.broadcast %cst_171 : f32 to vector<16x1xf32>
    %551 = arith.divf %549, %550 : vector<16x1xf32>
    %cst_172 = arith.constant 9.99999974E-6 : f32
    %552 = vector.broadcast %cst_172 : f32 to vector<16x1xf32>
    %553 = arith.addf %551, %552 : vector<16x1xf32>
    %554 = math.rsqrt %553 : vector<16x1xf32>
    %555 = vector.broadcast %554 : vector<16x1xf32> to vector<16x32xf32>
    %556 = arith.mulf %546, %555 : vector<16x32xf32>
    %557 = vector.broadcast %539 : vector<1x32xf32> to vector<16x32xf32>
    %558 = arith.mulf %556, %557 : vector<16x32xf32>
    %559 = vector.broadcast %540 : vector<1x32xf32> to vector<16x32xf32>
    %560 = arith.addf %558, %559 : vector<16x32xf32>
    %c0_173 = arith.constant 0 : index
    %c0_174 = arith.constant 0 : index
    %561 = vector.load %arg3[%c0_173, %c0_174] : memref<16x32xf32, #tpu.memory_space<vmem>>, vector<16x32xf32>
    tpu.vector_store %arg3[%c0_173, %c0_174], %560 {strides = array<i32>} : memref<16x32xf32, #tpu.memory_space<vmem>>, vector<16x32xf32>,
    return
  }
}

</mosaic_0001>

<bundles_post_ra>
// kernel: seqtrack_decoder_forward.1
= control target key start
LH: loop header
LB: loop body
LE: loop exit
PB: predicated region body
PF: predicated region fallthrough
CT: control target
= control target key end

     0   :  { %vm35_vm0 = vcmask 261120   ;;  %s9711_s0 = inlined_call_operand.vmem [shape: f32[96,32], index: 0, kind: input, shape index: {}]   ;;  %s9712_s1 = inlined_call_operand.vmem [shape: f32[448,128], index: 1, kind: input, shape index: {}]   ;;  %s9713_s2 = inlined_call_operand.vmem [shape: f32[40,128], index: 2, kind: input, shape index: {}]   ;;  %s9714_s3 = inlined_call_operand.hbm [shape: f32[16,32], index: 3, kind: output, shape index: {}]  }
   0x1   :  { %v15_v0 = vld [vmem:[%s9711_s0] sm:$0xff]  ;;  %v16_v1 = vld [vmem:[%s9711_s0 + $0x8] sm:$0xff] }
   0x2   :  { %8 = vsyncpa [#allocation3], 0  ;;  %v36_v2 = vsel %vm35_vm0, %v15_v0, 0.0  ;;  %v39_v3 = vsel %vm35_vm0, %v16_v1, 0.0  ;;  %v167_v14 = vld [vmem:[%s9712_s1 + $0x20] sm:$0xff]  ;;  %v168_v15 = vld [vmem:[%s9712_s1 + $0x28] sm:$0xff]  ;;  %v27_v60 = vlaneseq }
   0x3   :  { %37 = vadd.xlane.f32.xlu0 %v36_v2  ;;  %v77_v16 = vld [vmem:[%s9712_s1] sm:$0xff]  ;;  %v7962_v17 = vpack.c.bf16 %v168_v15, %v167_v14  ;;  %v78_v18 = vld [vmem:[%s9712_s1 + $0x8] sm:$0xff]  ;;  %v169_v19 = vld [vmem:[%s9712_s1 + $0x30] sm:$0xff]  ;;  %v8528_v46 = vmov 0.0   ;;  %vm8529_vm1 = vmmov 0   ;;  %s8530_s15 = smov 96  }
   0x4   :  { %v170_v20 = vld [vmem:[%s9712_s1 + $0x38] sm:$0xff]  ;;  %v7954_v21 = vpack.c.bf16 %v78_v18, %v77_v16  ;;  %v79_v23 = vld [vmem:[%s9712_s1 + $0x10] sm:$0xff]  ;;  %v6972_v33 = vld [vmem:[%s9713_s2 + $0x20] ss:$0 sm:$0xff]  ;;  %s8531_s16 = smov 88   ;;  %s8532_s17 = smov 120  }
   0x5   :  { %v7966_v22 = vpack.c.bf16 %v170_v20, %v169_v19  ;;  %7963 = vmatprep.subr.bf16.mxu1 %v7962_v17  ;;  %v80_v24 = vld [vmem:[%s9712_s1 + $0x18] sm:$0xff]  ;;  %v6973_v35 = vld [vmem:[%s9713_s2 + $0x21] ss:$0 sm:$0xff]  ;;  %v8607_v38 = vld [vmem:[%s9711_s0 + $0x10] sm:$0xff]  ;;  %vm261_vm2 = vcmask 64512   ;;  %v28_v62 = vshrl.u32 %v27_v60, 7 }
   0x6   :  { %7965 = vmatpush3.bf16.msra.mxu1 %v7962_v17  ;;  %7955 = vmatprep.subr.bf16.mxu0 %v7954_v21  ;;  %v7958_v25 = vpack.c.bf16 %v80_v24, %v79_v23  ;;  %v8618_v43 = vld [vmem:[%s9711_s0 + $0x18] sm:$0xff]  ;;  %v6974_v48 = vld [vmem:[%s9713_s2] ss:$0 sm:$0xff]  ;;  %v30_v63 = vand.u32 127, %v27_v60  ;;  %s8534_s20 = smov 80   ;;  %s8535_s21 = smov 112   ;;  %vm8908_vm4 = vmpackc.low %vm261_vm2, %vm261_vm2 }
   0x7   :  { %40 = vadd.xlane.f32.xlu0 %v39_v3  ;;  %7957 = vmatpush3.bf16.msra.mxu0 %v7954_v21  ;;  %v8533_v3 = vmov -1e+30   ;;  %s8536_s22 = smov 64   ;;  %s8537_s23 = smov 72   ;;  %vm2022_vm5 = vcmask 130048   ;;  %vm3384_vm6 = vcmask 523264  }
   0x8   :  { %7967 = vmatprep.subr.bf16.mxu1 %v7966_v22  ;;  %7959 = vmatprep.subr.bf16.mxu0 %v7958_v25  ;;  %vm31_vm3 = vcmp.le.s32.totalorder %v30_v63, %v28_v62  ;;  %s8538_s24 = smov 104   ;;  %s8539_s25 = smov 32  }
   0x9   :  { %s8541_s4 = smov [#allocation2]  }
   0xa   :  { %7969 = vmatpush3.bf16.msra.mxu1 %v7966_v22  ;;  %s6961_s5 = sshll.u32 %s8541_s4, 4  ;;  %s6962_s5 = int_to_ptr.vmem [resolvable:$true] %s6961_s5 }
   0xb   :  { %7961 = vmatpush3.bf16.msra.mxu0 %v7958_v25  ;;  %7441 = vmatprep.subr.mxu1 %v8528_v46  ;;  %s8504_s6 = scalar_lea.vmem %s6962_s5, 256  ;;  %p8509_p1 = scmp.lt.s32.totalorder %s6962_s5, %s6962_s5 }
   0xc   :  { %7426 = vmatprep.subr.mxu0 %v8528_v46  ;;  %p8505_p0 = scmp.ne.s32.totalorder %s6962_s5, %s8504_s6  ;;  %p8510_p2 = scmp.lt.s32.totalorder %s8504_s6, %s8504_s6 }
   0xe   :  { %p8511_p3 = por %p8510_p2, %p8509_p1 }
  0x10   :  { %p8512_p4 = pnand %p8511_p3, %p8505_p0 }
  0x90   :  { %v38_v4 = vpop.xlane.xlu0 %37 }
  0x91   :  { %v43_v5 = vmul.f32 0.03125, %v38_v4  ;;  %v8679_v4 = vsel %vm31_vm3, 0.0, %v8533_v3 }
  0x93   :  { %v45_v6 = vsub.f32 %v15_v0, %v43_v5 }
  0x94   :  { %v41_v7 = vpop.xlane.xlu0 %40 }
  0x95   :  { %v44_v8 = vmul.f32 0.03125, %v41_v7  ;;  %v47_v9 = vmul.f32 %v45_v6, %v45_v6 }
  0x97   :  { %v46_v10 = vsub.f32 %v16_v1, %v44_v8  ;;  %v49_v11 = vsel %vm35_vm0, %v47_v9, 0.0 }
  0x98   :  { %50 = vadd.xlane.f32.xlu1 %v49_v11 }
  0x99   :  { %v48_v12 = vmul.f32 %v46_v10, %v46_v10 }
  0x9b   :  { %v52_v13 = vsel %vm35_vm0, %v48_v12, 0.0 }
  0x9c   :  { %53 = vadd.xlane.f32.xlu1 %v52_v13 }
 0x125   :  { %v51_v26 = vpop.xlane.xlu1 %50 }
 0x126   :  { %v55_v27 = vmul.f32 0.03125, %v51_v26 }
 0x128   :  { %v57_v28 = vadd.f32 1e-05, %v55_v27 }
 0x129   :  { %v54_v29 = vpop.xlane.xlu1 %53 }
 0x12a   :  { %8334 = vrsqrt.f32 %v57_v28  ;;  %v56_v30 = vmul.f32 0.03125, %v54_v29 }
 0x12c   :  { %v58_v31 = vadd.f32 1e-05, %v56_v30 }
 0x12e   :  { %8336 = vrsqrt.f32 %v58_v31 }
 0x134   :  { %v8335_v32 = vpop.eup %8334 }
 0x135   :  { %v61_v34 = vmul.f32 %v8335_v32, %v45_v6 }
 0x137   :  { %v67_v36 = vmul.f32 %v6972_v33, %v61_v34 }
 0x138   :  { %v8337_v37 = vpop.eup %8336 }
 0x139   :  { %v62_v39 = vmul.f32 %v8337_v37, %v46_v10  ;;  %v8609_v40 = vadd.f32 %v6973_v35, %v67_v36  ;;  %v6977_v37 = vld [vmem:[%s9713_s2 + $0x1] ss:$0 sm:$0xff] }
 0x13b   :  { %v68_v41 = vmul.f32 %v6972_v33, %v62_v39  ;;  %7423 = vmatprep.mubr.msk.f32.mxu1 %vm35_vm0, %v8609_v40  ;;  %v75_v42 = vadd.f32 %v8609_v40, %v8607_v38 }
 0x13d   :  { %v8620_v44 = vadd.f32 %v6973_v35, %v68_v41  ;;  %7412 = vmatprep.mubr.msk.f32.mxu0 %vm35_vm0, %v75_v42 }
 0x13f   :  { %7424 = vmatmul.mubr.msk.f32.vlgmr.msra.gmra.mrb[0].mxu1 %vm35_vm0, %v8620_v44  ;;  %v76_v45 = vadd.f32 %v8620_v44, %v8618_v43 }
 0x140   :  { %7443 = vmatprep.mubr.msk.f32.mxu1 %vm8529_vm1, %v8528_v46 }
 0x141   :  { %7413 = vmatmul.mubr.msk.f32.vlgmr.msra.gmra.mrb[0].mxu0 %vm35_vm0, %v76_v45 }
 0x142   :  { %7428 = vmatprep.mubr.msk.f32.mxu0 %vm8529_vm1, %v8528_v46 }
 0x212   :  { %v8634_v47 = vpop.f32.mrb[0].mxu1 }
 0x213   :  { %v8639_v49 = vpop.f32.mrb[1].mxu1  ;;  %v8697_v39 = vadd.f32 %v8634_v47, %v6977_v37 }
 0x214   :  { %v7414_v50 = vpop.f32.mrb[0].mxu0  ;;  %v8702_v41 = vadd.f32 %v6977_v37, %v8639_v49 }
 0x215   :  { %v8641_v51 = vadd.f32 %v7414_v50, %v6974_v48  ;;  %v158_v52 = vpop.f32.mrb[1].mxu0 }
 0x216   :  { %v8643_v53 = vadd.f32 %v6974_v48, %v158_v52 }
 0x217   :  { %337 = vrot.lane.b32.xlu1 %v8641_v51, %s8530_s15 }
 0x218   :  { %259 = vrot.lane.b32.xlu0 %v8643_v53, %s8530_s15 }
 0x21b   :  { %515 = vrot.lane.b32.xlu1 %v8641_v51, %s8531_s16 }
 0x21c   :  { %435 = vrot.lane.b32.xlu0 %v8643_v53, %s8532_s17 }
 0x21f   :  { %437 = vrot.lane.b32.xlu1 %v8643_v53, %s8531_s16 }
 0x223   :  { %513 = vrot.lane.b32.xlu1 %v8641_v51, %s8532_s17 }
 0x289   :  { %v338_v54 = vpop.permute.xlu1 %337 }
 0x28a   :  { %v260_v55 = vpop.permute.xlu0 %259 }
 0x28b   :  { %7427 = vmatpush3.xpose.msk.msra.mxu0 %vm261_vm2, %v260_v55 }
 0x28c   :  { %7431 = vmatprep.subr.mxu0 %v8528_v46 }
 0x28d   :  { %v516_v56 = vpop.permute.xlu1 %515 }
 0x28e   :  { %7429 = vmatmul.mubr.msk.f32.vlgmr.msra.gmra.mrb[2].mxu0 %vm261_vm2, %v8643_v53  ;;  %7442 = vmatpush3.xpose.msk.msra.mxu1 %vm261_vm2, %v516_v56  ;;  %v436_v58 = vpop.permute.xlu0 %435 }
 0x28f   :  { %7432 = vmatpush3.xpose.msk.msra.mxu0 %vm261_vm2, %v338_v54  ;;  %7433 = vmatprep.mubr.msk.f32.mxu0 %vm8529_vm1, %v8528_v46 }
 0x290   :  { %7436 = vmatprep.subr.mxu0 %v8528_v46  ;;  %7451 = vmatprep.subr.mxu1 %v8528_v46 }
 0x291   :  { %v438_v57 = vpop.permute.xlu1 %437 }
 0x292   :  { %7434 = vmatmul.mubr.msk.f32.vlgmr.msra.gmra.mrb[4].mxu0 %vm261_vm2, %v8641_v51 }
 0x293   :  { %7437 = vmatpush3.xpose.msk.msra.mxu0 %vm261_vm2, %v438_v57  ;;  %7438 = vmatprep.mubr.msk.f32.mxu0 %vm8529_vm1, %v8528_v46 }
 0x294   :  { %7446 = vmatprep.subr.mxu0 %v8528_v46 }
 0x295   :  { %v514_v59 = vpop.permute.xlu1 %513 }
 0x296   :  { %7439 = vmatmul.mubr.msk.f32.vlgmr.msra.gmra.mrb[6].mxu0 %vm261_vm2, %v436_v58  ;;  %7444 = vmatmul.mubr.msk.f32.vlgmr.msra.gmra.mrb[2].mxu1 %vm261_vm2, %v514_v59 }
 0x297   :  { %7453 = vmatprep.mubr.msk.f32.mxu1 %vm8529_vm1, %v8528_v46  ;;  %7448 = vmatprep.mubr.msk.f32.mxu0 %vm8529_vm1, %v8528_v46 }
 0x361   :  { %v332_v61 = vpop.f32.mrb[2].mxu0 }
 0x362   :  { %v7430_v0 = vpop.f32.mrb[3].mxu0  ;;  %v333_v11 = vadd.f32 %v332_v61, %v8679_v4 }
 0x364   :  { %v413_v15 = vsel %vm261_vm2, %v333_v11, -inf }
 0x365   :  { %v409_v1 = vpop.f32.mrb[4].mxu0 }
 0x366   :  { %v7435_v2 = vpop.f32.mrb[5].mxu0  ;;  %v410_v14 = vadd.f32 %v409_v1, %v8679_v4 }
 0x368   :  { %v416_v16 = vsel %vm261_vm2, %v410_v14, -inf }
 0x369   :  { %v509_v5 = vpop.f32.mrb[6].mxu0  ;;  %v587_v6 = vpop.f32.mrb[2].mxu1 }
 0x36a   :  { %v510_v7 = vadd.f32 %v509_v5, %v8679_v4  ;;  %v588_v8 = vadd.f32 %v587_v6, %v8679_v4  ;;  %v7440_v9 = vpop.f32.mrb[7].mxu0  ;;  %v7445_v10 = vpop.f32.mrb[3].mxu1 }
 0x36c   :  { %v594_v12 = vsel %vm261_vm2, %v588_v8, -inf  ;;  %v591_v13 = vsel %vm261_vm2, %v510_v7, -inf }
 0x36d   :  { %595 = vmax.xlane.f32.xlu1 %v594_v12  ;;  %592 = vmax.xlane.f32.xlu0 %v591_v13 }
 0x371   :  { %414 = vmax.xlane.f32.xlu0 %v413_v15 }
 0x375   :  { %417 = vmax.xlane.f32.xlu0 %v416_v16 }
 0x3fa   :  { %v596_v17 = vpop.xlane.xlu1 %595  ;;  %v593_v18 = vpop.xlane.xlu0 %592 }
 0x3fb   :  { %v598_v19 = vsub.f32 %v588_v8, %v596_v17  ;;  %v597_v21 = vsub.f32 %v510_v7, %v593_v18 }
 0x3fd   :  { %v601_v20 = vmul.f32 1.442695, %v598_v19  ;;  %v599_v24 = vmul.f32 1.442695, %v597_v21 }
 0x3fe   :  { %v415_v22 = vpop.xlane.xlu0 %414 }
 0x3ff   :  { %8338 = vpow2.f32 %v601_v20  ;;  %v419_v23 = vsub.f32 %v333_v11, %v415_v22 }
 0x401   :  { %v421_v25 = vmul.f32 1.442695, %v419_v23 }
 0x402   :  { %v418_v26 = vpop.xlane.xlu0 %417 }
 0x403   :  { %8340 = vpow2.f32 %v421_v25  ;;  %v420_v27 = vsub.f32 %v410_v14, %v418_v26 }
 0x404   :  { %8342 = vpow2.f32 %v599_v24 }
 0x405   :  { %v423_v28 = vmul.f32 1.442695, %v420_v27 }
 0x407   :  { %8344 = vpow2.f32 %v423_v28 }
 0x409   :  { %v8339_v29 = vpop.eup %8338 }
 0x40a   :  { %v606_v30 = vsel %vm261_vm2, %v8339_v29, 0.0 }
 0x40b   :  { %607 = vadd.xlane.f32.xlu1 %v606_v30 }
 0x40d   :  { %v8341_v31 = vpop.eup %8340 }
 0x40e   :  { %v425_v32 = vsel %vm261_vm2, %v8341_v31, 0.0  ;;  %v8343_v33 = vpop.eup %8342 }
 0x40f   :  { %426 = vadd.xlane.f32.xlu0 %v425_v32  ;;  %v603_v35 = vsel %vm261_vm2, %v8343_v33, 0.0 }
 0x411   :  { %v8345_v34 = vpop.eup %8344 }
 0x412   :  { %v428_v36 = vsel %vm261_vm2, %v8345_v34, 0.0 }
 0x413   :  { %604 = vadd.xlane.f32.xlu0 %v603_v35  ;;  %429 = vadd.xlane.f32.xlu1 %v428_v36 }
 0x424   :  { %691 = vrot.lane.b32.xlu1 %v8697_v39, %s8530_s15 }
 0x428   :  { %915 = vrot.lane.b32.xlu1 %v8643_v53, %s8534_s20 }
 0x429   :  { %614 = vrot.lane.b32.xlu0 %v8702_v41, %s8530_s15 }
 0x42c   :  { %993 = vrot.lane.b32.xlu1 %v8641_v51, %s8534_s20 }
 0x42d   :  { %913 = vrot.lane.b32.xlu0 %v8643_v53, %s8535_s21 }
 0x430   :  { %991 = vrot.lane.b32.xlu1 %v8641_v51, %s8535_s21 }
 0x498   :  { %v608_v42 = vpop.xlane.xlu1 %607 }
 0x499   :  { %8346 = vrcp.f32 %v608_v42 }
 0x49c   :  { %v427_v45 = vpop.xlane.xlu0 %426 }
 0x4a0   :  { %v430_v47 = vpop.xlane.xlu1 %429  ;;  %v605_v48 = vpop.xlane.xlu0 %604 }
 0x4a1   :  { %8348 = vrcp.f32 %v430_v47 }
 0x4a2   :  { %8350 = vrcp.f32 %v605_v48 }
 0x4a3   :  { %v8347_v49 = vpop.eup %8346  ;;  %8352 = vrcp.f32 %v427_v45 }
 0x4a4   :  { %v692_v50 = vpop.permute.xlu1 %691  ;;  %v615_v52 = vpop.permute.xlu0 %614  ;;  %v612_v54 = vmul.f32 %v8347_v49, %v8339_v29 }
 0x4a5   :  { %7447 = vmatpush3.msra.mxu0 %v615_v52  ;;  %7452 = vmatpush3.msra.mxu1 %v692_v50 }
 0x4a6   :  { %7454 = vmatmul.mubr.msk.f32.vlgmr.msra.gmra.mrb[4].mxu1 %vm261_vm2, %v612_v54  ;;  %7461 = vmatprep.subr.mxu1 %v8528_v46 }
 0x4a7   :  { %7462 = vmatpush3.msra.mxu1 %v8697_v39  ;;  %7456 = vmatprep.subr.mxu0 %v8528_v46 }
 0x4a8   :  { %v916_v55 = vpop.permute.xlu1 %915  ;;  %7463 = vmatprep.mubr.msk.f32.mxu1 %vm8529_vm1, %v8528_v46  ;;  %7471 = vmatprep.subr.mxu1 %v8528_v46  ;;  %v914_v0 = vpop.permute.xlu0 %913 }
 0x4ab   :  { %v8349_v56 = vpop.eup %8348 }
 0x4ac   :  { %v8351_v57 = vpop.eup %8350  ;;  %v994_v58 = vpop.permute.xlu1 %993  ;;  %v434_v59 = vmul.f32 %v8349_v56, %v8345_v34 }
 0x4ad   :  { %v611_v60 = vmul.f32 %v8351_v57, %v8343_v33  ;;  %v8353_v61 = vpop.eup %8352 }
 0x4ae   :  { %7464 = vmatmul.mubr.msk.f32.vlgmr.msra.gmra.mrb[6].mxu1 %vm261_vm2, %v434_v59  ;;  %v433_v63 = vmul.f32 %v8353_v61, %v8341_v31 }
 0x4af   :  { %7449 = vmatmul.mubr.msk.f32.vlgmr.msra.gmra.mrb[8].mxu0 %vm261_vm2, %v611_v60  ;;  %7472 = vmatpush3.xpose.msk.msra.mxu1 %vm261_vm2, %v994_v58 }
 0x4b0   :  { %7457 = vmatpush3.msra.mxu0 %v8702_v41  ;;  %v992_v62 = vpop.permute.xlu1 %991  ;;  %7458 = vmatprep.mubr.msk.f32.mxu0 %vm8529_vm1, %v8528_v46 }
 0x4b1   :  { %7473 = vmatprep.mubr.msk.f32.mxu1 %vm8529_vm1, %v8528_v46  ;;  %7466 = vmatprep.subr.mxu0 %v8528_v46 }
 0x4b2   :  { %7474 = vmatmul.mubr.msk.f32.vlgmr.msra.gmra.mrb[8].mxu1 %vm261_vm2, %v992_v62  ;;  %7481 = vmatprep.subr.mxu1 %v8528_v46 }
 0x4b3   :  { %7459 = vmatmul.mubr.msk.f32.vlgmr.msra.gmra.mrb[10].mxu0 %vm261_vm2, %v433_v63  ;;  %7483 = vmatprep.mubr.msk.f32.mxu1 %vm8529_vm1, %v8528_v46 }
 0x4b4   :  { %7468 = vmatprep.mubr.msk.f32.mxu0 %vm8529_vm1, %v8528_v46 }
 0x4b7   :  { %7467 = vmatpush3.xpose.msk.msra.mxu0 %vm261_vm2, %v916_v55 }
 0x4b8   :  { %7476 = vmatprep.subr.mxu0 %v8528_v46 }
 0x4ba   :  { %7469 = vmatmul.mubr.msk.f32.vlgmr.msra.gmra.mrb[12].mxu0 %vm261_vm2, %v914_v0 }
 0x4bb   :  { %7478 = vmatprep.mubr.msk.f32.mxu0 %vm8529_vm1, %v8528_v46 }
 0x579   :  { %v763_v1 = vpop.f32.mrb[4].mxu1 }
 0x57a   :  { %v7455_v2 = vpop.f32.mrb[5].mxu1 }
 0x581   :  { %v909_v3 = vpop.f32.mrb[6].mxu1 }
 0x582   :  { %v686_v5 = vpop.f32.mrb[8].mxu0  ;;  %v8742_v6 = vadd.f32 %v909_v3, %v763_v1  ;;  %v7465_v7 = vpop.f32.mrb[7].mxu1 }
 0x583   :  { %v7450_v8 = vpop.f32.mrb[9].mxu0 }
 0x585   :  { %v1065_v9 = vpop.f32.mrb[8].mxu1 }
 0x586   :  { %v836_v10 = vpop.f32.mrb[10].mxu0  ;;  %v1066_v11 = vadd.f32 %v1065_v9, %v8679_v4  ;;  %v7475_v12 = vpop.f32.mrb[9].mxu1 }
 0x587   :  { %v8745_v13 = vadd.f32 %v836_v10, %v686_v5  ;;  %v7460_v14 = vpop.f32.mrb[11].mxu0 }
 0x588   :  { %v1072_v15 = vsel %vm261_vm2, %v1066_v11, -inf }
 0x589   :  { %1073 = vmax.xlane.f32.xlu1 %v1072_v15 }
 0x58d   :  { %v987_v16 = vpop.f32.mrb[12].mxu0 }
 0x58e   :  { %v988_v17 = vadd.f32 %v987_v16, %v8679_v4  ;;  %v7470_v18 = vpop.f32.mrb[13].mxu0 }
 0x590   :  { %v1069_v19 = vsel %vm261_vm2, %v988_v17, -inf }
 0x591   :  { %1070 = vmax.xlane.f32.xlu0 %v1069_v19 }
 0x59a   :  { %1167 = vrot.lane.b32.xlu1 %v8697_v39, %s8536_s22 }
 0x59e   :  { %1247 = vrot.lane.b32.xlu1 %v8643_v53, %s8537_s23 }
 0x5a2   :  { %1325 = vrot.lane.b32.xlu1 %v8641_v51, %s8537_s23 }
 0x5a6   :  { %1323 = vrot.lane.b32.xlu1 %v8641_v51, %s8538_s24 }
 0x5a7   :  { %1091 = vrot.lane.b32.xlu0 %v8702_v41, %s8536_s22 }
 0x616   :  { %v1074_v20 = vpop.xlane.xlu1 %1073 }
 0x617   :  { %v1076_v21 = vsub.f32 %v1066_v11, %v1074_v20 }
 0x619   :  { %v1079_v22 = vmul.f32 1.442695, %v1076_v21 }
 0x61a   :  { %v1168_v23 = vpop.permute.xlu1 %1167 }
 0x61b   :  { %8354 = vpow2.f32 %v1079_v22  ;;  %7482 = vmatpush3.msra.mxu1 %v1168_v23 }
 0x61c   :  { %7491 = vmatprep.subr.mxu1 %v8528_v46 }
 0x61e   :  { %v1071_v24 = vpop.xlane.xlu0 %1070  ;;  %v1248_v32 = vpop.permute.xlu1 %1247 }
 0x61f   :  { %v1075_v25 = vsub.f32 %v988_v17, %v1071_v24  ;;  %v7004_v17 = vld [vmem:[%s9713_s2 + $0x2] ss:$0 sm:$0xff] }
 0x621   :  { %v1077_v26 = vmul.f32 1.442695, %v1075_v25 }
 0x622   :  { %v1092_v27 = vpop.permute.xlu0 %1091  ;;  %v1326_v35 = vpop.permute.xlu1 %1325 }
 0x623   :  { %8356 = vpow2.f32 %v1077_v26  ;;  %7477 = vmatpush3.msra.mxu0 %v1092_v27 }
 0x624   :  { %7486 = vmatprep.subr.mxu0 %v8528_v46 }
 0x625   :  { %v8355_v51 = vpop.eup %8354 }
 0x626   :  { %v1084_v28 = vsel %vm261_vm2, %v8355_v51, 0.0  ;;  %v1324_v37 = vpop.permute.xlu1 %1323 }
 0x627   :  { %1085 = vadd.xlane.f32.xlu0 %v1084_v28 }
 0x62d   :  { %v8357_v29 = vpop.eup %8356 }
 0x62e   :  { %v1081_v30 = vsel %vm261_vm2, %v8357_v29, 0.0 }
 0x62f   :  { %1082 = vadd.xlane.f32.xlu0 %v1081_v30 }
 0x645   :  { %1245 = vrot.lane.b32.xlu0 %v8643_v53, %s8538_s24 }
 0x6b4   :  { %v1086_v31 = vpop.xlane.xlu0 %1085 }
 0x6b5   :  { %8358 = vrcp.f32 %v1086_v31 }
 0x6bc   :  { %v1083_v33 = vpop.xlane.xlu0 %1082 }
 0x6bd   :  { %8360 = vrcp.f32 %v1083_v33 }
 0x6bf   :  { %v8359_v34 = vpop.eup %8358 }
 0x6c0   :  { %v1090_v36 = vmul.f32 %v8359_v34, %v8355_v51  ;;  %v1246_v45 = vpop.permute.xlu0 %1245 }
 0x6c2   :  { %7484 = vmatmul.mubr.msk.f32.vlgmr.msra.gmra.mrb[10].mxu1 %vm261_vm2, %v1090_v36 }
 0x6c3   :  { %7492 = vmatpush3.xpose.msk.msra.mxu1 %vm261_vm2, %v1326_v35  ;;  %7493 = vmatprep.mubr.msk.f32.mxu1 %vm8529_vm1, %v8528_v46 }
 0x6c4   :  { %7501 = vmatprep.subr.mxu1 %v8528_v46 }
 0x6c6   :  { %7494 = vmatmul.mubr.msk.f32.vlgmr.msra.gmra.mrb[12].mxu1 %vm261_vm2, %v1324_v37  ;;  %v1628_v37 = vld [vmem:[%s9712_s1 + $0x48] sm:$0xff] }
 0x6c7   :  { %v8361_v53 = vpop.eup %8360  ;;  %7503 = vmatprep.mubr.msk.f32.mxu1 %vm8529_vm1, %v8528_v46 }
 0x6c8   :  { %v1089_v42 = vmul.f32 %v8361_v53, %v8357_v29  ;;  %v1629_v53 = vld [vmem:[%s9712_s1 + $0x50] sm:$0xff] }
 0x6ca   :  { %7479 = vmatmul.mubr.msk.f32.vlgmr.msra.gmra.mrb[14].mxu0 %vm261_vm2, %v1089_v42 }
 0x6cb   :  { %7487 = vmatpush3.xpose.msk.msra.mxu0 %vm261_vm2, %v1248_v32  ;;  %7488 = vmatprep.mubr.msk.f32.mxu0 %vm8529_vm1, %v8528_v46 }
 0x6cc   :  { %7496 = vmatprep.subr.mxu0 %v8528_v46 }
 0x6ce   :  { %7489 = vmatmul.mubr.msk.f32.vlgmr.msra.gmra.mrb[16].mxu0 %vm261_vm2, %v1246_v45  ;;  %v1630_v45 = vld [vmem:[%s9712_s1 + $0x58] sm:$0xff] }
 0x6cf   :  { %7498 = vmatprep.mubr.msk.f32.mxu0 %vm8529_vm1, %v8528_v46 }
 0x795   :  { %v1239_v47 = vpop.f32.mrb[10].mxu1 }
 0x796   :  { %v1244_v48 = vadd.f32 %v1239_v47, %v8742_v6  ;;  %v7485_v49 = vpop.f32.mrb[11].mxu1  ;;  %v7974_v47 = vpack.c.bf16 %v1630_v45, %v1629_v53 }
 0x799   :  { %v1397_v50 = vpop.f32.mrb[12].mxu1 }
 0x79a   :  { %v1398_v52 = vadd.f32 %v1397_v50, %v8679_v4  ;;  %v7495_v54 = vpop.f32.mrb[13].mxu1 }
 0x79c   :  { %v1404_v55 = vsel %vm261_vm2, %v1398_v52, -inf }
 0x79d   :  { %v1163_v56 = vpop.f32.mrb[14].mxu0  ;;  %1405 = vmax.xlane.f32.xlu1 %v1404_v55 }
 0x79e   :  { %v1243_v57 = vadd.f32 %v1163_v56, %v8745_v13  ;;  %v7480_v58 = vpop.f32.mrb[15].mxu0 }
 0x79f   :  { %v7005_v58 = vld [vmem:[%s9713_s2 + $0x8] ss:$0 sm:$0xff] }
 0x7a1   :  { %v1319_v59 = vpop.f32.mrb[16].mxu0 }
 0x7a2   :  { %v1320_v60 = vadd.f32 %v1319_v59, %v8679_v4  ;;  %v7490_v61 = vpop.f32.mrb[17].mxu0 }
 0x7a3   :  { %v7006_v61 = vld [vmem:[%s9713_s2 + $0x9] ss:$0 sm:$0xff] }
 0x7a4   :  { %v1401_v62 = vsel %vm261_vm2, %v1320_v60, -inf }
 0x7a5   :  { %1402 = vmax.xlane.f32.xlu0 %v1401_v62 }
 0x7ae   :  { %1499 = vrot.lane.b32.xlu1 %v8697_v39, %s8539_s25 }
 0x82a   :  { %v1406_v63 = vpop.xlane.xlu1 %1405 }
 0x82b   :  { %v1408_v0 = vsub.f32 %v1398_v52, %v1406_v63 }
 0x82d   :  { %v1411_v1 = vmul.f32 1.442695, %v1408_v0 }
 0x82e   :  { %v1500_v2 = vpop.permute.xlu1 %1499 }
 0x82f   :  { %8362 = vpow2.f32 %v1411_v1  ;;  %7502 = vmatpush3.msra.mxu1 %v1500_v2 }
 0x832   :  { %v1403_v3 = vpop.xlane.xlu0 %1402 }
 0x833   :  { %v1407_v5 = vsub.f32 %v1320_v60, %v1403_v3 }
 0x835   :  { %v1409_v6 = vmul.f32 1.442695, %v1407_v5  ;;  %v23_v5 = vld [vmem:[%s9711_s0 + $0x40] sm:$0xff] }
 0x837   :  { %8364 = vpow2.f32 %v1409_v6  ;;  %v24_v6 = vld [vmem:[%s9711_s0 + $0x48] sm:$0xff] }
 0x839   :  { %v8363_v7 = vpop.eup %8362 }
 0x83a   :  { %v1416_v8 = vsel %vm261_vm2, %v8363_v7, 0.0 }
 0x83b   :  { %1417 = vadd.xlane.f32.xlu0 %v1416_v8  ;;  %v1750_v8 = vld [vmem:[%s9712_s1 + $0x68] sm:$0xff] }
 0x841   :  { %v8365_v9 = vpop.eup %8364 }
 0x842   :  { %v1413_v10 = vsel %vm261_vm2, %v8365_v9, 0.0 }
 0x843   :  { %1414 = vadd.xlane.f32.xlu0 %v1413_v10 }
 0x859   :  { %1423 = vrot.lane.b32.xlu0 %v8702_v41, %s8539_s25 }
 0x8c8   :  { %v1418_v39 = vpop.xlane.xlu0 %1417 }
 0x8c9   :  { %8366 = vrcp.f32 %v1418_v39  ;;  %v1752_v39 = vld [vmem:[%s9712_s1 + $0x78] sm:$0xff] }
 0x8d0   :  { %v1415_v11 = vpop.xlane.xlu0 %1414 }
 0x8d1   :  { %8368 = vrcp.f32 %v1415_v11 }
 0x8d3   :  { %v8367_v12 = vpop.eup %8366 }
 0x8d4   :  { %v1424_v13 = vpop.permute.xlu0 %1423  ;;  %v1422_v14 = vmul.f32 %v8367_v12, %v8363_v7  ;;  %v1749_v7 = vld [vmem:[%s9712_s1 + $0x60] sm:$0xff] }
 0x8d5   :  { %7497 = vmatpush3.msra.mxu0 %v1424_v13  ;;  %v7978_v10 = vpack.c.bf16 %v1750_v8, %v1749_v7  ;;  %v19_v12 = vld [vmem:[%s9711_s0 + $0x20] sm:$0xff]  ;;  %v20_v13 = vld [vmem:[%s9711_s0 + $0x28] sm:$0xff] }
 0x8d6   :  { %7504 = vmatmul.mubr.msk.f32.vlgmr.msra.gmra.mrb[14].mxu1 %vm261_vm2, %v1422_v14 }
 0x8d7   :  { %7979 = vmatprep.subr.bf16.mxu1 %v7978_v10  ;;  %7531 = vmatprep.mubr.msk.f32.mxu1 %vm35_vm0, %v19_v12 }
 0x8d8   :  { %7981 = vmatpush3.bf16.msra.mxu1 %v7978_v10 }
 0x8db   :  { %v8369_v15 = vpop.eup %8368 }
 0x8dc   :  { %v1421_v16 = vmul.f32 %v8369_v15, %v8365_v9  ;;  %v1751_v9 = vld [vmem:[%s9712_s1 + $0x70] sm:$0xff]  ;;  %v8540_v15 = vmov 0.0|0.0  }
 0x8dd   :  { %v7982_v11 = vpack.c.bf16 %v1752_v39, %v1751_v9 }
 0x8de   :  { %7499 = vmatmul.mubr.msk.f32.vlgmr.msra.gmra.mrb[18].mxu0 %vm261_vm2, %v1421_v16 }
 0x8df   :  { %7983 = vmatprep.subr.bf16.mxu1 %v7982_v11 }
 0x8e0   :  { %7985 = vmatpush3.bf16.msra.mxu1 %v7982_v11 }
 0x8e1   :  { %7986 = vmatprep.subr.bf16.mxu1 %v8540_v15 }
 0x8e3   :  { %7532 = vmatmul.mubr.msk.f32.vlgmr.msra.gmra.mrb[16].mxu1 %vm35_vm0, %v20_v13 }
 0x9a9   :  { %v1571_v18 = vpop.f32.mrb[14].mxu1 }
 0x9aa   :  { %v1576_v41 = vadd.f32 %v1571_v18, %v1244_v48  ;;  %v7505_v19 = vpop.f32.mrb[15].mxu1  ;;  %v22_v18 = vld [vmem:[%s9711_s0 + $0x38] sm:$0xff] }
 0x9ac   :  { %v1582_v20 = vadd.f32 %v7004_v17, %v1576_v41  ;;  %v7007_v41 = vld [vmem:[%s9713_s2 + $0x3] ss:$0 sm:$0xff] }
 0x9ae   :  { %v1584_v21 = vadd.f32 %v1582_v20, %v8620_v44 }
 0x9b0   :  { %v1590_v22 = vsel %vm35_vm0, %v1584_v21, 0.0 }
 0x9b1   :  { %v1495_v23 = vpop.f32.mrb[18].mxu0  ;;  %1591 = vadd.xlane.f32.xlu0 %v1590_v22 }
 0x9b2   :  { %v1575_v24 = vadd.f32 %v1495_v23, %v1243_v57  ;;  %v7500_v25 = vpop.f32.mrb[19].mxu0 }
 0x9b4   :  { %v1581_v26 = vadd.f32 %v7004_v17, %v1575_v24  ;;  %v21_v17 = vld [vmem:[%s9711_s0 + $0x30] sm:$0xff] }
 0x9b5   :  { %7534 = vmatprep.mubr.msk.f32.mxu1 %vm35_vm0, %v21_v17 }
 0x9b6   :  { %v1583_v27 = vadd.f32 %v1581_v26, %v8609_v40  ;;  %v1627_v40 = vld [vmem:[%s9712_s1 + $0x40] sm:$0xff]  ;;  %7535 = vmatmul.mubr.msk.f32.gmra.mrb[18].mxu1 %vm35_vm0, %v22_v18 }
 0x9b7   :  { %v7970_v42 = vpack.c.bf16 %v1628_v37, %v1627_v40  ;;  %7541 = vmatprep.mubr.msk.f32.mxu1 %vm8529_vm1, %v8528_v46 }
 0x9b8   :  { %v1587_v51 = vsel %vm35_vm0, %v1583_v27, 0.0 }
 0x9b9   :  { %1588 = vadd.xlane.f32.xlu1 %v1587_v51  ;;  %7971 = vmatprep.subr.bf16.mxu0 %v7970_v42 }
 0x9ba   :  { %7973 = vmatpush3.bf16.msra.mxu0 %v7970_v42 }
 0x9bb   :  { %7975 = vmatprep.subr.bf16.mxu0 %v7974_v47 }
 0x9be   :  { %7977 = vmatpush3.bf16.msra.mxu0 %v7974_v47 }
 0x9bf   :  { %7990 = vmatprep.subr.bf16.mxu0 %v8540_v15 }
 0xa3e   :  { %v1592_v28 = vpop.xlane.xlu0 %1591 }
 0xa3f   :  { %v1594_v29 = vmul.f32 0.03125, %v1592_v28 }
 0xa41   :  { %v1596_v30 = vsub.f32 %v1584_v21, %v1594_v29 }
 0xa43   :  { %v1598_v31 = vmul.f32 %v1596_v30, %v1596_v30 }
 0xa45   :  { %v1602_v32 = vsel %vm35_vm0, %v1598_v31, 0.0 }
 0xa46   :  { %v1589_v33 = vpop.xlane.xlu1 %1588  ;;  %1603 = vadd.xlane.f32.xlu1 %v1602_v32 }
 0xa47   :  { %v1593_v44 = vmul.f32 0.03125, %v1589_v33 }
 0xa49   :  { %v1595_v34 = vsub.f32 %v1583_v27, %v1593_v44 }
 0xa4b   :  { %v1597_v35 = vmul.f32 %v1595_v34, %v1595_v34 }
 0xa4d   :  { %v1599_v36 = vsel %vm35_vm0, %v1597_v35, 0.0 }
 0xa4e   :  { %1600 = vadd.xlane.f32.xlu0 %v1599_v36 }
 0xad3   :  { %v1604_v48 = vpop.xlane.xlu1 %1603 }
 0xad4   :  { %v1606_v49 = vmul.f32 0.03125, %v1604_v48 }
 0xad6   :  { %v1608_v50 = vadd.f32 1e-05, %v1606_v49 }
 0xad8   :  { %8370 = vrsqrt.f32 %v1608_v50 }
 0xadb   :  { %v1601_v52 = vpop.xlane.xlu0 %1600 }
 0xadc   :  { %v1605_v54 = vmul.f32 0.03125, %v1601_v52 }
 0xade   :  { %v1607_v55 = vadd.f32 1e-05, %v1605_v54 }
 0xae0   :  { %8372 = vrsqrt.f32 %v1607_v55  ;;  %v7014_v55 = vld [vmem:[%s9713_s2 + $0x4] ss:$0 sm:$0xff] }
 0xae2   :  { %v8371_v56 = vpop.eup %8370 }
 0xae3   :  { %v1612_v57 = vmul.f32 %v8371_v56, %v1596_v30  ;;  %v7533_v56 = vpop.f32.mrb[16].mxu1 }
 0xae5   :  { %v1618_v60 = vmul.f32 %v7005_v58, %v1612_v57  ;;  %v8941_v57 = vadd.f32 %v7533_v56, %v7014_v55 }
 0xae7   :  { %v8823_v0 = vadd.f32 %v7006_v61, %v1618_v60 }
 0xae9   :  { %v1626_v3 = vadd.f32 %v8823_v0, %v8618_v43  ;;  %v26_v43 = vld [vmem:[%s9711_s0 + $0x58] sm:$0xff] }
 0xaea   :  { %v8373_v59 = vpop.eup %8372 }
 0xaeb   :  { %v1611_v62 = vmul.f32 %v8373_v59, %v1595_v34 }
 0xaed   :  { %v1617_v63 = vmul.f32 %v7005_v58, %v1611_v62  ;;  %v1836_v58 = vpop.f32.mrb[17].mxu1 }
 0xaee   :  { %v8943_v59 = vadd.f32 %v7014_v55, %v1836_v58  ;;  %v7536_v60 = vpop.f32.mrb[18].mxu1 }
 0xaef   :  { %v8825_v1 = vadd.f32 %v7006_v61, %v1617_v63  ;;  %v8951_v63 = vadd.f32 %v7536_v60, %v7014_v55 }
 0xaf0   :  { %v8947_v61 = vpack.i.bf16 %v8941_v57, %v8943_v59  ;;  %v8009_v62 = vpack.c.bf16 %v8941_v57, %v8943_v59 }
 0xaf1   :  { %v1625_v2 = vadd.f32 %v8825_v1, %v8607_v38  ;;  %v25_v38 = vld [vmem:[%s9711_s0 + $0x50] sm:$0xff] }
 0xaf3   :  { %7514 = vmatprep.mubr.msk.f32.mxu0 %vm35_vm0, %v1625_v2  ;;  %v1846_v2 = vpop.f32.mrb[19].mxu1 }
 0xaf4   :  { %7515 = vmatmul.mubr.msk.f32.vlgmr.msra.gmra.mrb[20].mxu0 %vm35_vm0, %v1626_v3  ;;  %v8953_v3 = vadd.f32 %v7014_v55, %v1846_v2 }
 0xaf5   :  { %7517 = vmatprep.mubr.msk.f32.mxu0 %vm35_vm0, %v23_v5 }
 0xaf6   :  { %v8957_v5 = vpack.i.bf16 %v8951_v63, %v8953_v3 }
 0xaf8   :  { %7518 = vmatmul.mubr.msk.f32.gmra.mrb[22].mxu0 %vm35_vm0, %v24_v6  ;;  %v8012_v6 = vpack.c.bf16 %v8951_v63, %v8953_v3 }
 0xaf9   :  { %7520 = vmatprep.mubr.msk.f32.mxu0 %vm35_vm0, %v25_v38 }
 0xafc   :  { %7521 = vmatmul.mubr.msk.f32.gmra.mrb[24].mxu0 %vm35_vm0, %v26_v43 }
 0xafd   :  { %7548 = vmatprep.mubr.msk.f32.mxu0 %vm8529_vm1, %v8528_v46 }
 0xbc7   :  { %v7516_v14 = vpop.f32.mrb[20].mxu0 }
 0xbc8   :  { %v1720_v16 = vpop.f32.mrb[21].mxu0  ;;  %v8902_v29 = vadd.f32 %v7516_v14, %v7007_v41 }
 0xbc9   :  { %v8890_v51 = vadd.f32 %v7007_v41, %v1720_v16 }
 0xbcb   :  { %v7519_v19 = vpop.f32.mrb[22].mxu0 }
 0xbcc   :  { %v1736_v20 = vadd.f32 %v7519_v19, %v7007_v41  ;;  %v1730_v21 = vpop.f32.mrb[23].mxu0 }
 0xbcd   :  { %v1731_v22 = vadd.f32 %v7007_v41, %v1730_v21 }
 0xbcf   :  { %v7522_v23 = vpop.f32.mrb[24].mxu0  ;;  %v8886_v24 = vpack.i.bf16 %v1736_v20, %v1731_v22 }
 0xbd0   :  { %v1746_v25 = vadd.f32 %v7522_v23, %v7007_v41  ;;  %v1740_v26 = vpop.f32.mrb[25].mxu0 }
 0xbd1   :  { %v1741_v27 = vadd.f32 %v7007_v41, %v1740_v26  ;;  %8195 = vrot.lane.b32.xlu0 %v8886_v24, %s8530_s15 }
 0xbd3   :  { %v8892_v28 = vpack.i.bf16 %v1746_v25, %v1741_v27 }
 0xbd5   :  { %8200 = vrot.lane.b32.xlu1 %v8892_v28, %s8530_s15  ;;  %2045 = vrot.lane.b32.xlu0 %v8890_v51, %s8532_s17 }
 0xbd9   :  { %8205 = vrot.lane.b32.xlu1 %v8886_v24, %s8531_s16 }
 0xbdd   :  { %8210 = vrot.lane.b32.xlu1 %v8892_v28, %s8531_s16 }
 0xbe1   :  { %2127 = vrot.lane.b32.xlu1 %v8902_v29, %s8532_s17 }
 0xc43   :  { %v8196_v30 = vpop.permute.xlu0 %8195 }
 0xc44   :  { %v8198_v31 = vunpack.i.h.bf16 %v8196_v30  ;;  %v8197_v32 = vunpack.i.l.bf16 %v8196_v30 }
 0xc46   :  { %v7987_v44 = vpack.c.bf16 %v8198_v31, %v8197_v32 }
 0xc47   :  { %v8201_v34 = vpop.permute.xlu1 %8200  ;;  %v2046_v52 = vpop.permute.xlu0 %2045 }
 0xc48   :  { %v8203_v35 = vunpack.i.h.bf16 %v8201_v34  ;;  %v8202_v36 = vunpack.i.l.bf16 %v8201_v34  ;;  %7989 = vmatpush3.bf16.xpose.msk.msra.mxu1 %vm8908_vm4, %v7987_v44 }
 0xc49   :  { %7994 = vmatprep.subr.bf16.mxu1 %v8540_v15 }
 0xc4a   :  { %v7991_v40 = vpack.c.bf16 %v8203_v35, %v8202_v36 }
 0xc4b   :  { %v8206_v37 = vpop.permute.xlu1 %8205 }
 0xc4c   :  { %v8208_v53 = vunpack.i.h.bf16 %v8206_v37  ;;  %v8207_v42 = vunpack.i.l.bf16 %v8206_v37  ;;  %7993 = vmatpush3.bf16.xpose.msk.msra.mxu0 %vm8908_vm4, %v7991_v40 }
 0xc4d   :  { %7998 = vmatprep.subr.bf16.mxu0 %v8540_v15 }
 0xc4e   :  { %v7995_v45 = vpack.c.bf16 %v8208_v53, %v8207_v42 }
 0xc4f   :  { %v8211_v47 = vpop.permute.xlu1 %8210  ;;  %7542 = vmatmul.mubr.msk.f32.vlgmr.msra.gmra.mrb[20].mxu1 %vm261_vm2, %v8890_v51 }
 0xc50   :  { %v8213_v48 = vunpack.i.h.bf16 %v8211_v47  ;;  %v8212_v49 = vunpack.i.l.bf16 %v8211_v47  ;;  %7997 = vmatpush3.bf16.xpose.msk.msra.mxu1 %vm8908_vm4, %v7995_v45  ;;  %7555 = vmatprep.mubr.msk.f32.mxu1 %vm8529_vm1, %v8528_v46 }
 0xc51   :  { %8002 = vmatprep.subr.bf16.mxu1 %v8540_v15 }
 0xc52   :  { %v7999_v50 = vpack.c.bf16 %v8213_v48, %v8212_v49 }
 0xc53   :  { %7549 = vmatmul.mubr.msk.f32.vlgmr.msra.gmra.mrb[26].mxu0 %vm261_vm2, %v8902_v29  ;;  %v2128_v54 = vpop.permute.xlu1 %2127 }
 0xc54   :  { %8001 = vmatpush3.bf16.xpose.msk.msra.mxu0 %vm8908_vm4, %v7999_v50  ;;  %7562 = vmatprep.mubr.msk.f32.mxu0 %vm8529_vm1, %v8528_v46 }
 0xc55   :  { %8005 = vmatprep.subr.bf16.mxu0 %v8540_v15 }
 0xc57   :  { %7556 = vmatmul.mubr.msk.f32.vlgmr.msra.gmra.mrb[22].mxu1 %vm261_vm2, %v2046_v52 }
 0xc58   :  { %7569 = vmatprep.mubr.msk.f32.mxu1 %vm8529_vm1, %v8528_v46 }
 0xc5b   :  { %7563 = vmatmul.mubr.msk.f32.vlgmr.msra.gmra.mrb[28].mxu0 %vm261_vm2, %v2128_v54 }
 0xc5c   :  { %7576 = vmatprep.mubr.msk.f32.mxu0 %vm8529_vm1, %v8528_v46 }
 0xd22   :  { %v1935_v38 = vpop.f32.mrb[20].mxu1 }
 0xd23   :  { %v7543_v43 = vpop.f32.mrb[21].mxu1  ;;  %v2023_v14 = vsel %vm2022_vm5, %v1935_v38, -inf }
 0xd26   :  { %v2018_v7 = vpop.f32.mrb[26].mxu0 }
 0xd27   :  { %v7550_v8 = vpop.f32.mrb[27].mxu0  ;;  %v2026_v16 = vsel %vm2022_vm5, %v2018_v7, -inf }
 0xd2a   :  { %v2123_v9 = vpop.f32.mrb[22].mxu1 }
 0xd2b   :  { %v7557_v10 = vpop.f32.mrb[23].mxu1  ;;  %v2209_v39 = vsel %vm2022_vm5, %v2123_v9, -inf }
 0xd2c   :  { %2210 = vmax.xlane.f32.xlu0 %v2209_v39 }
 0xd2e   :  { %v2205_v11 = vpop.f32.mrb[28].mxu0 }
 0xd2f   :  { %v7564_v12 = vpop.f32.mrb[29].mxu0  ;;  %v2212_v13 = vsel %vm2022_vm5, %v2205_v11, -inf }
 0xd30   :  { %2213 = vmax.xlane.f32.xlu1 %v2212_v13  ;;  %2024 = vmax.xlane.f32.xlu0 %v2023_v14 }
 0xd34   :  { %2027 = vmax.xlane.f32.xlu0 %v2026_v16 }
 0xdb9   :  { %v2211_v17 = vpop.xlane.xlu0 %2210 }
 0xdba   :  { %v2215_v18 = vsub.f32 %v2123_v9, %v2211_v17 }
 0xdbc   :  { %v2217_v21 = vmul.f32 1.442695, %v2215_v18 }
 0xdbd   :  { %v2025_v41 = vpop.xlane.xlu0 %2024  ;;  %v2214_v34 = vpop.xlane.xlu1 %2213 }
 0xdbe   :  { %v2029_v19 = vsub.f32 %v1935_v38, %v2025_v41  ;;  %v2216_v35 = vsub.f32 %v2205_v11, %v2214_v34 }
 0xdc0   :  { %v2031_v20 = vmul.f32 1.442695, %v2029_v19  ;;  %v2219_v36 = vmul.f32 1.442695, %v2216_v35 }
 0xdc1   :  { %v2028_v22 = vpop.xlane.xlu0 %2027 }
 0xdc2   :  { %v2030_v23 = vsub.f32 %v2018_v7, %v2028_v22  ;;  %8374 = vpow2.f32 %v2031_v20 }
 0xdc3   :  { %8376 = vpow2.f32 %v2217_v21 }
 0xdc4   :  { %v2033_v25 = vmul.f32 1.442695, %v2030_v23 }
 0xdc6   :  { %8378 = vpow2.f32 %v2033_v25 }
 0xdc7   :  { %8380 = vpow2.f32 %v2219_v36 }
 0xdcc   :  { %v8375_v26 = vpop.eup %8374 }
 0xdcd   :  { %v2035_v27 = vsel %vm2022_vm5, %v8375_v26, 0.0  ;;  %v8377_v30 = vpop.eup %8376 }
 0xdce   :  { %2036 = vadd.xlane.f32.xlu0 %v2035_v27  ;;  %v2221_v44 = vsel %vm2022_vm5, %v8377_v30, 0.0 }
 0xdd0   :  { %v8966_v31 = vpop.eup %8378 }
 0xdd1   :  { %v2038_v32 = vsel %vm2022_vm5, %v8966_v31, 0.0  ;;  %v8381_v40 = vpop.eup %8380 }
 0xdd2   :  { %2039 = vadd.xlane.f32.xlu1 %v2038_v32  ;;  %2222 = vadd.xlane.f32.xlu0 %v2221_v44  ;;  %v2224_v37 = vsel %vm2022_vm5, %v8381_v40, 0.0 }
 0xde3   :  { %8220 = vrot.lane.b32.xlu1 %v8957_v5, %s8530_s15 }
 0xde7   :  { %8225 = vrot.lane.b32.xlu1 %v8886_v24, %s8534_s20 }
 0xde8   :  { %8215 = vrot.lane.b32.xlu0 %v8947_v61, %s8530_s15 }
 0xdec   :  { %2539 = vrot.lane.b32.xlu0 %v8890_v51, %s8535_s21 }
 0xe0b   :  { %2225 = vadd.xlane.f32.xlu1 %v2224_v37 }
 0xe1c   :  { %8230 = vrot.lane.b32.xlu1 %v8892_v28, %s8534_s20 }
 0xe20   :  { %2621 = vrot.lane.b32.xlu1 %v8902_v29, %s8535_s21 }
 0xe5b   :  { %v2037_v53 = vpop.xlane.xlu0 %2036 }
 0xe5f   :  { %v2040_v42 = vpop.xlane.xlu1 %2039  ;;  %v2223_v45 = vpop.xlane.xlu0 %2222 }
 0xe60   :  { %8382 = vrcp.f32 %v2223_v45 }
 0xe61   :  { %8384 = vrcp.f32 %v2037_v53 }
 0xe63   :  { %v8221_v47 = vpop.permute.xlu1 %8220  ;;  %v8216_v50 = vpop.permute.xlu0 %8215 }
 0xe64   :  { %v8223_v48 = vunpack.i.h.bf16 %v8221_v47  ;;  %v8222_v49 = vunpack.i.l.bf16 %v8221_v47  ;;  %v8218_v52 = vunpack.i.h.bf16 %v8216_v50  ;;  %v8217_v54 = vunpack.i.l.bf16 %v8216_v50 }
 0xe66   :  { %v8006_v55 = vpack.c.bf16 %v8223_v48, %v8222_v49  ;;  %v8003_v56 = vpack.c.bf16 %v8218_v52, %v8217_v54 }
 0xe67   :  { %v8226_v38 = vpop.permute.xlu1 %8225  ;;  %v2540_v57 = vpop.permute.xlu0 %2539 }
 0xe68   :  { %8007 = vmatpush3.bf16.msra.mxu0 %v8006_v55  ;;  %8004 = vmatpush3.bf16.msra.mxu1 %v8003_v56  ;;  %v8228_v7 = vunpack.i.h.bf16 %v8226_v38  ;;  %v8227_v8 = vunpack.i.l.bf16 %v8226_v38 }
 0xe69   :  { %8011 = vmatprep.subr.bf16.mxu0 %v8540_v15  ;;  %8008 = vmatprep.subr.bf16.mxu1 %v8540_v15 }
 0xe6a   :  { %v8383_v58 = vpop.eup %8382  ;;  %v8015_v9 = vpack.c.bf16 %v8228_v7, %v8227_v8 }
 0xe6b   :  { %v2229_v60 = vmul.f32 %v8383_v58, %v8377_v30  ;;  %v8385_v2 = vpop.eup %8384 }
 0xe6c   :  { %v2043_v43 = vmul.f32 %v8385_v2, %v8375_v26 }
 0xe6d   :  { %7570 = vmatmul.mubr.msk.f32.vlgmr.msra.gmra.mrb[24].mxu1 %vm2022_vm5, %v2229_v60 }
 0xe6e   :  { %8010 = vmatpush3.bf16.msra.mxu1 %v8009_v62  ;;  %7583 = vmatprep.mubr.msk.f32.mxu1 %vm8529_vm1, %v8528_v46 }
 0xe6f   :  { %8014 = vmatprep.subr.bf16.mxu1 %v8540_v15 }
 0xe71   :  { %7584 = vmatmul.mubr.msk.f32.vlgmr.msra.gmra.mrb[26].mxu1 %vm2022_vm5, %v2043_v43 }
 0xe72   :  { %7597 = vmatprep.mubr.msk.f32.mxu1 %vm8529_vm1, %v8528_v46 }
 0xe77   :  { %8017 = vmatpush3.bf16.xpose.msk.msra.mxu1 %vm8908_vm4, %v8015_v9 }
 0xe78   :  { %8022 = vmatprep.subr.bf16.mxu1 %v8540_v15 }
 0xe7e   :  { %7598 = vmatmul.mubr.msk.f32.vlgmr.msra.gmra.mrb[28].mxu1 %vm261_vm2, %v2540_v57 }
 0xe7f   :  { %7611 = vmatprep.mubr.msk.f32.mxu1 %vm8529_vm1, %v8528_v46 }
 0xe98   :  { %v2226_v59 = vpop.xlane.xlu1 %2225 }
 0xe99   :  { %8386 = vrcp.f32 %v2226_v59 }
 0xe9a   :  { %8388 = vrcp.f32 %v2040_v42 }
 0xe9c   :  { %v8231_v11 = vpop.permute.xlu1 %8230 }
 0xe9d   :  { %v8233_v13 = vunpack.i.h.bf16 %v8231_v11  ;;  %v8232_v14 = vunpack.i.l.bf16 %v8231_v11 }
 0xe9f   :  { %v8019_v16 = vpack.c.bf16 %v8233_v13, %v8232_v14 }
 0xea0   :  { %v2622_v63 = vpop.permute.xlu1 %2621 }
 0xea3   :  { %v8387_v62 = vpop.eup %8386 }
 0xea4   :  { %v2230_v10 = vmul.f32 %v8387_v62, %v8381_v40  ;;  %v8389_v39 = vpop.eup %8388 }
 0xea5   :  { %v2044_v12 = vmul.f32 %v8389_v39, %v8966_v31 }
 0xea6   :  { %7577 = vmatmul.mubr.msk.f32.vlgmr.msra.gmra.mrb[30].mxu0 %vm2022_vm5, %v2230_v10 }
 0xea7   :  { %8013 = vmatpush3.bf16.msra.mxu0 %v8012_v6  ;;  %7590 = vmatprep.mubr.msk.f32.mxu0 %vm8529_vm1, %v8528_v46 }
 0xea8   :  { %8018 = vmatprep.subr.bf16.mxu0 %v8540_v15 }
 0xeaa   :  { %7591 = vmatmul.mubr.msk.f32.vlgmr.msra.gmra.mrb[32].mxu0 %vm2022_vm5, %v2044_v12 }
 0xeab   :  { %7604 = vmatprep.mubr.msk.f32.mxu0 %vm8529_vm1, %v8528_v46 }
 0xeb0   :  { %8021 = vmatpush3.bf16.xpose.msk.msra.mxu0 %vm8908_vm4, %v8019_v16 }
 0xeb1   :  { %8025 = vmatprep.subr.bf16.mxu0 %v8540_v15 }
 0xeb7   :  { %7605 = vmatmul.mubr.msk.f32.vlgmr.msra.gmra.mrb[34].mxu0 %vm261_vm2, %v2622_v63 }
 0xeb8   :  { %7618 = vmatprep.mubr.msk.f32.mxu0 %vm8529_vm1, %v8528_v46 }
 0xf40   :  { %v2308_v3 = vpop.f32.mrb[24].mxu1 }
 0xf41   :  { %v7571_v6 = vpop.f32.mrb[25].mxu1 }
 0xf44   :  { %v2462_v17 = vpop.f32.mrb[26].mxu1 }
 0xf45   :  { %v9019_v18 = vadd.f32 %v2462_v17, %v2308_v3  ;;  %v7585_v41 = vpop.f32.mrb[27].mxu1 }
 0xf51   :  { %v2617_v19 = vpop.f32.mrb[28].mxu1 }
 0xf52   :  { %v7599_v20 = vpop.f32.mrb[29].mxu1  ;;  %v2703_v21 = vsel %vm2022_vm5, %v2617_v19, -inf }
 0xf53   :  { %2704 = vmax.xlane.f32.xlu0 %v2703_v21 }
 0xf79   :  { %v2389_v22 = vpop.f32.mrb[30].mxu0 }
 0xf7a   :  { %v7578_v23 = vpop.f32.mrb[31].mxu0 }
 0xf7d   :  { %v2535_v25 = vpop.f32.mrb[32].mxu0 }
 0xf7e   :  { %v9022_v26 = vadd.f32 %v2535_v25, %v2389_v22  ;;  %v7592_v27 = vpop.f32.mrb[33].mxu0 }
 0xf8a   :  { %v2699_v30 = vpop.f32.mrb[34].mxu0 }
 0xf8b   :  { %v7606_v31 = vpop.f32.mrb[35].mxu0  ;;  %v2706_v32 = vsel %vm2022_vm5, %v2699_v30, -inf }
 0xf8c   :  { %2707 = vmax.xlane.f32.xlu1 %v2706_v32 }
 0xf9d   :  { %8240 = vrot.lane.b32.xlu1 %v8957_v5, %s8536_s22 }
 0xfa1   :  { %8245 = vrot.lane.b32.xlu1 %v8886_v24, %s8537_s23 }
 0xfa5   :  { %8250 = vrot.lane.b32.xlu1 %v8892_v28, %s8537_s23 }
 0xfa9   :  { %2967 = vrot.lane.b32.xlu1 %v8902_v29, %s8538_s24 }
 0xfe0   :  { %v2705_v44 = vpop.xlane.xlu0 %2704 }
 0xfe1   :  { %v2709_v34 = vsub.f32 %v2617_v19, %v2705_v44 }
 0xfe3   :  { %v2711_v35 = vmul.f32 1.442695, %v2709_v34 }
 0xfe5   :  { %8390 = vpow2.f32 %v2711_v35 }
 0xfef   :  { %v8391_v36 = vpop.eup %8390 }
 0xff0   :  { %v2715_v40 = vsel %vm2022_vm5, %v8391_v36, 0.0 }
 0xff1   :  { %2716 = vadd.xlane.f32.xlu0 %v2715_v40 }
0x1019   :  { %v2708_v37 = vpop.xlane.xlu1 %2707 }
0x101a   :  { %v2710_v53 = vsub.f32 %v2699_v30, %v2708_v37 }
0x101c   :  { %v2713_v42 = vmul.f32 1.442695, %v2710_v53 }
0x101d   :  { %v8241_v45 = vpop.permute.xlu1 %8240 }
0x101e   :  { %8392 = vpow2.f32 %v2713_v42  ;;  %v8243_v24 = vunpack.i.h.bf16 %v8241_v45  ;;  %v8242_v47 = vunpack.i.l.bf16 %v8241_v45 }
0x1020   :  { %v8026_v48 = vpack.c.bf16 %v8243_v24, %v8242_v47 }
0x1021   :  { %v8246_v50 = vpop.permute.xlu1 %8245 }
0x1022   :  { %8027 = vmatpush3.bf16.msra.mxu0 %v8026_v48  ;;  %v8248_v9 = vunpack.i.h.bf16 %v8246_v50 }
0x1023   :  { %8032 = vmatprep.subr.bf16.mxu0 %v8540_v15 }
0x1025   :  { %v8251_v58 = vpop.permute.xlu1 %8250 }
0x1026   :  { %v8253_v38 = vunpack.i.h.bf16 %v8251_v58  ;;  %v8252_v43 = vunpack.i.l.bf16 %v8251_v58 }
0x1028   :  { %v8393_v28 = vpop.eup %8392  ;;  %v8033_v59 = vpack.c.bf16 %v8253_v38, %v8252_v43 }
0x1029   :  { %v2718_v29 = vsel %vm2022_vm5, %v8393_v28, 0.0  ;;  %v2968_v10 = vpop.permute.xlu1 %2967 }
0x102a   :  { %2719 = vadd.xlane.f32.xlu0 %v2718_v29 }
0x1040   :  { %8235 = vrot.lane.b32.xlu0 %v8947_v61, %s8536_s22 }
0x1044   :  { %2885 = vrot.lane.b32.xlu0 %v8890_v51, %s8538_s24  ;;  %v8247_v51 = vunpack.i.l.bf16 %v8246_v50 }
0x1046   :  { %v8029_v62 = vpack.c.bf16 %v8248_v9, %v8247_v51 }
0x107e   :  { %v2717_v49 = vpop.xlane.xlu0 %2716 }
0x107f   :  { %8394 = vrcp.f32 %v2717_v49 }
0x1089   :  { %v8395_v60 = vpop.eup %8394 }
0x108a   :  { %v2723_v7 = vmul.f32 %v8395_v60, %v8391_v36 }
0x10b7   :  { %v2720_v52 = vpop.xlane.xlu0 %2719 }
0x10b8   :  { %8396 = vrcp.f32 %v2720_v52 }
0x10bb   :  { %v8236_v54 = vpop.permute.xlu0 %8235 }
0x10bc   :  { %v8238_v55 = vunpack.i.h.bf16 %v8236_v54  ;;  %v8237_v56 = vunpack.i.l.bf16 %v8236_v54 }
0x10be   :  { %v8023_v2 = vpack.c.bf16 %v8238_v55, %v8237_v56 }
0x10bf   :  { %v2886_v39 = vpop.permute.xlu0 %2885 }
0x10c0   :  { %8024 = vmatpush3.bf16.msra.mxu1 %v8023_v2 }
0x10c1   :  { %8028 = vmatprep.subr.bf16.mxu1 %v8540_v15 }
0x10c2   :  { %v8397_v8 = vpop.eup %8396 }
0x10c3   :  { %7612 = vmatmul.mubr.msk.f32.vlgmr.msra.gmra.mrb[30].mxu1 %vm2022_vm5, %v2723_v7  ;;  %v2724_v57 = vmul.f32 %v8397_v8, %v8393_v28 }
0x10c4   :  { %7625 = vmatprep.mubr.msk.f32.mxu1 %vm8529_vm1, %v8528_v46 }
0x10c5   :  { %7619 = vmatmul.mubr.msk.f32.vlgmr.msra.gmra.mrb[36].mxu0 %vm2022_vm5, %v2724_v57 }
0x10c6   :  { %8035 = vmatpush3.bf16.xpose.msk.msra.mxu0 %vm8908_vm4, %v8033_v59  ;;  %7632 = vmatprep.mubr.msk.f32.mxu0 %vm8529_vm1, %v8528_v46 }
0x10c7   :  { %8039 = vmatprep.subr.bf16.mxu0 %v8540_v15 }
0x10c9   :  { %8031 = vmatpush3.bf16.xpose.msk.msra.mxu1 %vm8908_vm4, %v8029_v62 }
0x10ca   :  { %8036 = vmatprep.subr.bf16.mxu1 %v8540_v15 }
0x10cd   :  { %7633 = vmatmul.mubr.msk.f32.vlgmr.msra.gmra.mrb[38].mxu0 %vm261_vm2, %v2968_v10 }
0x10ce   :  { %7646 = vmatprep.mubr.msk.f32.mxu0 %vm8529_vm1, %v8528_v46 }
0x10d0   :  { %7626 = vmatmul.mubr.msk.f32.vlgmr.msra.gmra.mrb[32].mxu1 %vm261_vm2, %v2886_v39 }
0x10d1   :  { %7639 = vmatprep.mubr.msk.f32.mxu1 %vm8529_vm1, %v8528_v46 }
0x1196   :  { %v2800_v11 = vpop.f32.mrb[30].mxu1 }
0x1197   :  { %v2883_v12 = vadd.f32 %v2800_v11, %v9019_v18  ;;  %v7613_v13 = vpop.f32.mrb[31].mxu1  ;;  %v3280_v11 = vld [vmem:[%s9712_s1 + $0x88] sm:$0xff] }
0x1198   :  { %v2879_v14 = vpop.f32.mrb[36].mxu0  ;;  %v3281_v13 = vld [vmem:[%s9712_s1 + $0x90] sm:$0xff] }
0x1199   :  { %v2884_v16 = vadd.f32 %v2879_v14, %v9022_v26  ;;  %v7620_v63 = vpop.f32.mrb[37].mxu0  ;;  %v3282_v14 = vld [vmem:[%s9712_s1 + $0x98] sm:$0xff] }
0x119a   :  { %v3371_v63 = vld [vmem:[%s9712_s1 + $0xa0] sm:$0xff] }
0x11a0   :  { %v3045_v3 = vpop.f32.mrb[38].mxu0 }
0x11a1   :  { %v7634_v6 = vpop.f32.mrb[39].mxu0  ;;  %v3052_v17 = vsel %vm2022_vm5, %v3045_v3, -inf }
0x11a2   :  { %3053 = vmax.xlane.f32.xlu1 %v3052_v17  ;;  %v3373_v6 = vld [vmem:[%s9712_s1 + $0xb0] sm:$0xff] }
0x11a3   :  { %v2963_v41 = vpop.f32.mrb[32].mxu1 }
0x11a4   :  { %v7627_v19 = vpop.f32.mrb[33].mxu1  ;;  %v3049_v20 = vsel %vm2022_vm5, %v2963_v41, -inf }
0x11a5   :  { %3050 = vmax.xlane.f32.xlu0 %v3049_v20  ;;  %v3375_v20 = vld [vmem:[%s9712_s1 + $0xc0] sm:$0xff] }
0x11b3   :  { %8260 = vrot.lane.b32.xlu1 %v8957_v5, %s8539_s25 }
0x122f   :  { %v3054_v21 = vpop.xlane.xlu1 %3053 }
0x1230   :  { %v3056_v18 = vsub.f32 %v3045_v3, %v3054_v21  ;;  %v3372_v3 = vld [vmem:[%s9712_s1 + $0xa8] sm:$0xff] }
0x1231   :  { %v8050_v17 = vpack.c.bf16 %v3372_v3, %v3371_v63  ;;  %v3376_v21 = vld [vmem:[%s9712_s1 + $0xc8] sm:$0xff]  ;;  %v3600_v63 = vld [vmem:[%s9712_s1 + $0x100] sm:$0xff] }
0x1232   :  { %v3051_v22 = vpop.xlane.xlu0 %3050  ;;  %v3059_v30 = vmul.f32 1.442695, %v3056_v18  ;;  %v8058_v18 = vpack.c.bf16 %v3376_v21, %v3375_v20  ;;  %v3601_v3 = vld [vmem:[%s9712_s1 + $0x108] sm:$0xff] }
0x1233   :  { %v8261_v23 = vpop.permute.xlu1 %8260  ;;  %v3055_v25 = vsub.f32 %v2963_v41, %v3051_v22  ;;  %v3374_v41 = vld [vmem:[%s9712_s1 + $0xb8] sm:$0xff] }
0x1234   :  { %v8263_v26 = vunpack.i.h.bf16 %v8261_v23  ;;  %v8262_v27 = vunpack.i.l.bf16 %v8261_v23  ;;  %v8054_v19 = vpack.c.bf16 %v3374_v41, %v3373_v6  ;;  %v8074_v6 = vpack.c.bf16 %v3601_v3, %v3600_v63 }
0x1235   :  { %v3057_v31 = vmul.f32 1.442695, %v3055_v25 }
0x1236   :  { %v8040_v32 = vpack.c.bf16 %v8263_v26, %v8262_v27 }
0x1237   :  { %8398 = vpow2.f32 %v3057_v31 }
0x1238   :  { %8041 = vmatpush3.bf16.msra.mxu0 %v8040_v32  ;;  %8400 = vpow2.f32 %v3059_v30  ;;  %v7052_v32 = vld [vmem:[%s9713_s2 + $0xa] ss:$0 sm:$0xff] }
0x1239   :  { %8051 = vmatprep.subr.bf16.mxu0 %v8050_v17 }
0x1241   :  { %v8399_v44 = vpop.eup %8398 }
0x1242   :  { %v3061_v34 = vsel %vm2022_vm5, %v8399_v44, 0.0  ;;  %v8401_v35 = vpop.eup %8400 }
0x1243   :  { %3062 = vadd.xlane.f32.xlu0 %v3061_v34  ;;  %v3064_v5 = vsel %vm2022_vm5, %v8401_v35, 0.0 }
0x1247   :  { %3065 = vadd.xlane.f32.xlu0 %v3064_v5 }
0x125d   :  { %8255 = vrot.lane.b32.xlu0 %v8947_v61, %s8539_s25  ;;  %v7051_v61 = vld [vmem:[%s9713_s2 + $0x5] ss:$0 sm:$0xff] }
0x12d0   :  { %v3063_v36 = vpop.xlane.xlu0 %3062 }
0x12d1   :  { %8402 = vrcp.f32 %v3063_v36 }
0x12d4   :  { %v3066_v40 = vpop.xlane.xlu0 %3065 }
0x12d5   :  { %8404 = vrcp.f32 %v3066_v40 }
0x12d8   :  { %v8256_v37 = vpop.permute.xlu0 %8255 }
0x12d9   :  { %v8258_v53 = vunpack.i.h.bf16 %v8256_v37  ;;  %v8257_v42 = vunpack.i.l.bf16 %v8256_v37 }
0x12db   :  { %v8403_v45 = vpop.eup %8402  ;;  %v8037_v24 = vpack.c.bf16 %v8258_v53, %v8257_v42  ;;  %v3377_v42 = vld [vmem:[%s9712_s1 + $0xd0] sm:$0xff] }
0x12dc   :  { %v3069_v47 = vmul.f32 %v8403_v45, %v8399_v44  ;;  %v3378_v45 = vld [vmem:[%s9712_s1 + $0xd8] sm:$0xff] }
0x12dd   :  { %8038 = vmatpush3.bf16.msra.mxu1 %v8037_v24  ;;  %v8062_v24 = vpack.c.bf16 %v3378_v45, %v3377_v42  ;;  %v7062_v45 = vld [vmem:[%s9713_s2 + $0x10] ss:$0 sm:$0xff] }
0x12df   :  { %v8405_v48 = vpop.eup %8404 }
0x12e0   :  { %7640 = vmatmul.mubr.msk.f32.vlgmr.msra.gmra.mrb[34].mxu1 %vm2022_vm5, %v3069_v47  ;;  %v3070_v28 = vmul.f32 %v8405_v48, %v8401_v35  ;;  %v7053_v35 = vld [vmem:[%s9713_s2 + $0xb] ss:$0 sm:$0xff]  ;;  %v7054_v47 = vld [vmem:[%s9713_s2 + $0x6] ss:$0 sm:$0xff] }
0x12e2   :  { %7647 = vmatmul.mubr.msk.f32.vlgmr.msra.gmra.mrb[40].mxu0 %vm2022_vm5, %v3070_v28 }
0x12e3   :  { %8053 = vmatpush3.bf16.msra.mxu0 %v8050_v17 }
0x12e4   :  { %8055 = vmatprep.subr.bf16.mxu0 %v8054_v19 }
0x12e7   :  { %8057 = vmatpush3.bf16.msra.mxu0 %v8054_v19 }
0x12e8   :  { %8059 = vmatprep.subr.bf16.mxu0 %v8058_v18 }
0x12eb   :  { %8061 = vmatpush3.bf16.msra.mxu0 %v8058_v18 }
0x12ec   :  { %8063 = vmatprep.subr.bf16.mxu0 %v8062_v24 }
0x12ef   :  { %8065 = vmatpush3.bf16.msra.mxu0 %v8062_v24 }
0x12f0   :  { %7701 = vmatprep.subr.mxu0 %v8528_v46 }
0x13b3   :  { %v3146_v29 = vpop.f32.mrb[34].mxu1 }
0x13b4   :  { %v3229_v49 = vadd.f32 %v3146_v29, %v2883_v12  ;;  %v7641_v50 = vpop.f32.mrb[35].mxu1 }
0x13b5   :  { %v3225_v52 = vpop.f32.mrb[40].mxu0 }
0x13b6   :  { %v3235_v54 = vadd.f32 %v7051_v61, %v3229_v49  ;;  %v3230_v55 = vadd.f32 %v3225_v52, %v2884_v16  ;;  %v7648_v56 = vpop.f32.mrb[41].mxu0  ;;  %v8046_v16 = vpack.c.bf16 %v3282_v14, %v3281_v13  ;;  %v7057_v52 = vld [vmem:[%s9713_s2 + $0x7] ss:$0 sm:$0xff]  ;;  %v3512_v13 = vld [vmem:[%s9712_s1 + $0xf0] sm:$0xff]  ;;  %v3513_v14 = vld [vmem:[%s9712_s1 + $0xf8] sm:$0xff] }
0x13b8   :  { %v3236_v58 = vadd.f32 %v7051_v61, %v3230_v55  ;;  %v3237_v60 = vadd.f32 %v3235_v54, %v8825_v1 }
0x13ba   :  { %v3241_v2 = vsel %vm35_vm0, %v3237_v60, 0.0  ;;  %v3238_v38 = vadd.f32 %v3236_v58, %v8823_v0  ;;  %v3279_v0 = vld [vmem:[%s9712_s1 + $0x80] sm:$0xff] }
0x13bb   :  { %3242 = vadd.xlane.f32.xlu1 %v3241_v2  ;;  %v8042_v12 = vpack.c.bf16 %v3280_v11, %v3279_v0  ;;  %v3510_v0 = vld [vmem:[%s9712_s1 + $0xe0] sm:$0xff]  ;;  %v3511_v11 = vld [vmem:[%s9712_s1 + $0xe8] sm:$0xff] }
0x13bc   :  { %v3244_v43 = vsel %vm35_vm0, %v3238_v38, 0.0 }
0x13bd   :  { %3245 = vadd.xlane.f32.xlu0 %v3244_v43  ;;  %8043 = vmatprep.subr.bf16.mxu1 %v8042_v12 }
0x13be   :  { %8045 = vmatpush3.bf16.msra.mxu1 %v8042_v12  ;;  %v8066_v12 = vpack.c.bf16 %v3511_v11, %v3510_v0 }
0x13bf   :  { %8047 = vmatprep.subr.bf16.mxu1 %v8046_v16 }
0x13c2   :  { %8049 = vmatpush3.bf16.msra.mxu1 %v8046_v16  ;;  %v8070_v16 = vpack.c.bf16 %v3513_v14, %v3512_v13 }
0x13c3   :  { %8067 = vmatprep.subr.bf16.mxu1 %v8066_v12 }
0x1448   :  { %v3243_v7 = vpop.xlane.xlu1 %3242 }
0x1449   :  { %v3247_v8 = vmul.f32 0.03125, %v3243_v7 }
0x144a   :  { %v3246_v9 = vpop.xlane.xlu0 %3245 }
0x144b   :  { %v3249_v51 = vsub.f32 %v3237_v60, %v3247_v8  ;;  %v3248_v57 = vmul.f32 0.03125, %v3246_v9 }
0x144d   :  { %v3250_v59 = vsub.f32 %v3238_v38, %v3248_v57  ;;  %v3251_v62 = vmul.f32 %v3249_v51, %v3249_v51 }
0x144f   :  { %v3253_v10 = vsel %vm35_vm0, %v3251_v62, 0.0  ;;  %v3252_v39 = vmul.f32 %v3250_v59, %v3250_v59 }
0x1450   :  { %3254 = vadd.xlane.f32.xlu0 %v3253_v10 }
0x1451   :  { %v3256_v1 = vsel %vm35_vm0, %v3252_v39, 0.0 }
0x1452   :  { %3257 = vadd.xlane.f32.xlu1 %v3256_v1 }
0x14dd   :  { %v3255_v22 = vpop.xlane.xlu0 %3254 }
0x14de   :  { %v3259_v23 = vmul.f32 0.03125, %v3255_v22 }
0x14df   :  { %v3258_v25 = vpop.xlane.xlu1 %3257 }
0x14e0   :  { %v3261_v26 = vadd.f32 1e-05, %v3259_v23  ;;  %v3260_v27 = vmul.f32 0.03125, %v3258_v25  ;;  %v7060_v23 = vld [vmem:[%s9713_s2 + $0xc] ss:$0 sm:$0xff] }
0x14e2   :  { %8406 = vrsqrt.f32 %v3261_v26  ;;  %v3262_v30 = vadd.f32 1e-05, %v3260_v27 }
0x14e4   :  { %8408 = vrsqrt.f32 %v3262_v30  ;;  %v7061_v30 = vld [vmem:[%s9713_s2 + $0xd] ss:$0 sm:$0xff] }
0x14ec   :  { %v8407_v31 = vpop.eup %8406 }
0x14ed   :  { %v3265_v44 = vmul.f32 %v8407_v31, %v3249_v51 }
0x14ee   :  { %v8409_v34 = vpop.eup %8408 }
0x14ef   :  { %v3266_v5 = vmul.f32 %v8409_v34, %v3250_v59  ;;  %v3271_v36 = vmul.f32 %v7052_v32, %v3265_v44 }
0x14f1   :  { %v3272_v40 = vmul.f32 %v7052_v32, %v3266_v5  ;;  %v3277_v37 = vadd.f32 %v7053_v35, %v3271_v36  ;;  %v3603_v5 = vld [vmem:[%s9712_s1 + $0x118] sm:$0xff]  ;;  %v9176_v36 = vld [vmem:[%s9711_s0 + $0x10] sm:$0xff] }
0x14f3   :  { %v3278_v53 = vadd.f32 %v7053_v35, %v3272_v40  ;;  %7657 = vmatprep.mubr.msk.f32.mxu1 %vm35_vm0, %v3277_v37  ;;  %v3602_v35 = vld [vmem:[%s9712_s1 + $0x110] sm:$0xff] }
0x14f4   :  { %v8078_v42 = vpack.c.bf16 %v3603_v5, %v3602_v35 }
0x14f5   :  { %7658 = vmatmul.mubr.msk.f32.vlgmr.msra.gmra.mrb[36].mxu1 %vm35_vm0, %v3278_v53 }
0x14f6   :  { %8069 = vmatpush3.bf16.msra.mxu1 %v8066_v12 }
0x14f7   :  { %8071 = vmatprep.subr.bf16.mxu1 %v8070_v16 }
0x14fa   :  { %8073 = vmatpush3.bf16.msra.mxu1 %v8070_v16 }
0x14fb   :  { %8075 = vmatprep.subr.bf16.mxu1 %v8074_v6 }
0x15c8   :  { %v7659_v48 = vpop.f32.mrb[36].mxu1 }
0x15c9   :  { %v3366_v28 = vadd.f32 %v7659_v48, %v7054_v47  ;;  %v3360_v61 = vpop.f32.mrb[37].mxu1 }
0x15ca   :  { %v3361_v29 = vadd.f32 %v7054_v47, %v3360_v61  ;;  %v7065_v61 = vld [vmem:[%s9713_s2 + $0x11] ss:$0 sm:$0xff] }
0x15cb   :  { %v3370_v50 = vmax.f32 %v3366_v28, 0.0 }
0x15cc   :  { %v3369_v49 = vmax.f32 %v3361_v29, 0.0 }
0x15ce   :  { %7676 = vmatprep.mubr.msk.f32.mxu0 %vm3384_vm6, %v3369_v49 }
0x15cf   :  { %7677 = vmatmul.mubr.msk.f32.vlgmr.msra.gmra.mrb[42].mxu0 %vm3384_vm6, %v3370_v50 }
0x15d0   :  { %7703 = vmatprep.mubr.msk.f32.mxu0 %vm8529_vm1, %v8528_v46 }
0x16a2   :  { %v7678_v54 = vpop.f32.mrb[42].mxu0 }
0x16a3   :  { %v3463_v55 = vadd.f32 %v7678_v54, %v7057_v52  ;;  %v3457_v56 = vpop.f32.mrb[43].mxu0 }
0x16a4   :  { %v3458_v58 = vadd.f32 %v7057_v52, %v3457_v56 }
0x16a5   :  { %v3467_v60 = vadd.f32 %v3463_v55, %v3278_v53 }
0x16a6   :  { %v3466_v2 = vadd.f32 %v3458_v58, %v3277_v37  ;;  %v9183_v37 = vld [vmem:[%s9711_s0 + $0x18] sm:$0xff] }
0x16a7   :  { %v3473_v38 = vsel %vm35_vm0, %v3467_v60, 0.0 }
0x16a8   :  { %3474 = vadd.xlane.f32.xlu1 %v3473_v38  ;;  %v3470_v43 = vsel %vm35_vm0, %v3466_v2, 0.0 }
0x16a9   :  { %3471 = vadd.xlane.f32.xlu0 %v3470_v43 }
0x1735   :  { %v3475_v7 = vpop.xlane.xlu1 %3474 }
0x1736   :  { %v3477_v8 = vmul.f32 0.03125, %v3475_v7  ;;  %v3472_v9 = vpop.xlane.xlu0 %3471 }
0x1737   :  { %v3476_v51 = vmul.f32 0.03125, %v3472_v9 }
0x1738   :  { %v3479_v57 = vsub.f32 %v3467_v60, %v3477_v8 }
0x1739   :  { %v3478_v59 = vsub.f32 %v3466_v2, %v3476_v51 }
0x173a   :  { %v3481_v62 = vmul.f32 %v3479_v57, %v3479_v57 }
0x173b   :  { %v3480_v10 = vmul.f32 %v3478_v59, %v3478_v59 }
0x173c   :  { %v3485_v39 = vsel %vm35_vm0, %v3481_v62, 0.0 }
0x173d   :  { %3486 = vadd.xlane.f32.xlu1 %v3485_v39  ;;  %v3482_v1 = vsel %vm35_vm0, %v3480_v10, 0.0 }
0x173e   :  { %3483 = vadd.xlane.f32.xlu0 %v3482_v1 }
0x17ca   :  { %v3487_v17 = vpop.xlane.xlu1 %3486 }
0x17cb   :  { %v3489_v41 = vmul.f32 0.03125, %v3487_v17  ;;  %v3484_v19 = vpop.xlane.xlu0 %3483 }
0x17cc   :  { %v3488_v20 = vmul.f32 0.03125, %v3484_v19 }
0x17cd   :  { %v3491_v21 = vadd.f32 1e-05, %v3489_v41 }
0x17ce   :  { %v3490_v18 = vadd.f32 1e-05, %v3488_v20 }
0x17cf   :  { %8410 = vrsqrt.f32 %v3491_v21 }
0x17d0   :  { %8412 = vrsqrt.f32 %v3490_v18 }
0x17d9   :  { %v8411_v22 = vpop.eup %8410 }
0x17da   :  { %v8413_v25 = vpop.eup %8412  ;;  %v3495_v26 = vmul.f32 %v8411_v22, %v3479_v57 }
0x17db   :  { %v3494_v27 = vmul.f32 %v8413_v25, %v3478_v59 }
0x17dc   :  { %v3501_v31 = vmul.f32 %v7060_v23, %v3495_v26 }
0x17dd   :  { %v3500_v32 = vmul.f32 %v7060_v23, %v3494_v27 }
0x17de   :  { %v9163_v44 = vadd.f32 %v7061_v30, %v3501_v31 }
0x17df   :  { %v9165_v34 = vadd.f32 %v7061_v30, %v3500_v32 }
0x17e0   :  { %v3509_v53 = vadd.f32 %v9183_v37, %v9163_v44 }
0x17e1   :  { %v3508_v40 = vadd.f32 %v9176_v36, %v9165_v34 }
0x17e3   :  { %7687 = vmatprep.mubr.msk.f32.mxu1 %vm35_vm0, %v3508_v40 }
0x17e4   :  { %7688 = vmatmul.mubr.msk.f32.vlgmr.msra.gmra.mrb[38].mxu1 %vm35_vm0, %v3509_v53 }
0x17e5   :  { %8077 = vmatpush3.bf16.msra.mxu1 %v8074_v6  ;;  %7698 = vmatprep.mubr.msk.f32.mxu1 %vm35_vm0, %v9165_v34 }
0x17e6   :  { %8079 = vmatprep.subr.bf16.mxu1 %v8078_v42 }
0x17e9   :  { %8081 = vmatpush3.bf16.msra.mxu1 %v8078_v42 }
0x17ea   :  { %7711 = vmatprep.subr.mxu1 %v8528_v46 }
0x17ec   :  { %7699 = vmatmul.mubr.msk.f32.vlgmr.msra.gmra.mrb[40].mxu1 %vm35_vm0, %v9163_v44 }
0x17ed   :  { %7713 = vmatprep.mubr.msk.f32.mxu1 %vm8529_vm1, %v8528_v46 }
0x18b7   :  { %v7689_v24 = vpop.f32.mrb[38].mxu1 }
0x18b8   :  { %v9199_v47 = vadd.f32 %v7689_v24, %v7062_v45  ;;  %v3591_v48 = vpop.f32.mrb[39].mxu1 }
0x18b9   :  { %v9201_v28 = vadd.f32 %v7062_v45, %v3591_v48 }
0x18ba   :  { %3769 = vrot.lane.b32.xlu1 %v9199_v47, %s8530_s15 }
0x18bb   :  { %3692 = vrot.lane.b32.xlu0 %v9201_v28, %s8530_s15 }
0x18be   :  { %3947 = vrot.lane.b32.xlu1 %v9199_v47, %s8531_s16 }
0x18bf   :  { %v7700_v29 = vpop.f32.mrb[40].mxu1  ;;  %3867 = vrot.lane.b32.xlu0 %v9201_v28, %s8532_s17 }
0x18c0   :  { %v3681_v49 = vpop.f32.mrb[41].mxu1  ;;  %v9250_v13 = vadd.f32 %v7700_v29, %v7065_v61 }
0x18c1   :  { %v9214_v50 = vadd.f32 %v7065_v61, %v3681_v49 }
0x18c2   :  { %3869 = vrot.lane.b32.xlu1 %v9201_v28, %s8531_s16 }
0x18c6   :  { %3945 = vrot.lane.b32.xlu1 %v9199_v47, %s8532_s17 }
0x192c   :  { %v3770_v52 = vpop.permute.xlu1 %3769 }
0x192d   :  { %v3693_v54 = vpop.permute.xlu0 %3692 }
0x192e   :  { %7702 = vmatpush3.xpose.msk.msra.mxu0 %vm261_vm2, %v3693_v54 }
0x192f   :  { %7706 = vmatprep.subr.mxu0 %v8528_v46 }
0x1930   :  { %v3948_v55 = vpop.permute.xlu1 %3947 }
0x1931   :  { %7704 = vmatmul.mubr.msk.f32.vlgmr.msra.gmra.mrb[44].mxu0 %vm261_vm2, %v9201_v28  ;;  %v3868_v58 = vpop.permute.xlu0 %3867 }
0x1932   :  { %7707 = vmatpush3.xpose.msk.msra.mxu0 %vm261_vm2, %v3770_v52  ;;  %7708 = vmatprep.mubr.msk.f32.mxu0 %vm8529_vm1, %v8528_v46 }
0x1933   :  { %7716 = vmatprep.subr.mxu0 %v8528_v46 }
0x1934   :  { %v3870_v56 = vpop.permute.xlu1 %3869 }
0x1935   :  { %7709 = vmatmul.mubr.msk.f32.vlgmr.msra.gmra.mrb[46].mxu0 %vm261_vm2, %v9199_v47  ;;  %7712 = vmatpush3.xpose.msk.msra.mxu1 %vm261_vm2, %v3870_v56 }
0x1936   :  { %7717 = vmatpush3.xpose.msk.msra.mxu0 %vm261_vm2, %v3948_v55  ;;  %7718 = vmatprep.mubr.msk.f32.mxu0 %vm8529_vm1, %v8528_v46 }
0x1937   :  { %7726 = vmatprep.subr.mxu0 %v8528_v46  ;;  %7721 = vmatprep.subr.mxu1 %v8528_v46 }
0x1938   :  { %v3946_v60 = vpop.permute.xlu1 %3945  ;;  %7714 = vmatmul.mubr.msk.f32.vlgmr.msra.gmra.mrb[42].mxu1 %vm261_vm2, %v3868_v58 }
0x1939   :  { %7719 = vmatmul.mubr.msk.f32.vlgmr.msra.gmra.mrb[48].mxu0 %vm261_vm2, %v3946_v60  ;;  %7723 = vmatprep.mubr.msk.f32.mxu1 %vm8529_vm1, %v8528_v46 }
0x193a   :  { %7728 = vmatprep.mubr.msk.f32.mxu0 %vm8529_vm1, %v8528_v46 }
0x1a04   :  { %v3764_v2 = vpop.f32.mrb[44].mxu0 }
0x1a05   :  { %v7705_v38 = vpop.f32.mrb[45].mxu0  ;;  %v3765_v10 = vadd.f32 %v3764_v2, %v8679_v4 }
0x1a07   :  { %v3845_v11 = vsel %vm261_vm2, %v3765_v10, -inf }
0x1a08   :  { %v3841_v43 = vpop.f32.mrb[46].mxu0 }
0x1a09   :  { %v7710_v7 = vpop.f32.mrb[47].mxu0  ;;  %v3842_v0 = vadd.f32 %v3841_v43, %v8679_v4 }
0x1a0b   :  { %v3941_v8 = vpop.f32.mrb[42].mxu1  ;;  %v3848_v12 = vsel %vm261_vm2, %v3842_v0, -inf }
0x1a0c   :  { %v3942_v9 = vadd.f32 %v3941_v8, %v8679_v4  ;;  %v7715_v51 = vpop.f32.mrb[43].mxu1  ;;  %v4019_v57 = vpop.f32.mrb[48].mxu0 }
0x1a0d   :  { %v4020_v59 = vadd.f32 %v4019_v57, %v8679_v4  ;;  %v7720_v62 = vpop.f32.mrb[49].mxu0 }
0x1a0e   :  { %v4023_v39 = vsel %vm261_vm2, %v3942_v9, -inf }
0x1a0f   :  { %4024 = vmax.xlane.f32.xlu0 %v4023_v39  ;;  %v4026_v1 = vsel %vm261_vm2, %v4020_v59, -inf }
0x1a10   :  { %4027 = vmax.xlane.f32.xlu1 %v4026_v1 }
0x1a13   :  { %3846 = vmax.xlane.f32.xlu0 %v3845_v11 }
0x1a17   :  { %3849 = vmax.xlane.f32.xlu0 %v3848_v12 }
0x1a21   :  { %4123 = vrot.lane.b32.xlu1 %v9250_v13, %s8530_s15 }
0x1a25   :  { %4347 = vrot.lane.b32.xlu1 %v9201_v28, %s8534_s20 }
0x1a9c   :  { %v4025_v14 = vpop.xlane.xlu0 %4024 }
0x1a9d   :  { %v4029_v16 = vsub.f32 %v3942_v9, %v4025_v14  ;;  %v4028_v63 = vpop.xlane.xlu1 %4027 }
0x1a9e   :  { %v4030_v41 = vsub.f32 %v4020_v59, %v4028_v63 }
0x1a9f   :  { %v4031_v3 = vmul.f32 1.442695, %v4029_v16 }
0x1aa0   :  { %v3847_v6 = vpop.xlane.xlu0 %3846  ;;  %v4033_v21 = vmul.f32 1.442695, %v4030_v41 }
0x1aa1   :  { %8414 = vpow2.f32 %v4031_v3  ;;  %v4124_v17 = vpop.permute.xlu1 %4123  ;;  %v3851_v31 = vsub.f32 %v3765_v10, %v3847_v6 }
0x1aa2   :  { %7727 = vmatpush3.msra.mxu0 %v4124_v17 }
0x1aa3   :  { %7736 = vmatprep.subr.mxu0 %v8528_v46  ;;  %v3853_v32 = vmul.f32 1.442695, %v3851_v31 }
0x1aa4   :  { %v3850_v19 = vpop.xlane.xlu0 %3849 }
0x1aa5   :  { %v3852_v20 = vsub.f32 %v3842_v0, %v3850_v19  ;;  %v4348_v53 = vpop.permute.xlu1 %4347 }
0x1aa7   :  { %v3855_v18 = vmul.f32 1.442695, %v3852_v20 }
0x1aa9   :  { %8416 = vpow2.f32 %v3855_v18 }
0x1aaa   :  { %8418 = vpow2.f32 %v4033_v21 }
0x1aab   :  { %v8415_v22 = vpop.eup %8414  ;;  %8420 = vpow2.f32 %v3853_v32 }
0x1aac   :  { %v4035_v23 = vsel %vm261_vm2, %v8415_v22, 0.0 }
0x1aad   :  { %4036 = vadd.xlane.f32.xlu0 %v4035_v23 }
0x1ab3   :  { %v8417_v25 = vpop.eup %8416 }
0x1ab4   :  { %v3860_v26 = vsel %vm261_vm2, %v8417_v25, 0.0  ;;  %v8419_v27 = vpop.eup %8418 }
0x1ab5   :  { %3861 = vadd.xlane.f32.xlu1 %v3860_v26  ;;  %v4038_v30 = vsel %vm261_vm2, %v8419_v27, 0.0  ;;  %v8421_v35 = vpop.eup %8420 }
0x1ab6   :  { %v3857_v5 = vsel %vm261_vm2, %v8421_v35, 0.0 }
0x1ab9   :  { %4039 = vadd.xlane.f32.xlu1 %v4038_v30 }
0x1ac3   :  { %4046 = vrot.lane.b32.xlu0 %v9214_v50, %s8530_s15 }
0x1aca   :  { %4425 = vrot.lane.b32.xlu1 %v9199_v47, %s8534_s20 }
0x1ace   :  { %4423 = vrot.lane.b32.xlu1 %v9199_v47, %s8535_s21 }
0x1ae2   :  { %3858 = vadd.xlane.f32.xlu0 %v3857_v5 }
0x1af8   :  { %4345 = vrot.lane.b32.xlu0 %v9201_v28, %s8535_s21 }
0x1b3a   :  { %v4037_v40 = vpop.xlane.xlu0 %4036 }
0x1b3b   :  { %8422 = vrcp.f32 %v4037_v40 }
0x1b3e   :  { %v4047_v42 = vpop.permute.xlu0 %4046 }
0x1b3f   :  { %7722 = vmatpush3.msra.mxu1 %v4047_v42 }
0x1b40   :  { %7731 = vmatprep.subr.mxu1 %v8528_v46 }
0x1b42   :  { %v3862_v45 = vpop.xlane.xlu1 %3861 }
0x1b45   :  { %v8423_v24 = vpop.eup %8422 }
0x1b46   :  { %v4043_v48 = vmul.f32 %v8423_v24, %v8415_v22  ;;  %v4040_v61 = vpop.xlane.xlu1 %4039 }
0x1b47   :  { %8424 = vrcp.f32 %v4040_v61 }
0x1b48   :  { %7724 = vmatmul.mubr.msk.f32.vlgmr.msra.gmra.mrb[44].mxu1 %vm261_vm2, %v4043_v48  ;;  %8426 = vrcp.f32 %v3862_v45 }
0x1b49   :  { %7732 = vmatpush3.msra.mxu1 %v9214_v50  ;;  %7733 = vmatprep.mubr.msk.f32.mxu1 %vm8529_vm1, %v8528_v46 }
0x1b4a   :  { %7741 = vmatprep.subr.mxu1 %v8528_v46  ;;  %v4426_v55 = vpop.permute.xlu1 %4425 }
0x1b4e   :  { %v4424_v56 = vpop.permute.xlu1 %4423 }
0x1b51   :  { %v8425_v29 = vpop.eup %8424 }
0x1b52   :  { %v4044_v49 = vmul.f32 %v8425_v29, %v8419_v27  ;;  %v8427_v52 = vpop.eup %8426 }
0x1b53   :  { %v3866_v54 = vmul.f32 %v8427_v52, %v8417_v25 }
0x1b54   :  { %7729 = vmatmul.mubr.msk.f32.vlgmr.msra.gmra.mrb[50].mxu0 %vm261_vm2, %v4044_v49 }
0x1b55   :  { %7737 = vmatpush3.msra.mxu0 %v9250_v13  ;;  %7738 = vmatprep.mubr.msk.f32.mxu0 %vm8529_vm1, %v8528_v46 }
0x1b56   :  { %7746 = vmatprep.subr.mxu0 %v8528_v46 }
0x1b58   :  { %7739 = vmatmul.mubr.msk.f32.vlgmr.msra.gmra.mrb[52].mxu0 %vm261_vm2, %v3866_v54 }
0x1b59   :  { %7748 = vmatprep.mubr.msk.f32.mxu0 %vm8529_vm1, %v8528_v46 }
0x1b5c   :  { %7747 = vmatpush3.xpose.msk.msra.mxu0 %vm261_vm2, %v4426_v55 }
0x1b5d   :  { %7756 = vmatprep.subr.mxu0 %v8528_v46 }
0x1b5f   :  { %7749 = vmatmul.mubr.msk.f32.vlgmr.msra.gmra.mrb[54].mxu0 %vm261_vm2, %v4424_v56 }
0x1b60   :  { %7758 = vmatprep.mubr.msk.f32.mxu0 %vm8529_vm1, %v8528_v46 }
0x1b6f   :  { %v3859_v58 = vpop.xlane.xlu0 %3858 }
0x1b70   :  { %8428 = vrcp.f32 %v3859_v58 }
0x1b73   :  { %v4346_v38 = vpop.permute.xlu0 %4345 }
0x1b7a   :  { %v8429_v60 = vpop.eup %8428 }
0x1b7b   :  { %v3865_v2 = vmul.f32 %v8429_v60, %v8421_v35 }
0x1b7d   :  { %7734 = vmatmul.mubr.msk.f32.vlgmr.msra.gmra.mrb[46].mxu1 %vm261_vm2, %v3865_v2 }
0x1b7e   :  { %7742 = vmatpush3.xpose.msk.msra.mxu1 %vm261_vm2, %v4348_v53  ;;  %7743 = vmatprep.mubr.msk.f32.mxu1 %vm8529_vm1, %v8528_v46 }
0x1b7f   :  { %7751 = vmatprep.subr.mxu1 %v8528_v46 }
0x1b81   :  { %7744 = vmatmul.mubr.msk.f32.vlgmr.msra.gmra.mrb[48].mxu1 %vm261_vm2, %v4346_v38 }
0x1b82   :  { %7753 = vmatprep.mubr.msk.f32.mxu1 %vm8529_vm1, %v8528_v46 }
0x1c1b   :  { %v4118_v43 = vpop.f32.mrb[44].mxu1 }
0x1c1c   :  { %v7725_v7 = vpop.f32.mrb[45].mxu1 }
0x1c27   :  { %v4195_v8 = vpop.f32.mrb[50].mxu0 }
0x1c28   :  { %v7730_v9 = vpop.f32.mrb[51].mxu0 }
0x1c2b   :  { %v4341_v51 = vpop.f32.mrb[52].mxu0 }
0x1c2c   :  { %v9296_v57 = vadd.f32 %v4341_v51, %v4195_v8  ;;  %v7740_v59 = vpop.f32.mrb[53].mxu0 }
0x1c32   :  { %v4497_v62 = vpop.f32.mrb[54].mxu0 }
0x1c33   :  { %v4498_v10 = vadd.f32 %v4497_v62, %v8679_v4  ;;  %v7750_v39 = vpop.f32.mrb[55].mxu0 }
0x1c35   :  { %v4504_v1 = vsel %vm261_vm2, %v4498_v10, -inf }
0x1c36   :  { %4505 = vmax.xlane.f32.xlu1 %v4504_v1 }
0x1c47   :  { %4599 = vrot.lane.b32.xlu1 %v9250_v13, %s8536_s22 }
0x1c4b   :  { %4679 = vrot.lane.b32.xlu1 %v9201_v28, %s8537_s23 }
0x1c4f   :  { %4757 = vrot.lane.b32.xlu1 %v9199_v47, %s8537_s23 }
0x1c50   :  { %v4268_v0 = vpop.f32.mrb[46].mxu1 }
0x1c51   :  { %v4269_v11 = vadd.f32 %v4268_v0, %v4118_v43  ;;  %v7735_v12 = vpop.f32.mrb[47].mxu1 }
0x1c53   :  { %4755 = vrot.lane.b32.xlu1 %v9199_v47, %s8538_s24 }
0x1c54   :  { %v4419_v14 = vpop.f32.mrb[48].mxu1 }
0x1c55   :  { %v4420_v16 = vadd.f32 %v4419_v14, %v8679_v4  ;;  %v7745_v63 = vpop.f32.mrb[49].mxu1 }
0x1c56   :  { %v8496_v63 = vld [vmem:[%s9711_s0 + $0x20] sm:$0xff] }
0x1c57   :  { %v4501_v3 = vsel %vm261_vm2, %v4420_v16, -inf }
0x1c58   :  { %4502 = vmax.xlane.f32.xlu0 %v4501_v3 }
0x1c6e   :  { %4523 = vrot.lane.b32.xlu0 %v9214_v50, %s8536_s22 }
0x1cc3   :  { %v4506_v6 = vpop.xlane.xlu1 %4505 }
0x1cc4   :  { %v4508_v41 = vsub.f32 %v4498_v10, %v4506_v6 }
0x1cc6   :  { %v4511_v21 = vmul.f32 1.442695, %v4508_v41 }
0x1cc7   :  { %v4600_v17 = vpop.permute.xlu1 %4599 }
0x1cc8   :  { %7757 = vmatpush3.msra.mxu0 %v4600_v17 }
0x1cc9   :  { %7766 = vmatprep.subr.mxu0 %v8528_v46 }
0x1ccb   :  { %v4680_v31 = vpop.permute.xlu1 %4679 }
0x1ccf   :  { %v4758_v40 = vpop.permute.xlu1 %4757 }
0x1cd3   :  { %v4756_v42 = vpop.permute.xlu1 %4755 }
0x1ce5   :  { %v4503_v19 = vpop.xlane.xlu0 %4502 }
0x1ce6   :  { %v4507_v20 = vsub.f32 %v4420_v16, %v4503_v19 }
0x1ce8   :  { %v4509_v47 = vmul.f32 1.442695, %v4507_v20 }
0x1ce9   :  { %v4524_v18 = vpop.permute.xlu0 %4523 }
0x1cea   :  { %8430 = vpow2.f32 %v4509_v47  ;;  %7752 = vmatpush3.msra.mxu1 %v4524_v18 }
0x1ceb   :  { %7761 = vmatprep.subr.mxu1 %v8528_v46  ;;  %8432 = vpow2.f32 %v4511_v21 }
0x1cf4   :  { %v8431_v22 = vpop.eup %8430 }
0x1cf5   :  { %v4513_v23 = vsel %vm261_vm2, %v8431_v22, 0.0  ;;  %v8433_v25 = vpop.eup %8432 }
0x1cf6   :  { %4514 = vadd.xlane.f32.xlu0 %v4513_v23  ;;  %v4516_v26 = vsel %vm261_vm2, %v8433_v25, 0.0 }
0x1cfa   :  { %4517 = vadd.xlane.f32.xlu0 %v4516_v26 }
0x1d10   :  { %4677 = vrot.lane.b32.xlu0 %v9201_v28, %s8538_s24 }
0x1d83   :  { %v4515_v27 = vpop.xlane.xlu0 %4514 }
0x1d84   :  { %8434 = vrcp.f32 %v4515_v27 }
0x1d87   :  { %v4518_v30 = vpop.xlane.xlu0 %4517 }
0x1d88   :  { %8436 = vrcp.f32 %v4518_v30 }
0x1d8b   :  { %v4678_v28 = vpop.permute.xlu0 %4677 }
0x1d8e   :  { %v8435_v32 = vpop.eup %8434 }
0x1d8f   :  { %v4521_v35 = vmul.f32 %v8435_v32, %v8431_v22 }
0x1d91   :  { %7754 = vmatmul.mubr.msk.f32.vlgmr.msra.gmra.mrb[50].mxu1 %vm261_vm2, %v4521_v35 }
0x1d92   :  { %v8437_v5 = vpop.eup %8436  ;;  %7762 = vmatpush3.xpose.msk.msra.mxu1 %vm261_vm2, %v4680_v31  ;;  %7763 = vmatprep.mubr.msk.f32.mxu1 %vm8529_vm1, %v8528_v46 }
0x1d93   :  { %v4522_v53 = vmul.f32 %v8437_v5, %v8433_v25  ;;  %7771 = vmatprep.subr.mxu1 %v8528_v46 }
0x1d95   :  { %7759 = vmatmul.mubr.msk.f32.vlgmr.msra.gmra.mrb[56].mxu0 %vm261_vm2, %v4522_v53  ;;  %7764 = vmatmul.mubr.msk.f32.vlgmr.msra.gmra.mrb[52].mxu1 %vm261_vm2, %v4678_v28  ;;  %v5060_v28 = vld [vmem:[%s9712_s1 + $0x128] sm:$0xff] }
0x1d96   :  { %7767 = vmatpush3.xpose.msk.msra.mxu0 %vm261_vm2, %v4758_v40  ;;  %7768 = vmatprep.mubr.msk.f32.mxu0 %vm8529_vm1, %v8528_v46 }
0x1d97   :  { %7776 = vmatprep.subr.mxu0 %v8528_v46  ;;  %7773 = vmatprep.mubr.msk.f32.mxu1 %vm8529_vm1, %v8528_v46 }
0x1d99   :  { %7769 = vmatmul.mubr.msk.f32.vlgmr.msra.gmra.mrb[58].mxu0 %vm261_vm2, %v4756_v42 }
0x1d9a   :  { %7778 = vmatprep.mubr.msk.f32.mxu0 %vm8529_vm1, %v8528_v46 }
0x1e64   :  { %v4595_v45 = vpop.f32.mrb[50].mxu1 }
0x1e65   :  { %v4675_v24 = vadd.f32 %v4595_v45, %v4269_v11  ;;  %v7755_v48 = vpop.f32.mrb[51].mxu1  ;;  %v5061_v45 = vld [vmem:[%s9712_s1 + $0x130] sm:$0xff] }
0x1e68   :  { %v4671_v61 = vpop.f32.mrb[56].mxu0  ;;  %v4751_v29 = vpop.f32.mrb[52].mxu1 }
0x1e69   :  { %v4676_v49 = vadd.f32 %v4671_v61, %v9296_v57  ;;  %v4752_v52 = vadd.f32 %v4751_v29, %v8679_v4  ;;  %v7760_v54 = vpop.f32.mrb[57].mxu0  ;;  %v7765_v55 = vpop.f32.mrb[53].mxu1 }
0x1e6b   :  { %v4833_v56 = vsel %vm261_vm2, %v4752_v52, -inf }
0x1e6c   :  { %v4829_v58 = vpop.f32.mrb[58].mxu0  ;;  %4834 = vmax.xlane.f32.xlu0 %v4833_v56 }
0x1e6d   :  { %v4830_v60 = vadd.f32 %v4829_v58, %v8679_v4  ;;  %v7770_v2 = vpop.f32.mrb[59].mxu0  ;;  %v7093_v58 = vld [vmem:[%s9713_s2 + $0x18] ss:$0 sm:$0xff] }
0x1e6e   :  { %v7094_v2 = vld [vmem:[%s9713_s2 + $0x19] ss:$0 sm:$0xff] }
0x1e6f   :  { %v4836_v38 = vsel %vm261_vm2, %v4830_v60, -inf }
0x1e70   :  { %4837 = vmax.xlane.f32.xlu1 %v4836_v38 }
0x1e81   :  { %4931 = vrot.lane.b32.xlu1 %v9250_v13, %s8539_s25 }
0x1ef9   :  { %v4835_v43 = vpop.xlane.xlu0 %4834 }
0x1efa   :  { %v4839_v7 = vsub.f32 %v4752_v52, %v4835_v43 }
0x1efc   :  { %v4841_v8 = vmul.f32 1.442695, %v4839_v7 }
0x1efd   :  { %v4838_v9 = vpop.xlane.xlu1 %4837 }
0x1efe   :  { %8438 = vpow2.f32 %v4841_v8  ;;  %v4840_v51 = vsub.f32 %v4830_v60, %v4838_v9 }
0x1f00   :  { %v4843_v57 = vmul.f32 1.442695, %v4840_v51 }
0x1f01   :  { %v4932_v59 = vpop.permute.xlu1 %4931 }
0x1f02   :  { %8440 = vpow2.f32 %v4843_v57  ;;  %7777 = vmatpush3.msra.mxu0 %v4932_v59 }
0x1f08   :  { %v8439_v62 = vpop.eup %8438 }
0x1f09   :  { %v4845_v4 = vsel %vm261_vm2, %v8439_v62, 0.0 }
0x1f0a   :  { %4846 = vadd.xlane.f32.xlu0 %v4845_v4  ;;  %v8498_v4 = vld [vmem:[%s9711_s0 + $0x48] sm:$0xff] }
0x1f0c   :  { %v8441_v10 = vpop.eup %8440 }
0x1f0d   :  { %v4848_v39 = vsel %vm261_vm2, %v8441_v10, 0.0 }
0x1f0e   :  { %4849 = vadd.xlane.f32.xlu0 %v4848_v39  ;;  %v5170_v39 = vld [vmem:[%s9712_s1 + $0x148] sm:$0xff] }
0x1f24   :  { %4855 = vrot.lane.b32.xlu0 %v9214_v50, %s8539_s25  ;;  %v7092_v50 = vld [vmem:[%s9713_s2 + $0x12] ss:$0 sm:$0xff] }
0x1f97   :  { %v4847_v13 = vpop.xlane.xlu0 %4846 }
0x1f98   :  { %8442 = vrcp.f32 %v4847_v13  ;;  %v5171_v13 = vld [vmem:[%s9712_s1 + $0x150] sm:$0xff] }
0x1f9b   :  { %v4850_v1 = vpop.xlane.xlu0 %4849 }
0x1f9c   :  { %8444 = vrcp.f32 %v4850_v1 }
0x1f9f   :  { %v4856_v0 = vpop.permute.xlu0 %4855 }
0x1fa0   :  { %7772 = vmatpush3.msra.mxu1 %v4856_v0  ;;  %v5172_v0 = vld [vmem:[%s9712_s1 + $0x158] sm:$0xff] }
0x1fa2   :  { %v8443_v11 = vpop.eup %8442 }
0x1fa3   :  { %v4853_v12 = vmul.f32 %v8443_v11, %v8439_v62  ;;  %v8497_v62 = vld [vmem:[%s9711_s0 + $0x40] sm:$0xff]  ;;  %v8094_v11 = vpack.c.bf16 %v5172_v0, %v5171_v13 }
0x1fa5   :  { %7774 = vmatmul.mubr.msk.f32.vlgmr.msra.gmra.mrb[54].mxu1 %vm261_vm2, %v4853_v12  ;;  %v8501_v12 = vld [vmem:[%s9711_s0 + $0x28] sm:$0xff] }
0x1fa6   :  { %v8445_v14 = vpop.eup %8444 }
0x1fa7   :  { %v4854_v16 = vmul.f32 %v8445_v14, %v8441_v10  ;;  %v5169_v10 = vld [vmem:[%s9712_s1 + $0x140] sm:$0xff]  ;;  %v8502_v14 = vld [vmem:[%s9711_s0 + $0x30] sm:$0xff] }
0x1fa8   :  { %v8090_v1 = vpack.c.bf16 %v5170_v39, %v5169_v10 }
0x1fa9   :  { %7779 = vmatmul.mubr.msk.f32.vlgmr.msra.gmra.mrb[60].mxu0 %vm261_vm2, %v4854_v16  ;;  %v8503_v16 = vld [vmem:[%s9711_s0 + $0x38] sm:$0xff] }
0x1faa   :  { %7806 = vmatprep.mubr.msk.f32.mxu0 %vm35_vm0, %v8496_v63  ;;  %8091 = vmatprep.subr.bf16.mxu0 %v8090_v1 }
0x1fab   :  { %8093 = vmatpush3.bf16.msra.mxu0 %v8090_v1 }
0x1fac   :  { %8095 = vmatprep.subr.bf16.mxu0 %v8094_v11 }
0x1faf   :  { %8097 = vmatpush3.bf16.msra.mxu0 %v8094_v11 }
0x1fb0   :  { %8098 = vmatprep.subr.bf16.mxu0 %v8540_v15 }
0x1fb2   :  { %7807 = vmatmul.mubr.msk.f32.vlgmr.msra.gmra.mrb[62].mxu0 %vm35_vm0, %v8501_v12 }
0x1fb3   :  { %7809 = vmatprep.mubr.msk.f32.mxu0 %vm35_vm0, %v8502_v14 }
0x1fb6   :  { %7810 = vmatmul.mubr.msk.f32.gmra.mrb[64].mxu0 %vm35_vm0, %v8503_v16 }
0x1fb7   :  { %7816 = vmatprep.mubr.msk.f32.mxu0 %vm8529_vm1, %v8528_v46 }
0x2078   :  { %v4927_v3 = vpop.f32.mrb[54].mxu1 }
0x2079   :  { %v5007_v6 = vadd.f32 %v4927_v3, %v4675_v24  ;;  %v7775_v17 = vpop.f32.mrb[55].mxu1  ;;  %v5062_v24 = vld [vmem:[%s9712_s1 + $0x138] sm:$0xff]  ;;  %v7095_v3 = vld [vmem:[%s9713_s2 + $0x13] ss:$0 sm:$0xff] }
0x207a   :  { %v8086_v48 = vpack.c.bf16 %v5062_v24, %v5061_v45 }
0x207b   :  { %v5013_v41 = vadd.f32 %v7092_v50, %v5007_v6 }
0x207c   :  { %v5003_v19 = vpop.f32.mrb[60].mxu0 }
0x207d   :  { %v5008_v20 = vadd.f32 %v5003_v19, %v4676_v49  ;;  %v7780_v21 = vpop.f32.mrb[61].mxu0  ;;  %v5015_v47 = vadd.f32 %v5013_v41, %v9165_v34 }
0x207f   :  { %v5014_v18 = vadd.f32 %v7092_v50, %v5008_v20  ;;  %v5019_v22 = vsel %vm35_vm0, %v5015_v47, 0.0 }
0x2080   :  { %5020 = vadd.xlane.f32.xlu1 %v5019_v22 }
0x2081   :  { %v5016_v23 = vadd.f32 %v5014_v18, %v9163_v44  ;;  %v5059_v44 = vld [vmem:[%s9712_s1 + $0x120] sm:$0xff] }
0x2082   :  { %v8082_v42 = vpack.c.bf16 %v5060_v28, %v5059_v44 }
0x2083   :  { %v5022_v25 = vsel %vm35_vm0, %v5016_v23, 0.0 }
0x2084   :  { %5023 = vadd.xlane.f32.xlu0 %v5022_v25  ;;  %8083 = vmatprep.subr.bf16.mxu1 %v8082_v42 }
0x2085   :  { %8085 = vmatpush3.bf16.msra.mxu1 %v8082_v42 }
0x2086   :  { %8087 = vmatprep.subr.bf16.mxu1 %v8086_v48 }
0x2089   :  { %8089 = vmatpush3.bf16.msra.mxu1 %v8086_v48 }
0x208a   :  { %8102 = vmatprep.subr.bf16.mxu1 %v8540_v15 }
0x210d   :  { %v5021_v26 = vpop.xlane.xlu1 %5020 }
0x210e   :  { %v5025_v27 = vmul.f32 0.03125, %v5021_v26 }
0x2110   :  { %v5027_v30 = vsub.f32 %v5015_v47, %v5025_v27  ;;  %v7808_v27 = vpop.f32.mrb[62].mxu0 }
0x2111   :  { %v5024_v31 = vpop.xlane.xlu0 %5023 }
0x2112   :  { %v5026_v32 = vmul.f32 0.03125, %v5024_v31  ;;  %v5029_v35 = vmul.f32 %v5027_v30, %v5027_v30 }
0x2114   :  { %v5028_v5 = vsub.f32 %v5016_v23, %v5026_v32  ;;  %v5031_v40 = vsel %vm35_vm0, %v5029_v35, 0.0 }
0x2115   :  { %5032 = vadd.xlane.f32.xlu0 %v5031_v40 }
0x2116   :  { %v5030_v34 = vmul.f32 %v5028_v5, %v5028_v5 }
0x2118   :  { %v5034_v53 = vsel %vm35_vm0, %v5030_v34, 0.0 }
0x2119   :  { %5035 = vadd.xlane.f32.xlu1 %v5034_v53 }
0x21a2   :  { %v5033_v61 = vpop.xlane.xlu0 %5032 }
0x21a3   :  { %v5037_v29 = vmul.f32 0.03125, %v5033_v61 }
0x21a5   :  { %v5039_v49 = vadd.f32 1e-05, %v5037_v29 }
0x21a6   :  { %v5036_v52 = vpop.xlane.xlu1 %5035 }
0x21a7   :  { %8446 = vrsqrt.f32 %v5039_v49  ;;  %v5038_v54 = vmul.f32 0.03125, %v5036_v52 }
0x21a9   :  { %v5040_v55 = vadd.f32 1e-05, %v5038_v54 }
0x21ab   :  { %8448 = vrsqrt.f32 %v5040_v55 }
0x21b1   :  { %v8447_v56 = vpop.eup %8446 }
0x21b2   :  { %v5043_v60 = vmul.f32 %v8447_v56, %v5027_v30  ;;  %v5244_v30 = vpop.f32.mrb[63].mxu0 }
0x21b3   :  { %v7811_v32 = vpop.f32.mrb[64].mxu0 }
0x21b4   :  { %v5049_v38 = vmul.f32 %v7093_v58, %v5043_v60  ;;  %v5254_v40 = vpop.f32.mrb[65].mxu0 }
0x21b5   :  { %v8449_v43 = vpop.eup %8448 }
0x21b6   :  { %v5044_v7 = vmul.f32 %v8449_v43, %v5028_v5  ;;  %v9379_v8 = vadd.f32 %v7094_v2, %v5049_v38 }
0x21b8   :  { %v5050_v9 = vmul.f32 %v7093_v58, %v5044_v7  ;;  %v5057_v51 = vadd.f32 %v9176_v36, %v9379_v8  ;;  %v8499_v36 = vld [vmem:[%s9711_s0 + $0x50] sm:$0xff] }
0x21b9   :  { %v7102_v58 = vld [vmem:[%s9713_s2 + $0x14] ss:$0 sm:$0xff] }
0x21ba   :  { %v9383_v57 = vadd.f32 %v7094_v2, %v5050_v9  ;;  %7789 = vmatprep.mubr.msk.f32.mxu1 %vm35_vm0, %v5057_v51  ;;  %v9486_v60 = vadd.f32 %v7808_v27, %v7102_v58  ;;  %v9488_v2 = vadd.f32 %v7102_v58, %v5244_v30  ;;  %v9490_v38 = vadd.f32 %v7811_v32, %v7102_v58 }
0x21bb   :  { %v9492_v43 = vadd.f32 %v7102_v58, %v5254_v40 }
0x21bc   :  { %v5058_v59 = vadd.f32 %v9183_v37, %v9383_v57  ;;  %v8500_v37 = vld [vmem:[%s9711_s0 + $0x58] sm:$0xff]  ;;  %v9496_v7 = vpack.i.bf16 %v9486_v60, %v9488_v2  ;;  %v8121_v9 = vpack.c.bf16 %v9486_v60, %v9488_v2 }
0x21bd   :  { %v9502_v51 = vpack.i.bf16 %v9490_v38, %v9492_v43 }
0x21be   :  { %7790 = vmatmul.mubr.msk.f32.vlgmr.msra.gmra.mrb[56].mxu1 %vm35_vm0, %v5058_v59  ;;  %v8124_v59 = vpack.c.bf16 %v9490_v38, %v9492_v43 }
0x21bf   :  { %7792 = vmatprep.mubr.msk.f32.mxu1 %vm35_vm0, %v8497_v62 }
0x21c2   :  { %7793 = vmatmul.mubr.msk.f32.gmra.mrb[58].mxu1 %vm35_vm0, %v8498_v4 }
0x21c3   :  { %7795 = vmatprep.mubr.msk.f32.mxu1 %vm35_vm0, %v8499_v36 }
0x21c6   :  { %7796 = vmatmul.mubr.msk.f32.gmra.mrb[60].mxu1 %vm35_vm0, %v8500_v37 }
0x21c7   :  { %7823 = vmatprep.mubr.msk.f32.mxu1 %vm8529_vm1, %v8528_v46 }
0x2291   :  { %v7791_v63 = vpop.f32.mrb[56].mxu1 }
0x2292   :  { %v5140_v50 = vpop.f32.mrb[57].mxu1  ;;  %v9453_v26 = vadd.f32 %v7791_v63, %v7095_v3 }
0x2293   :  { %v9441_v23 = vadd.f32 %v7095_v3, %v5140_v50 }
0x2295   :  { %v7794_v6 = vpop.f32.mrb[58].mxu1 }
0x2296   :  { %v5156_v17 = vadd.f32 %v7794_v6, %v7095_v3  ;;  %v5150_v41 = vpop.f32.mrb[59].mxu1 }
0x2297   :  { %v5151_v19 = vadd.f32 %v7095_v3, %v5150_v41 }
0x2299   :  { %v7797_v20 = vpop.f32.mrb[60].mxu1  ;;  %v9437_v21 = vpack.i.bf16 %v5156_v17, %v5151_v19 }
0x229a   :  { %v5166_v47 = vadd.f32 %v7797_v20, %v7095_v3  ;;  %v5160_v18 = vpop.f32.mrb[61].mxu1 }
0x229b   :  { %v5161_v22 = vadd.f32 %v7095_v3, %v5160_v18  ;;  %8265 = vrot.lane.b32.xlu0 %v9437_v21, %s8530_s15 }
0x229d   :  { %v9443_v25 = vpack.i.bf16 %v5166_v47, %v5161_v22 }
0x229f   :  { %8270 = vrot.lane.b32.xlu1 %v9443_v25, %s8530_s15  ;;  %5452 = vrot.lane.b32.xlu0 %v9441_v23, %s8532_s17 }
0x22a3   :  { %8275 = vrot.lane.b32.xlu1 %v9437_v21, %s8531_s16 }
0x22a7   :  { %8280 = vrot.lane.b32.xlu1 %v9443_v25, %s8531_s16 }
0x22ab   :  { %5534 = vrot.lane.b32.xlu1 %v9453_v26, %s8532_s17 }
0x230d   :  { %v8266_v31 = vpop.permute.xlu0 %8265 }
0x230e   :  { %v8268_v35 = vunpack.i.h.bf16 %v8266_v31  ;;  %v8267_v5 = vunpack.i.l.bf16 %v8266_v31 }
0x2310   :  { %v8099_v34 = vpack.c.bf16 %v8268_v35, %v8267_v5 }
0x2311   :  { %v8271_v53 = vpop.permute.xlu1 %8270  ;;  %v5453_v55 = vpop.permute.xlu0 %5452 }
0x2312   :  { %v8273_v44 = vunpack.i.h.bf16 %v8271_v53  ;;  %v8272_v28 = vunpack.i.l.bf16 %v8271_v53  ;;  %8101 = vmatpush3.bf16.xpose.msk.msra.mxu0 %vm8908_vm4, %v8099_v34 }
0x2313   :  { %8106 = vmatprep.subr.bf16.mxu0 %v8540_v15 }
0x2314   :  { %v8103_v42 = vpack.c.bf16 %v8273_v44, %v8272_v28 }
0x2315   :  { %v8276_v45 = vpop.permute.xlu1 %8275 }
0x2316   :  { %v8278_v24 = vunpack.i.h.bf16 %v8276_v45  ;;  %v8277_v48 = vunpack.i.l.bf16 %v8276_v45  ;;  %8105 = vmatpush3.bf16.xpose.msk.msra.mxu1 %vm8908_vm4, %v8103_v42 }
0x2317   :  { %8110 = vmatprep.subr.bf16.mxu1 %v8540_v15 }
0x2318   :  { %v8107_v61 = vpack.c.bf16 %v8278_v24, %v8277_v48 }
0x2319   :  { %v8281_v29 = vpop.permute.xlu1 %8280  ;;  %7817 = vmatmul.mubr.msk.f32.vlgmr.msra.gmra.mrb[66].mxu0 %vm261_vm2, %v9441_v23 }
0x231a   :  { %v8283_v49 = vunpack.i.h.bf16 %v8281_v29  ;;  %v8282_v52 = vunpack.i.l.bf16 %v8281_v29  ;;  %8109 = vmatpush3.bf16.xpose.msk.msra.mxu0 %vm8908_vm4, %v8107_v61  ;;  %7830 = vmatprep.mubr.msk.f32.mxu0 %vm8529_vm1, %v8528_v46 }
0x231b   :  { %8114 = vmatprep.subr.bf16.mxu0 %v8540_v15 }
0x231c   :  { %v8111_v54 = vpack.c.bf16 %v8283_v49, %v8282_v52 }
0x231d   :  { %7824 = vmatmul.mubr.msk.f32.vlgmr.msra.gmra.mrb[62].mxu1 %vm261_vm2, %v9453_v26  ;;  %v5535_v56 = vpop.permute.xlu1 %5534 }
0x231e   :  { %8113 = vmatpush3.bf16.xpose.msk.msra.mxu1 %vm8908_vm4, %v8111_v54  ;;  %7837 = vmatprep.mubr.msk.f32.mxu1 %vm8529_vm1, %v8528_v46 }
0x231f   :  { %8117 = vmatprep.subr.bf16.mxu1 %v8540_v15 }
0x2321   :  { %7831 = vmatmul.mubr.msk.f32.vlgmr.msra.gmra.mrb[68].mxu0 %vm261_vm2, %v5453_v55 }
0x2322   :  { %7844 = vmatprep.mubr.msk.f32.mxu0 %vm8529_vm1, %v8528_v46 }
0x2325   :  { %7838 = vmatmul.mubr.msk.f32.vlgmr.msra.gmra.mrb[64].mxu1 %vm261_vm2, %v5535_v56 }
0x2326   :  { %7851 = vmatprep.mubr.msk.f32.mxu1 %vm8529_vm1, %v8528_v46 }
0x23ec   :  { %v5343_v62 = vpop.f32.mrb[66].mxu0 }
0x23ed   :  { %v7818_v4 = vpop.f32.mrb[67].mxu0  ;;  %v5430_v12 = vsel %vm2022_vm5, %v5343_v62, -inf }
0x23f0   :  { %v5426_v36 = vpop.f32.mrb[62].mxu1 }
0x23f1   :  { %v7825_v37 = vpop.f32.mrb[63].mxu1  ;;  %v5433_v14 = vsel %vm2022_vm5, %v5426_v36, -inf }
0x23f4   :  { %v5530_v10 = vpop.f32.mrb[68].mxu0 }
0x23f5   :  { %v7832_v39 = vpop.f32.mrb[69].mxu0  ;;  %v5616_v13 = vsel %vm2022_vm5, %v5530_v10, -inf }
0x23f6   :  { %5617 = vmax.xlane.f32.xlu0 %v5616_v13 }
0x23f8   :  { %v5612_v1 = vpop.f32.mrb[64].mxu1 }
0x23f9   :  { %v7839_v0 = vpop.f32.mrb[65].mxu1  ;;  %v5619_v11 = vsel %vm2022_vm5, %v5612_v1, -inf }
0x23fa   :  { %5620 = vmax.xlane.f32.xlu1 %v5619_v11  ;;  %5431 = vmax.xlane.f32.xlu0 %v5430_v12 }
0x23fe   :  { %5434 = vmax.xlane.f32.xlu0 %v5433_v14 }
0x2483   :  { %v5618_v16 = vpop.xlane.xlu0 %5617 }
0x2484   :  { %v5622_v63 = vsub.f32 %v5530_v10, %v5618_v16 }
0x2486   :  { %v5624_v17 = vmul.f32 1.442695, %v5622_v63 }
0x2487   :  { %v5432_v50 = vpop.xlane.xlu0 %5431  ;;  %v5621_v32 = vpop.xlane.xlu1 %5620 }
0x2488   :  { %v5436_v3 = vsub.f32 %v5343_v62, %v5432_v50  ;;  %v5623_v35 = vsub.f32 %v5612_v1, %v5621_v32 }
0x248a   :  { %v5438_v6 = vmul.f32 1.442695, %v5436_v3  ;;  %v5626_v5 = vmul.f32 1.442695, %v5623_v35 }
0x248b   :  { %v5435_v41 = vpop.xlane.xlu0 %5434 }
0x248c   :  { %v5437_v19 = vsub.f32 %v5426_v36, %v5435_v41  ;;  %8450 = vpow2.f32 %v5438_v6 }
0x248d   :  { %8452 = vpow2.f32 %v5624_v17 }
0x248e   :  { %v5440_v20 = vmul.f32 1.442695, %v5437_v19 }
0x2490   :  { %8454 = vpow2.f32 %v5440_v20 }
0x2491   :  { %8456 = vpow2.f32 %v5626_v5 }
0x2496   :  { %v8451_v47 = vpop.eup %8450 }
0x2497   :  { %v5442_v18 = vsel %vm2022_vm5, %v8451_v47, 0.0  ;;  %v8453_v22 = vpop.eup %8452 }
0x2498   :  { %5443 = vadd.xlane.f32.xlu0 %v5442_v18  ;;  %v5628_v31 = vsel %vm2022_vm5, %v8453_v22, 0.0 }
0x249a   :  { %v9511_v27 = vpop.eup %8454 }
0x249b   :  { %v5445_v30 = vsel %vm2022_vm5, %v9511_v27, 0.0  ;;  %v8457_v40 = vpop.eup %8456 }
0x249c   :  { %5446 = vadd.xlane.f32.xlu1 %v5445_v30  ;;  %5629 = vadd.xlane.f32.xlu0 %v5628_v31  ;;  %v5631_v34 = vsel %vm2022_vm5, %v8457_v40, 0.0 }
0x24ad   :  { %8290 = vrot.lane.b32.xlu1 %v9502_v51, %s8530_s15 }
0x24b1   :  { %8295 = vrot.lane.b32.xlu1 %v9437_v21, %s8534_s20 }
0x24b2   :  { %8285 = vrot.lane.b32.xlu0 %v9496_v7, %s8530_s15 }
0x24b6   :  { %5946 = vrot.lane.b32.xlu0 %v9441_v23, %s8535_s21 }
0x24d5   :  { %5632 = vadd.xlane.f32.xlu1 %v5631_v34 }
0x24e6   :  { %8300 = vrot.lane.b32.xlu1 %v9443_v25, %s8534_s20 }
0x24ea   :  { %6028 = vrot.lane.b32.xlu1 %v9453_v26, %s8535_s21 }
0x2525   :  { %v5444_v53 = vpop.xlane.xlu0 %5443 }
0x2529   :  { %v5447_v44 = vpop.xlane.xlu1 %5446  ;;  %v5630_v28 = vpop.xlane.xlu0 %5629 }
0x252a   :  { %8458 = vrcp.f32 %v5630_v28 }
0x252b   :  { %8460 = vrcp.f32 %v5444_v53 }
0x252d   :  { %v8291_v42 = vpop.permute.xlu1 %8290  ;;  %v8286_v48 = vpop.permute.xlu0 %8285 }
0x252e   :  { %v8293_v45 = vunpack.i.h.bf16 %v8291_v42  ;;  %v8292_v24 = vunpack.i.l.bf16 %v8291_v42  ;;  %v8288_v61 = vunpack.i.h.bf16 %v8286_v48  ;;  %v8287_v29 = vunpack.i.l.bf16 %v8286_v48 }
0x2530   :  { %v8118_v49 = vpack.c.bf16 %v8293_v45, %v8292_v24  ;;  %v8115_v52 = vpack.c.bf16 %v8288_v61, %v8287_v29 }
0x2531   :  { %v8296_v58 = vpop.permute.xlu1 %8295  ;;  %v5947_v60 = vpop.permute.xlu0 %5946 }
0x2532   :  { %8119 = vmatpush3.bf16.msra.mxu1 %v8118_v49  ;;  %8116 = vmatpush3.bf16.msra.mxu0 %v8115_v52  ;;  %v8298_v4 = vunpack.i.h.bf16 %v8296_v58  ;;  %v8297_v36 = vunpack.i.l.bf16 %v8296_v58 }
0x2533   :  { %8123 = vmatprep.subr.bf16.mxu1 %v8540_v15  ;;  %8120 = vmatprep.subr.bf16.mxu0 %v8540_v15 }
0x2534   :  { %v8459_v54 = vpop.eup %8458  ;;  %v8127_v37 = vpack.c.bf16 %v8298_v4, %v8297_v36 }
0x2535   :  { %v5636_v55 = vmul.f32 %v8459_v54, %v8453_v22  ;;  %v8461_v56 = vpop.eup %8460 }
0x2536   :  { %v5450_v62 = vmul.f32 %v8461_v56, %v8451_v47 }
0x2537   :  { %7845 = vmatmul.mubr.msk.f32.vlgmr.msra.gmra.mrb[70].mxu0 %vm2022_vm5, %v5636_v55 }
0x2538   :  { %8122 = vmatpush3.bf16.msra.mxu0 %v8121_v9  ;;  %7858 = vmatprep.mubr.msk.f32.mxu0 %vm8529_vm1, %v8528_v46 }
0x2539   :  { %8126 = vmatprep.subr.bf16.mxu0 %v8540_v15 }
0x253b   :  { %7859 = vmatmul.mubr.msk.f32.vlgmr.msra.gmra.mrb[72].mxu0 %vm2022_vm5, %v5450_v62 }
0x253c   :  { %7872 = vmatprep.mubr.msk.f32.mxu0 %vm8529_vm1, %v8528_v46 }
0x2541   :  { %8129 = vmatpush3.bf16.xpose.msk.msra.mxu0 %vm8908_vm4, %v8127_v37 }
0x2542   :  { %8134 = vmatprep.subr.bf16.mxu0 %v8540_v15 }
0x2548   :  { %7873 = vmatmul.mubr.msk.f32.vlgmr.msra.gmra.mrb[74].mxu0 %vm261_vm2, %v5947_v60 }
0x2549   :  { %7886 = vmatprep.mubr.msk.f32.mxu0 %vm8529_vm1, %v8528_v46 }
0x2562   :  { %v5633_v2 = vpop.xlane.xlu1 %5632 }
0x2563   :  { %8462 = vrcp.f32 %v5633_v2 }
0x2564   :  { %8464 = vrcp.f32 %v5447_v44 }
0x2566   :  { %v8301_v13 = vpop.permute.xlu1 %8300 }
0x2567   :  { %v8303_v0 = vunpack.i.h.bf16 %v8301_v13  ;;  %v8302_v11 = vunpack.i.l.bf16 %v8301_v13 }
0x2569   :  { %v8131_v12 = vpack.c.bf16 %v8303_v0, %v8302_v11 }
0x256a   :  { %v6029_v38 = vpop.permute.xlu1 %6028 }
0x256d   :  { %v8463_v9 = vpop.eup %8462 }
0x256e   :  { %v5637_v10 = vmul.f32 %v8463_v9, %v8457_v40  ;;  %v8465_v39 = vpop.eup %8464 }
0x256f   :  { %v5451_v1 = vmul.f32 %v8465_v39, %v9511_v27 }
0x2570   :  { %7852 = vmatmul.mubr.msk.f32.vlgmr.msra.gmra.mrb[66].mxu1 %vm2022_vm5, %v5637_v10 }
0x2571   :  { %8125 = vmatpush3.bf16.msra.mxu1 %v8124_v59  ;;  %7865 = vmatprep.mubr.msk.f32.mxu1 %vm8529_vm1, %v8528_v46 }
0x2572   :  { %8130 = vmatprep.subr.bf16.mxu1 %v8540_v15 }
0x2574   :  { %7866 = vmatmul.mubr.msk.f32.vlgmr.msra.gmra.mrb[68].mxu1 %vm2022_vm5, %v5451_v1 }
0x2575   :  { %7879 = vmatprep.mubr.msk.f32.mxu1 %vm8529_vm1, %v8528_v46 }
0x257a   :  { %8133 = vmatpush3.bf16.xpose.msk.msra.mxu1 %vm8908_vm4, %v8131_v12 }
0x257b   :  { %8137 = vmatprep.subr.bf16.mxu1 %v8540_v15 }
0x2581   :  { %7880 = vmatmul.mubr.msk.f32.vlgmr.msra.gmra.mrb[70].mxu1 %vm261_vm2, %v6029_v38 }
0x2582   :  { %7893 = vmatprep.mubr.msk.f32.mxu1 %vm8529_vm1, %v8528_v46 }
0x260a   :  { %v5715_v43 = vpop.f32.mrb[70].mxu0 }
0x260b   :  { %v7846_v59 = vpop.f32.mrb[71].mxu0 }
0x260e   :  { %v5869_v14 = vpop.f32.mrb[72].mxu0 }
0x260f   :  { %v9564_v16 = vadd.f32 %v5869_v14, %v5715_v43  ;;  %v7860_v63 = vpop.f32.mrb[73].mxu0 }
0x261b   :  { %v6024_v50 = vpop.f32.mrb[74].mxu0 }
0x261c   :  { %v7874_v3 = vpop.f32.mrb[75].mxu0  ;;  %v6110_v6 = vsel %vm2022_vm5, %v6024_v50, -inf }
0x261d   :  { %6111 = vmax.xlane.f32.xlu0 %v6110_v6 }
0x2643   :  { %v5796_v17 = vpop.f32.mrb[66].mxu1 }
0x2644   :  { %v7853_v41 = vpop.f32.mrb[67].mxu1 }
0x2647   :  { %v5942_v19 = vpop.f32.mrb[68].mxu1 }
0x2648   :  { %v9567_v20 = vadd.f32 %v5942_v19, %v5796_v17  ;;  %v7867_v47 = vpop.f32.mrb[69].mxu1 }
0x2654   :  { %v6106_v18 = vpop.f32.mrb[70].mxu1 }
0x2655   :  { %v7881_v22 = vpop.f32.mrb[71].mxu1  ;;  %v6113_v27 = vsel %vm2022_vm5, %v6106_v18, -inf }
0x2656   :  { %6114 = vmax.xlane.f32.xlu1 %v6113_v27 }
0x2667   :  { %8310 = vrot.lane.b32.xlu1 %v9502_v51, %s8536_s22 }
0x266b   :  { %8315 = vrot.lane.b32.xlu1 %v9437_v21, %s8537_s23 }
0x266f   :  { %8320 = vrot.lane.b32.xlu1 %v9443_v25, %s8537_s23 }
0x2673   :  { %6374 = vrot.lane.b32.xlu1 %v9453_v26, %s8538_s24 }
0x26aa   :  { %v6112_v30 = vpop.xlane.xlu0 %6111 }
0x26ab   :  { %v6116_v31 = vsub.f32 %v6024_v50, %v6112_v30 }
0x26ad   :  { %v6118_v32 = vmul.f32 1.442695, %v6116_v31 }
0x26af   :  { %8466 = vpow2.f32 %v6118_v32 }
0x26b9   :  { %v8467_v35 = vpop.eup %8466 }
0x26ba   :  { %v6122_v5 = vsel %vm2022_vm5, %v8467_v35, 0.0 }
0x26bb   :  { %6123 = vadd.xlane.f32.xlu0 %v6122_v5 }
0x26e3   :  { %v6115_v40 = vpop.xlane.xlu1 %6114 }
0x26e4   :  { %v6117_v34 = vsub.f32 %v6106_v18, %v6115_v40 }
0x26e6   :  { %v6120_v53 = vmul.f32 1.442695, %v6117_v34 }
0x26e7   :  { %v8311_v44 = vpop.permute.xlu1 %8310 }
0x26e8   :  { %8468 = vpow2.f32 %v6120_v53  ;;  %v8313_v21 = vunpack.i.h.bf16 %v8311_v44  ;;  %v8312_v28 = vunpack.i.l.bf16 %v8311_v44 }
0x26ea   :  { %v8138_v42 = vpack.c.bf16 %v8313_v21, %v8312_v28 }
0x26eb   :  { %v8316_v24 = vpop.permute.xlu1 %8315 }
0x26ec   :  { %8139 = vmatpush3.bf16.msra.mxu1 %v8138_v42  ;;  %v8318_v36 = vunpack.i.h.bf16 %v8316_v24 }
0x26ed   :  { %8144 = vmatprep.subr.bf16.mxu1 %v8540_v15 }
0x26ef   :  { %v8321_v52 = vpop.permute.xlu1 %8320 }
0x26f0   :  { %v8323_v56 = vunpack.i.h.bf16 %v8321_v52  ;;  %v8322_v58 = vunpack.i.l.bf16 %v8321_v52 }
0x26f2   :  { %v8469_v25 = vpop.eup %8468  ;;  %v8145_v60 = vpack.c.bf16 %v8323_v56, %v8322_v58 }
0x26f3   :  { %v6125_v26 = vsel %vm2022_vm5, %v8469_v25, 0.0  ;;  %v6375_v9 = vpop.permute.xlu1 %6374 }
0x26f4   :  { %6126 = vadd.xlane.f32.xlu0 %v6125_v26 }
0x270a   :  { %8305 = vrot.lane.b32.xlu0 %v9496_v7, %s8536_s22 }
0x270e   :  { %6292 = vrot.lane.b32.xlu0 %v9441_v23, %s8538_s24  ;;  %v8317_v23 = vunpack.i.l.bf16 %v8316_v24 }
0x2710   :  { %v8141_v2 = vpack.c.bf16 %v8318_v36, %v8317_v23 }
0x2748   :  { %v6124_v45 = vpop.xlane.xlu0 %6123 }
0x2749   :  { %8470 = vrcp.f32 %v6124_v45 }
0x2753   :  { %v8471_v54 = vpop.eup %8470 }
0x2754   :  { %v6130_v62 = vmul.f32 %v8471_v54, %v8467_v35 }
0x2781   :  { %v6127_v48 = vpop.xlane.xlu0 %6126 }
0x2782   :  { %8472 = vrcp.f32 %v6127_v48 }
0x2785   :  { %v8306_v61 = vpop.permute.xlu0 %8305 }
0x2786   :  { %v8308_v29 = vunpack.i.h.bf16 %v8306_v61  ;;  %v8307_v49 = vunpack.i.l.bf16 %v8306_v61 }
0x2788   :  { %v8135_v55 = vpack.c.bf16 %v8308_v29, %v8307_v49 }
0x2789   :  { %v6293_v10 = vpop.permute.xlu0 %6292 }
0x278a   :  { %8136 = vmatpush3.bf16.msra.mxu0 %v8135_v55 }
0x278b   :  { %8140 = vmatprep.subr.bf16.mxu0 %v8540_v15 }
0x278c   :  { %v8473_v4 = vpop.eup %8472 }
0x278d   :  { %v6131_v37 = vmul.f32 %v8473_v4, %v8469_v25  ;;  %7887 = vmatmul.mubr.msk.f32.vlgmr.msra.gmra.mrb[76].mxu0 %vm2022_vm5, %v6130_v62 }
0x278e   :  { %7900 = vmatprep.mubr.msk.f32.mxu0 %vm8529_vm1, %v8528_v46 }
0x278f   :  { %7894 = vmatmul.mubr.msk.f32.vlgmr.msra.gmra.mrb[72].mxu1 %vm2022_vm5, %v6131_v37 }
0x2790   :  { %8147 = vmatpush3.bf16.xpose.msk.msra.mxu1 %vm8908_vm4, %v8145_v60  ;;  %7907 = vmatprep.mubr.msk.f32.mxu1 %vm8529_vm1, %v8528_v46  ;;  %v6687_v60 = vld [vmem:[%s9712_s1 + $0x168] sm:$0xff] }
0x2791   :  { %8151 = vmatprep.subr.bf16.mxu1 %v8540_v15 }
0x2793   :  { %8143 = vmatpush3.bf16.xpose.msk.msra.mxu0 %vm8908_vm4, %v8141_v2 }
0x2794   :  { %8148 = vmatprep.subr.bf16.mxu0 %v8540_v15 }
0x2797   :  { %7908 = vmatmul.mubr.msk.f32.vlgmr.msra.gmra.mrb[74].mxu1 %vm261_vm2, %v6375_v9  ;;  %v6688_v9 = vld [vmem:[%s9712_s1 + $0x170] sm:$0xff] }
0x2798   :  { %7921 = vmatprep.mubr.msk.f32.mxu1 %vm8529_vm1, %v8528_v46 }
0x279a   :  { %7901 = vmatmul.mubr.msk.f32.vlgmr.msra.gmra.mrb[78].mxu0 %vm261_vm2, %v6293_v10  ;;  %v6689_v10 = vld [vmem:[%s9712_s1 + $0x178] sm:$0xff] }
0x279b   :  { %7914 = vmatprep.mubr.msk.f32.mxu0 %vm8529_vm1, %v8528_v46 }
0x2860   :  { %v6207_v39 = vpop.f32.mrb[76].mxu0 }
0x2861   :  { %v6290_v13 = vadd.f32 %v6207_v39, %v9564_v16  ;;  %v7888_v1 = vpop.f32.mrb[77].mxu0  ;;  %v8158_v39 = vpack.c.bf16 %v6689_v10, %v6688_v9  ;;  %v7148_v9 = vld [vmem:[%s9713_s2 + $0x1c] ss:$0 sm:$0xff] }
0x2862   :  { %v6286_v33 = vpop.f32.mrb[72].mxu1  ;;  %v6779_v1 = vld [vmem:[%s9712_s1 + $0x188] sm:$0xff] }
0x2863   :  { %v6291_v0 = vadd.f32 %v6286_v33, %v9567_v20  ;;  %v7895_v15 = vpop.f32.mrb[73].mxu1  ;;  %v6780_v33 = vld [vmem:[%s9712_s1 + $0x190] sm:$0xff] }
0x2864   :  { %v6781_v15 = vld [vmem:[%s9712_s1 + $0x198] sm:$0xff] }
0x286a   :  { %v6452_v11 = vpop.f32.mrb[74].mxu1 }
0x286b   :  { %v7909_v12 = vpop.f32.mrb[75].mxu1  ;;  %v6459_v38 = vsel %vm2022_vm5, %v6452_v11, -inf }
0x286c   :  { %6460 = vmax.xlane.f32.xlu1 %v6459_v38  ;;  %v6782_v12 = vld [vmem:[%s9712_s1 + $0x1a0] sm:$0xff]  ;;  %v6783_v38 = vld [vmem:[%s9712_s1 + $0x1a8] sm:$0xff] }
0x286d   :  { %v6370_v43 = vpop.f32.mrb[78].mxu0 }
0x286e   :  { %v7902_v59 = vpop.f32.mrb[79].mxu0  ;;  %v6456_v14 = vsel %vm2022_vm5, %v6370_v43, -inf }
0x286f   :  { %6457 = vmax.xlane.f32.xlu0 %v6456_v14 }
0x287d   :  { %8330 = vrot.lane.b32.xlu1 %v9502_v51, %s8539_s25 }
0x28f9   :  { %v6461_v46 = vpop.xlane.xlu1 %6460 }
0x28fa   :  { %v6463_v16 = vsub.f32 %v6452_v11, %v6461_v46  ;;  %v8166_v11 = vpack.c.bf16 %v6781_v15, %v6780_v33 }
0x28fc   :  { %v6458_v63 = vpop.xlane.xlu0 %6457  ;;  %v6466_v41 = vmul.f32 1.442695, %v6463_v16 }
0x28fd   :  { %v8331_v50 = vpop.permute.xlu1 %8330  ;;  %v6462_v3 = vsub.f32 %v6370_v43, %v6458_v63  ;;  %v8170_v43 = vpack.c.bf16 %v6783_v38, %v6782_v12 }
0x28fe   :  { %v8333_v6 = vunpack.i.h.bf16 %v8331_v50  ;;  %v8332_v17 = vunpack.i.l.bf16 %v8331_v50 }
0x28ff   :  { %v6464_v19 = vmul.f32 1.442695, %v6462_v3 }
0x2900   :  { %v8152_v20 = vpack.c.bf16 %v8333_v6, %v8332_v17  ;;  %v7140_v6 = vld [vmem:[%s9713_s2 + $0x1a] ss:$0 sm:$0xff] }
0x2901   :  { %8474 = vpow2.f32 %v6464_v19  ;;  %v7141_v19 = vld [vmem:[%s9713_s2 + $0x1b] ss:$0 sm:$0xff] }
0x2902   :  { %8153 = vmatpush3.bf16.msra.mxu1 %v8152_v20  ;;  %8476 = vpow2.f32 %v6466_v41 }
0x290b   :  { %v8475_v47 = vpop.eup %8474 }
0x290c   :  { %v6468_v18 = vsel %vm2022_vm5, %v8475_v47, 0.0  ;;  %v8477_v22 = vpop.eup %8476 }
0x290d   :  { %6469 = vadd.xlane.f32.xlu0 %v6468_v18  ;;  %v6471_v51 = vsel %vm2022_vm5, %v8477_v22, 0.0 }
0x2911   :  { %6472 = vadd.xlane.f32.xlu0 %v6471_v51 }
0x2927   :  { %8325 = vrot.lane.b32.xlu0 %v9496_v7, %s8539_s25  ;;  %v7139_v7 = vld [vmem:[%s9713_s2 + $0x15] ss:$0 sm:$0xff] }
0x299a   :  { %v6470_v27 = vpop.xlane.xlu0 %6469 }
0x299b   :  { %8478 = vrcp.f32 %v6470_v27  ;;  %v6784_v27 = vld [vmem:[%s9712_s1 + $0x1b0] sm:$0xff] }
0x299e   :  { %v6473_v30 = vpop.xlane.xlu0 %6472 }
0x299f   :  { %8480 = vrcp.f32 %v6473_v30  ;;  %v6785_v30 = vld [vmem:[%s9712_s1 + $0x1b8] sm:$0xff] }
0x29a2   :  { %v8326_v31 = vpop.permute.xlu0 %8325 }
0x29a3   :  { %v8328_v32 = vunpack.i.h.bf16 %v8326_v31  ;;  %v8327_v35 = vunpack.i.l.bf16 %v8326_v31  ;;  %v8174_v31 = vpack.c.bf16 %v6785_v30, %v6784_v27  ;;  %v7150_v27 = vld [vmem:[%s9713_s2 + $0x22] ss:$0 sm:$0xff] }
0x29a5   :  { %v8479_v5 = vpop.eup %8478  ;;  %v8149_v40 = vpack.c.bf16 %v8328_v32, %v8327_v35  ;;  %v7142_v32 = vld [vmem:[%s9713_s2 + $0x16] ss:$0 sm:$0xff] }
0x29a6   :  { %v6476_v34 = vmul.f32 %v8479_v5, %v8475_v47 }
0x29a7   :  { %8150 = vmatpush3.bf16.msra.mxu0 %v8149_v40 }
0x29a9   :  { %v8481_v53 = vpop.eup %8480 }
0x29aa   :  { %v6477_v44 = vmul.f32 %v8481_v53, %v8477_v22  ;;  %7915 = vmatmul.mubr.msk.f32.vlgmr.msra.gmra.mrb[80].mxu0 %vm2022_vm5, %v6476_v34 }
0x29ac   :  { %7922 = vmatmul.mubr.msk.f32.vlgmr.msra.gmra.mrb[76].mxu1 %vm2022_vm5, %v6477_v44 }
0x2a7d   :  { %v6553_v21 = vpop.f32.mrb[80].mxu0 }
0x2a7e   :  { %v6636_v28 = vadd.f32 %v6553_v21, %v6290_v13  ;;  %v7916_v42 = vpop.f32.mrb[81].mxu0  ;;  %v6778_v13 = vld [vmem:[%s9712_s1 + $0x180] sm:$0xff] }
0x2a7f   :  { %v6632_v25 = vpop.f32.mrb[76].mxu1 }
0x2a80   :  { %v6642_v26 = vadd.f32 %v7139_v7, %v6636_v28  ;;  %v6637_v45 = vadd.f32 %v6632_v25, %v6291_v0  ;;  %v7923_v24 = vpop.f32.mrb[77].mxu1  ;;  %v8162_v0 = vpack.c.bf16 %v6779_v1, %v6778_v13  ;;  %v7149_v13 = vld [vmem:[%s9713_s2 + $0x1d] ss:$0 sm:$0xff] }
0x2a82   :  { %v6643_v48 = vadd.f32 %v7139_v7, %v6637_v45  ;;  %v6644_v61 = vadd.f32 %v6642_v26, %v9379_v8  ;;  %8163 = vmatprep.subr.bf16.mxu1 %v8162_v0  ;;  %v7145_v7 = vld [vmem:[%s9713_s2 + $0x17] ss:$0 sm:$0xff] }
0x2a83   :  { %8165 = vmatpush3.bf16.msra.mxu1 %v8162_v0 }
0x2a84   :  { %v6648_v29 = vsel %vm35_vm0, %v6644_v61, 0.0  ;;  %v6645_v49 = vadd.f32 %v6643_v48, %v9383_v57  ;;  %v6686_v57 = vld [vmem:[%s9712_s1 + $0x160] sm:$0xff]  ;;  %8167 = vmatprep.subr.bf16.mxu1 %v8166_v11 }
0x2a85   :  { %6649 = vadd.xlane.f32.xlu1 %v6648_v29  ;;  %v8154_v2 = vpack.c.bf16 %v6687_v60, %v6686_v57 }
0x2a86   :  { %v6651_v52 = vsel %vm35_vm0, %v6645_v49, 0.0 }
0x2a87   :  { %6652 = vadd.xlane.f32.xlu0 %v6651_v52  ;;  %8155 = vmatprep.subr.bf16.mxu0 %v8154_v2 }
0x2a88   :  { %8157 = vmatpush3.bf16.msra.mxu0 %v8154_v2  ;;  %8169 = vmatpush3.bf16.msra.mxu1 %v8166_v11 }
0x2a89   :  { %8159 = vmatprep.subr.bf16.mxu0 %v8158_v39  ;;  %8171 = vmatprep.subr.bf16.mxu1 %v8170_v43 }
0x2a8c   :  { %8161 = vmatpush3.bf16.msra.mxu0 %v8158_v39  ;;  %8173 = vmatpush3.bf16.msra.mxu1 %v8170_v43 }
0x2a8d   :  { %8175 = vmatprep.subr.bf16.mxu1 %v8174_v31 }
0x2a90   :  { %8177 = vmatpush3.bf16.msra.mxu1 %v8174_v31 }
0x2b12   :  { %v6650_v54 = vpop.xlane.xlu1 %6649 }
0x2b13   :  { %v6654_v55 = vmul.f32 0.03125, %v6650_v54 }
0x2b14   :  { %v6653_v56 = vpop.xlane.xlu0 %6652 }
0x2b15   :  { %v6656_v58 = vsub.f32 %v6644_v61, %v6654_v55  ;;  %v6655_v62 = vmul.f32 0.03125, %v6653_v56 }
0x2b17   :  { %v6657_v4 = vsub.f32 %v6645_v49, %v6655_v62  ;;  %v6658_v36 = vmul.f32 %v6656_v58, %v6656_v58 }
0x2b19   :  { %v6660_v23 = vsel %vm35_vm0, %v6658_v36, 0.0  ;;  %v6659_v37 = vmul.f32 %v6657_v4, %v6657_v4 }
0x2b1a   :  { %6661 = vadd.xlane.f32.xlu0 %v6660_v23 }
0x2b1b   :  { %v6663_v8 = vsel %vm35_vm0, %v6659_v37, 0.0 }
0x2b1c   :  { %6664 = vadd.xlane.f32.xlu1 %v6663_v8 }
0x2ba7   :  { %v6662_v59 = vpop.xlane.xlu0 %6661 }
0x2ba8   :  { %v6666_v14 = vmul.f32 0.03125, %v6662_v59 }
0x2ba9   :  { %v6665_v46 = vpop.xlane.xlu1 %6664 }
0x2baa   :  { %v6668_v16 = vadd.f32 1e-05, %v6666_v14  ;;  %v6667_v63 = vmul.f32 0.03125, %v6665_v46 }
0x2bac   :  { %8482 = vrsqrt.f32 %v6668_v16  ;;  %v6669_v50 = vadd.f32 1e-05, %v6667_v63 }
0x2bae   :  { %8484 = vrsqrt.f32 %v6669_v50 }
0x2bb6   :  { %v8483_v3 = vpop.eup %8482 }
0x2bb7   :  { %v6672_v17 = vmul.f32 %v8483_v3, %v6656_v58 }
0x2bb8   :  { %v8485_v41 = vpop.eup %8484 }
0x2bb9   :  { %v6673_v20 = vmul.f32 %v8485_v41, %v6657_v4  ;;  %v6678_v47 = vmul.f32 %v7140_v6, %v6672_v17 }
0x2bbb   :  { %v6679_v18 = vmul.f32 %v7140_v6, %v6673_v20  ;;  %v6684_v22 = vadd.f32 %v7141_v19, %v6678_v47 }
0x2bbd   :  { %v6685_v51 = vadd.f32 %v7141_v19, %v6679_v18  ;;  %7932 = vmatprep.mubr.msk.f32.mxu0 %vm35_vm0, %v6684_v22 }
0x2bbf   :  { %7933 = vmatmul.mubr.msk.f32.vlgmr.msra.gmra.mrb[82].mxu0 %vm35_vm0, %v6685_v51 }
0x2c92   :  { %v7934_v35 = vpop.f32.mrb[82].mxu0 }
0x2c93   :  { %v6773_v5 = vadd.f32 %v7934_v35, %v7142_v32  ;;  %v6767_v40 = vpop.f32.mrb[83].mxu0  ;;  %v7151_v35 = vld [vmem:[%s9713_s2 + $0x23] ss:$0 sm:$0xff] }
0x2c94   :  { %v6768_v34 = vadd.f32 %v7142_v32, %v6767_v40 }
0x2c95   :  { %v6777_v44 = vmax.f32 %v6773_v5, 0.0 }
0x2c96   :  { %v6776_v53 = vmax.f32 %v6768_v34, 0.0 }
0x2c98   :  { %7951 = vmatprep.mubr.msk.f32.mxu1 %vm3384_vm6, %v6776_v53 }
0x2c99   :  { %7952 = vmatmul.mubr.msk.f32.vlgmr.msra.gmra.mrb[78].mxu1 %vm3384_vm6, %v6777_v44 }
0x2d6c   :  { %v7953_v21 = vpop.f32.mrb[78].mxu1 }
0x2d6d   :  { %v6869_v28 = vadd.f32 %v7953_v21, %v7145_v7  ;;  %v6863_v42 = vpop.f32.mrb[79].mxu1 }
0x2d6e   :  { %v6864_v25 = vadd.f32 %v7145_v7, %v6863_v42 }
0x2d6f   :  { %v6873_v26 = vadd.f32 %v6869_v28, %v6685_v51 }
0x2d70   :  { %v6872_v45 = vadd.f32 %v6864_v25, %v6684_v22 }
0x2d71   :  { %v6879_v24 = vsel %vm35_vm0, %v6873_v26, 0.0 }
0x2d72   :  { %6880 = vadd.xlane.f32.xlu1 %v6879_v24  ;;  %v6876_v48 = vsel %vm35_vm0, %v6872_v45, 0.0 }
0x2d73   :  { %6877 = vadd.xlane.f32.xlu0 %v6876_v48 }
0x2dff   :  { %v6881_v61 = vpop.xlane.xlu1 %6880 }
0x2e00   :  { %v6883_v29 = vmul.f32 0.03125, %v6881_v61  ;;  %v6878_v49 = vpop.xlane.xlu0 %6877 }
0x2e01   :  { %v6882_v52 = vmul.f32 0.03125, %v6878_v49 }
0x2e02   :  { %v6885_v54 = vsub.f32 %v6873_v26, %v6883_v29 }
0x2e03   :  { %v6884_v55 = vsub.f32 %v6872_v45, %v6882_v52 }
0x2e04   :  { %v6887_v56 = vmul.f32 %v6885_v54, %v6885_v54 }
0x2e05   :  { %v6886_v58 = vmul.f32 %v6884_v55, %v6884_v55 }
0x2e06   :  { %v6891_v62 = vsel %vm35_vm0, %v6887_v56, 0.0 }
0x2e07   :  { %6892 = vadd.xlane.f32.xlu1 %v6891_v62  ;;  %v6888_v4 = vsel %vm35_vm0, %v6886_v58, 0.0 }
0x2e08   :  { %6889 = vadd.xlane.f32.xlu0 %v6888_v4 }
0x2e94   :  { %v6893_v36 = vpop.xlane.xlu1 %6892 }
0x2e95   :  { %v6895_v23 = vmul.f32 0.03125, %v6893_v36  ;;  %v6890_v37 = vpop.xlane.xlu0 %6889 }
0x2e96   :  { %v6894_v8 = vmul.f32 0.03125, %v6890_v37 }
0x2e97   :  { %v6897_v57 = vadd.f32 1e-05, %v6895_v23 }
0x2e98   :  { %v6896_v60 = vadd.f32 1e-05, %v6894_v8 }
0x2e99   :  { %8486 = vrsqrt.f32 %v6897_v57 }
0x2e9a   :  { %8488 = vrsqrt.f32 %v6896_v60 }
0x2ea3   :  { %v8487_v2 = vpop.eup %8486 }
0x2ea4   :  { %v8489_v10 = vpop.eup %8488  ;;  %v6901_v39 = vmul.f32 %v8487_v2, %v6885_v54 }
0x2ea5   :  { %v6900_v1 = vmul.f32 %v8489_v10, %v6884_v55 }
0x2ea6   :  { %v6907_v33 = vmul.f32 %v7148_v9, %v6901_v39 }
0x2ea7   :  { %v6906_v0 = vmul.f32 %v7148_v9, %v6900_v1 }
0x2ea8   :  { %v6913_v15 = vadd.f32 %v7149_v13, %v6907_v33 }
0x2ea9   :  { %v6912_v11 = vadd.f32 %v7149_v13, %v6906_v0 }
0x2eaa   :  { %v6919_v12 = vsel %vm35_vm0, %v6913_v15, 0.0 }
0x2eab   :  { %6920 = vadd.xlane.f32.xlu1 %v6919_v12  ;;  %v6916_v38 = vsel %vm35_vm0, %v6912_v11, 0.0 }
0x2eac   :  { %6917 = vadd.xlane.f32.xlu0 %v6916_v38 }
0x2f38   :  { %v6921_v43 = vpop.xlane.xlu1 %6920 }
0x2f39   :  { %v6923_v59 = vmul.f32 0.03125, %v6921_v43  ;;  %v6918_v14 = vpop.xlane.xlu0 %6917 }
0x2f3a   :  { %v6922_v46 = vmul.f32 0.03125, %v6918_v14 }
0x2f3b   :  { %v6925_v16 = vsub.f32 %v6913_v15, %v6923_v59 }
0x2f3c   :  { %v6924_v63 = vsub.f32 %v6912_v11, %v6922_v46 }
0x2f3d   :  { %v6927_v50 = vmul.f32 %v6925_v16, %v6925_v16 }
0x2f3e   :  { %v6926_v3 = vmul.f32 %v6924_v63, %v6924_v63 }
0x2f3f   :  { %v6931_v6 = vsel %vm35_vm0, %v6927_v50, 0.0 }
0x2f40   :  { %6932 = vadd.xlane.f32.xlu1 %v6931_v6  ;;  %v6928_v17 = vsel %vm35_vm0, %v6926_v3, 0.0 }
0x2f41   :  { %6929 = vadd.xlane.f32.xlu0 %v6928_v17 }
0x2fcd   :  { %v6933_v41 = vpop.xlane.xlu1 %6932 }
0x2fce   :  { %v6935_v19 = vmul.f32 0.03125, %v6933_v41  ;;  %v6930_v20 = vpop.xlane.xlu0 %6929 }
0x2fcf   :  { %v6934_v47 = vmul.f32 0.03125, %v6930_v20 }
0x2fd0   :  { %v6937_v18 = vadd.f32 1e-05, %v6935_v19 }
0x2fd1   :  { %v6936_v22 = vadd.f32 1e-05, %v6934_v47 }
0x2fd2   :  { %8490 = vrsqrt.f32 %v6937_v18 }
0x2fd3   :  { %8492 = vrsqrt.f32 %v6936_v22 }
0x2fdc   :  { %v8491_v51 = vpop.eup %8490 }
0x2fdd   :  { %v8493_v30 = vpop.eup %8492  ;;  %v6941_v31 = vmul.f32 %v8491_v51, %v6925_v16 }
0x2fde   :  { %v6940_v32 = vmul.f32 %v8493_v30, %v6924_v63 }
0x2fdf   :  { %v6947_v5 = vmul.f32 %v7150_v27, %v6941_v31 }
0x2fe0   :  { %v6946_v40 = vmul.f32 %v7150_v27, %v6940_v32 }
0x2fe1   :  { %v6953_v34 = vadd.f32 %v7151_v35, %v6947_v5 }
0x2fe2   :  { %v6952_v53 = vadd.f32 %v7151_v35, %v6946_v40 }
0x2fe3   :  { %6955 = vst.msk [vmem:[#allocation2 + $0x8] sm:$0xff] %vm35_vm0, %v6953_v34 }
0x2fe4   :  { %6954 = vst.msk [vmem:[#allocation2] sm:$0xff] %vm35_vm0, %v6952_v53 }
0x2fe5   :  { %8515 = shalt.err (!%p8512_p4)
}
0x2fe6   :  { %s8516_s8 = scalar_lea.hbm %s9714_s3, 256 }
0x2fe7   :  { %p8517_p5 = scmp.ne.s32.totalorder %s9714_s3, %s8516_s8  ;;  %p8520_p6 = scmp.lt.u32.totalorder %s8516_s8, %s9714_s3 }
0x2fe9   :  { %p8522_p7 = pnand %p8520_p6, %p8517_p5 }
0x2feb   :  { %8525 = shalt.err (!%p8522_p7)
}
0x2fec   :  { %s8542_s13 = smov 128   ;;  %s8543_s14 = smov 8  }
0x2fed   :  { %6967 = dma.vmem_to_hbm [thread:$0]  %s6962_s5, 256, %s9714_s3, [#allocation3], %s8542_s13, %s8542_s13, %s8543_s14  }
0x2fee   :  { %8526 = dma.done.wait [#allocation3], 256  }
0x2fef   :  { %8527 = vsyncadd [#allocation3], 4294967040 }
0x2ff0   :  { %6971 = vsyncpa [#allocation3], 1 }

</bundles_post_ra>
